<compile_context>
chip_gen: v6e
topology: v6e:2x2x1
jax: 0.10.0
libtpu: 0.0.40
codegen_flags: <defaults>
</compile_context>

<pallas_src>
import functools

import numpy as np
import jax
import jax.numpy as jnp
from jax import lax
from jax.experimental import pallas as pl
from jax.experimental.pallas import tpu as pltpu

LANES = 128
_TB = 8            # samples per grid step (must be a multiple of 8 for an aligned output block)
_KH = 5            # conv kernel size (both convs)
_PH = 5            # pooled height consumed by fc1
_VMEM_LIMIT = 48 * 1024 * 1024

# Per-sample padded row counts of each activation stage (all multiples of 8):
#   x  : 32 rows (all valid)          cols = w*3 + c            (96 used of 96)
#   t1 : 16 rows (14 valid)           cols = pw*6 + c           (84 used of 128)
#   t2 :  8 rows ( 5 valid)           cols = pw*16 + o          (80 used of 128)
_R1, _R2, _R3 = 32, 16, 8


# ---------------- The fused whole-network kernel ----------------

def _net_kernel(x_ref, c1w_ref, c1b_ref, c2w_ref, c2b_ref,
                w1_ref, b1_ref, w2_ref, b2_ref, w3_ref, b3_ref,
                o_ref, acc_ref, z_ref, t1_ref, t2_ref, *, tb):
    """One grid step = full forward pass for `tb` samples.

    x_ref : (tb*32, 96)        flattened input rows, col = w*3 + c
    c*w   : (5, K, 256)        conv weight slabs; lanes [0:128) even / [128:256) odd width columns
    c*b   : (1, 128)           conv bias tiled over pooled width (zero in lane padding)
    w1    : (5, 128, 128)      fc1 packed per pooled row; w2/w3: (128, 128); b*: (1, 128)
    o_ref : (tb, 128)          logits in columns [0, 10)
    acc_ref: VMEM (tb*32, 256) shared conv accumulator     z_ref: VMEM (tb*32, 128)
    t1_ref: VMEM (tb*16, 128)  pooled conv1                t2_ref: VMEM (tb*8, 128) pooled conv2
    """
    f32 = jnp.float32
    m1, m2, m3 = tb * _R1, tb * _R2, tb * _R3

    def conv(src_ref, w_ref, rows):
        # sum over the kh row shifts; the width shift, channel contraction and the width half of
        # the 2x2 maxpool are folded into the packed (K, 256) weight slabs.
        acc_ref[pl.ds(0, rows), :] = jnp.dot(
            src_ref[pl.ds(0, rows), :], w_ref[0], preferred_element_type=f32)
        for i in range(1, _KH):
            m = rows - i                       # last i rows are per-sample padding rows: skip them
            acc_ref[pl.ds(0, m), :] = acc_ref[pl.ds(0, m), :] + jnp.dot(
                src_ref[pl.ds(i, m), :], w_ref[i], preferred_element_type=f32)

    def pool(t_ref, b_ref, out_rows, chunk):
        # width pool (even/odd lane halves) + bias + ReLU, then height pool (even/odd rows),
        # chunked per sample to keep vreg pressure low.
        for c in range(0, out_rows, chunk):
            r = 2 * chunk
            even = acc_ref[pl.ds(2 * c, r), pl.ds(0, LANES)]
            odd = acc_ref[pl.ds(2 * c, r), pl.ds(LANES, LANES)]
            z_ref[pl.ds(2 * c, r), :] = jnp.maximum(
                jnp.maximum(even, odd) + b_ref[...], 0.0)
            t_ref[pl.ds(c, chunk), :] = jnp.maximum(
                z_ref[pl.ds(2 * c, chunk, stride=2), :],
                z_ref[pl.ds(2 * c + 1, chunk, stride=2), :])

    # conv1 (3->6, 5x5) + ReLU + 2x2 maxpool : valid rows 0..27 per sample, pooled rows 0..13
    conv(x_ref, c1w_ref, m1)
    pool(t1_ref, c1b_ref, m2, _R2)

    # conv2 (6->16, 5x5) + ReLU + 2x2 maxpool: valid rows 0..9 per sample, pooled rows 0..4
    conv(t1_ref, c2w_ref, m2)
    pool(t2_ref, c2b_ref, m3, _R3)

    # fc1 + ReLU + fc2 + ReLU + fc3; per-sample pooled rows gathered with stride-_R3 reads.
    h = jnp.dot(t2_ref[pl.ds(0, tb, stride=_R3), :], w1_ref[0], preferred_element_type=f32)
    for ph in range(1, _PH):
        h = h + jnp.dot(t2_ref[pl.ds(ph, tb, stride=_R3), :], w1_ref[ph],
                        preferred_element_type=f32)
    h1 = jnp.maximum(h + b1_ref[...], 0.0)
    h2 = jnp.maximum(jnp.dot(h1, w2_ref[...], preferred_element_type=f32) + b2_ref[...], 0.0)
    o_ref[...] = jnp.dot(h2, w3_ref[...], preferred_element_type=f32) + b3_ref[...]


# ---------------- Pallas wrapper (the whole forward = one pallas_call) ----------------

def net_pallas_forward(packed, x, *, tb=_TB):
    """x: (B, 3, 32, 32) NCHW float32 -> logits (B, 10)."""
    assert tb % 8 == 0
    b_n = x.shape[0]
    assert x.shape[1:] == (3, 32, 32), "Net's fc1 dims imply 3x32x32 inputs"
    # Single boundary layout change: NCHW -> per-row "w*C + c" columns.
    x2 = jnp.transpose(x, (0, 2, 3, 1)).reshape(b_n, 32, 96)
    b_pad = ((b_n + tb - 1) // tb) * tb
    if b_pad != b_n:
        x2 = jnp.concatenate([x2, jnp.zeros((b_pad - b_n, 32, 96), x2.dtype)], axis=0)
    x_rows = x2.reshape(b_pad * 32, 96)

    kern = functools.partial(_net_kernel, tb=tb)
    const = lambda b: (0, 0)
    const3 = lambda b: (0, 0, 0)
    out = pl.pallas_call(
        kern,
        out_shape=jax.ShapeDtypeStruct((b_pad, LANES), jnp.float32),
        grid=(b_pad // tb,),
        in_specs=[
            pl.BlockSpec((tb * _R1, 96), lambda b: (b, 0)),          # input rows
            pl.BlockSpec((_KH, 96, 2 * LANES), const3),              # conv1 weights (even|odd)
            pl.BlockSpec((1, LANES), const),                         # conv1 bias
            pl.BlockSpec((_KH, LANES, 2 * LANES), const3),           # conv2 weights (even|odd)
            pl.BlockSpec((1, LANES), const),                         # conv2 bias
            pl.BlockSpec((_PH, LANES, LANES), const3),               # fc1 weights (per pooled row)
            pl.BlockSpec((1, LANES), const),                         # fc1 bias
            pl.BlockSpec((LANES, LANES), const),                     # fc2 weights
            pl.BlockSpec((1, LANES), const),                         # fc2 bias
            pl.BlockSpec((LANES, LANES), const),                     # fc3 weights
            pl.BlockSpec((1, LANES), const),                         # fc3 bias
        ],
        out_specs=pl.BlockSpec((tb, LANES), lambda b: (b, 0)),
        scratch_shapes=[
            pltpu.VMEM((tb * _R1, 2 * LANES), jnp.float32),   # conv accumulator (even|odd halves)
            pltpu.VMEM((tb * _R1, LANES), jnp.float32),       # width-pooled / ReLU'd conv rows
            pltpu.VMEM((tb * _R2, LANES), jnp.float32),       # pooled conv1 output (t1)
            pltpu.VMEM((tb * _R3, LANES), jnp.float32),       # pooled conv2 output (t2)
        ],
        compiler_params=pltpu.CompilerParams(
            dimension_semantics=("parallel",),                 # batch tiles shard across TCs
            vmem_limit_bytes=_VMEM_LIMIT),
    )(x_rows, packed["c1_w"], packed["c1_b"], packed["c2_w"], packed["c2_b"],
      packed["w1"], packed["b1"], packed["w2"], packed["b2"],
      packed["w3"], packed["b3"])
    return out[:b_n, :10]


# ---------------- One-time parameter packing (outside the jitted forward) ----------------

def _pack_conv(w, b, *, w_in, k_cols):
    """Pack torch Conv2d weights (O, C, KH, KW) into a single (KH, k_cols, 256) slab:
         slab[i, (2*pw + j)*C + c,         pw*O + o] = w[o, c, i, j]    (even output column)
         slab[i, (2*pw + 1 + j)*C + c, 128 + pw*O + o] = w[o, c, i, j]  (odd  output column)
    so each row shift is ONE N=256 matmul and the width half of the 2x2 maxpool is an elementwise
    max of the two lane halves (valid because bias is shared and ReLU is monotone)."""
    w = np.asarray(w, np.float32)
    o_n, c_n, kh, kw = w.shape
    ow = w_in - kw + 1
    ow2 = ow // 2
    assert ow % 2 == 0 and ow2 * o_n <= LANES and w_in * c_n <= k_cols
    wt = np.transpose(w, (2, 3, 1, 0))                        # (KH, KW, C, O)
    slab = np.zeros((kh, k_cols, 2 * LANES), np.float32)
    for i in range(kh):
        for pw in range(ow2):
            for j in range(kw):
                ce = (2 * pw + j) * c_n
                co = (2 * pw + 1 + j) * c_n
                slab[i, ce:ce + c_n, pw * o_n:(pw + 1) * o_n] = wt[i, j]
                slab[i, co:co + c_n, LANES + pw * o_n:LANES + (pw + 1) * o_n] = wt[i, j]
    bt = np.zeros((1, LANES), np.float32)
    bt[0, :ow2 * o_n] = np.tile(np.asarray(b, np.float32), ow2)
    return slab, bt


def _pack_fc1(w, b, *, ph_n, pw_n, o_n, k_cols, n_pad):
    """fc1 weight (M, O*PH*PW) -> (ph_n, k_cols, n_pad) consuming the pooled conv2 layout
    (col = pw*O + o) directly; folds torch's flatten(C,H,W) ordering into the weight."""
    w = np.asarray(w, np.float32)
    m = w.shape[0]
    out = np.zeros((ph_n, k_cols, n_pad), np.float32)
    for o in range(o_n):
        for ph in range(ph_n):
            for pw in range(pw_n):
                out[ph, pw * o_n + o, :m] = w[:, o * ph_n * pw_n + ph * pw_n + pw]
    bp = np.zeros((1, n_pad), np.float32)
    bp[0, :m] = np.asarray(b, np.float32)
    return out, bp


def _pack_fc(w, b, *, k_pad, n_pad):
    """Dense fc weight (M, K) -> pre-transposed, zero-padded (k_pad, n_pad)."""
    w = np.asarray(w, np.float32)
    m, k = w.shape
    wp = np.zeros((k_pad, n_pad), np.float32)
    wp[:k, :m] = w.T
    bp = np.zeros((1, n_pad), np.float32)
    bp[0, :m] = np.asarray(b, np.float32)
    return wp, bp


def pack_params(params):
    """One-time repack of torch-layout parameters into the kernel's padded, lane-dense layouts."""
    c1_w, c1_b = _pack_conv(params["conv1_w"], params["conv1_b"], w_in=32, k_cols=32 * 3)
    c2_w, c2_b = _pack_conv(params["conv2_w"], params["conv2_b"], w_in=14, k_cols=LANES)
    w1, b1 = _pack_fc1(params["fc1_w"], params["fc1_b"],
                       ph_n=5, pw_n=5, o_n=16, k_cols=LANES, n_pad=LANES)
    w2, b2 = _pack_fc(params["fc2_w"], params["fc2_b"], k_pad=LANES, n_pad=LANES)
    w3, b3 = _pack_fc(params["fc3_w"], params["fc3_b"], k_pad=LANES, n_pad=LANES)
    packed = dict(c1_w=c1_w, c1_b=c1_b, c2_w=c2_w, c2_b=c2_b,
                  w1=w1, b1=b1, w2=w2, b2=b2, w3=w3, b3=b3)
    return {k: jnp.asarray(v) for k, v in packed.items()}


# ---------------- Parameter init + plain-JAX reference ----------------

def init_params(key):
    ks = jax.random.split(key, 10)

    def u(k, shape, fan_in):
        bound = 1.0 / (fan_in ** 0.5)
        return jax.random.uniform(k, shape, jnp.float32, -bound, bound)

    return {
        "conv1_w": u(ks[0], (6, 3, 5, 5), 3 * 5 * 5),
        "conv1_b": u(ks[1], (6,), 3 * 5 * 5),
        "conv2_w": u(ks[2], (16, 6, 5, 5), 6 * 5 * 5),
        "conv2_b": u(ks[3], (16,), 6 * 5 * 5),
        "fc1_w": u(ks[4], (120, 16 * 5 * 5), 16 * 5 * 5),
        "fc1_b": u(ks[5], (120,), 16 * 5 * 5),
        "fc2_w": u(ks[6], (84, 120), 120),
        "fc2_b": u(ks[7], (84,), 120),
        "fc3_w": u(ks[8], (10, 84), 84),
        "fc3_b": u(ks[9], (10,), 84),
    }


def net_reference(params, x):
    """Plain-JAX reference with PyTorch semantics (self-check only)."""
    hi = lax.Precision.HIGHEST

    def conv(x, w, b):
        y = lax.conv_general_dilated(x, w, (1, 1), "VALID",
                                     dimension_numbers=("NCHW", "OIHW", "NCHW"),
                                     precision=hi)
        return y + b.reshape(1, -1, 1, 1)

    def pool(x):
        return lax.reduce_window(x, -jnp.inf, lax.max, (1, 1, 2, 2), (1, 1, 2, 2), "VALID")

    x = pool(jax.nn.relu(conv(x, params["conv1_w"], params["conv1_b"])))
    x = pool(jax.nn.relu(conv(x, params["conv2_w"], params["conv2_b"])))
    x = x.reshape(x.shape[0], -1)
    x = jax.nn.relu(jnp.dot(x, params["fc1_w"].T, precision=hi) + params["fc1_b"])
    x = jax.nn.relu(jnp.dot(x, params["fc2_w"].T, precision=hi) + params["fc2_b"])
    return jnp.dot(x, params["fc3_w"].T, precision=hi) + params["fc3_b"]


if __name__ == "__main__":
    key = jax.random.PRNGKey(0)
    pkey, xkey = jax.random.split(key)
    params = init_params(pkey)
    packed = pack_params(params)                    # one-time weight repack, outside the forward
    # The module's fc1 (16*5*5) implies 3x32x32 inputs; batch=2 (padded to TB=8 inside).
    x = jax.random.normal(xkey, (2, 3, 32, 32), jnp.float32)
    fwd = jax.jit(net_pallas_forward)
    out = jax.block_until_ready(fwd(packed, x))
    assert out.shape == (2, 10) and out.dtype == jnp.float32
    ref = net_reference(params, x)
    err = float(jnp.max(jnp.abs(out - ref)))
    assert err < 5e-2, f"kernel/reference mismatch: max|diff|={err}"
    print("KERNEL_OK")
</pallas_src>

<mosaic_0001>
module attributes {stable_mosaic.version = 11 : i64} {
  func.func @_net_kernel(%arg0: i32, %arg1: memref<256x96xf32, #tpu.memory_space<vmem>>, %arg2: memref<5x96x256xf32, #tpu.memory_space<vmem>>, %arg3: memref<1x128xf32, #tpu.memory_space<vmem>>, %arg4: memref<5x128x256xf32, #tpu.memory_space<vmem>>, %arg5: memref<1x128xf32, #tpu.memory_space<vmem>>, %arg6: memref<5x128x128xf32, #tpu.memory_space<vmem>>, %arg7: memref<1x128xf32, #tpu.memory_space<vmem>>, %arg8: memref<128x128xf32, #tpu.memory_space<vmem>>, %arg9: memref<1x128xf32, #tpu.memory_space<vmem>>, %arg10: memref<128x128xf32, #tpu.memory_space<vmem>>, %arg11: memref<1x128xf32, #tpu.memory_space<vmem>>, %arg12: memref<8x128xf32, #tpu.memory_space<vmem>>, %arg13: memref<256x256xf32, #tpu.memory_space<vmem>>, %arg14: memref<256x128xf32, #tpu.memory_space<vmem>>, %arg15: memref<128x128xf32, #tpu.memory_space<vmem>>, %arg16: memref<64x128xf32, #tpu.memory_space<vmem>>) attributes {dimension_semantics = [#tpu.dimension_semantics<parallel>], iteration_bounds = array<i64: 1>, scalar_prefetch = 0 : i64, scratch_operands = 4 : i64, tpu.core_type = #tpu.core_type<tc>, window_params = [{transform_indices = @transform_0, window_bounds = array<i64: 256, 96>}, {pipeline_mode = #tpu.pipeline_mode<synchronous>, transform_indices = @transform_1, window_bounds = array<i64: 5, 96, 256>}, {pipeline_mode = #tpu.pipeline_mode<synchronous>, transform_indices = @transform_2, window_bounds = array<i64: 1, 128>}, {pipeline_mode = #tpu.pipeline_mode<synchronous>, transform_indices = @transform_3, window_bounds = array<i64: 5, 128, 256>}, {pipeline_mode = #tpu.pipeline_mode<synchronous>, transform_indices = @transform_4, window_bounds = array<i64: 1, 128>}, {pipeline_mode = #tpu.pipeline_mode<synchronous>, transform_indices = @transform_5, window_bounds = array<i64: 5, 128, 128>}, {pipeline_mode = #tpu.pipeline_mode<synchronous>, transform_indices = @transform_6, window_bounds = array<i64: 1, 128>}, {pipeline_mode = #tpu.pipeline_mode<synchronous>, transform_indices = @transform_7, window_bounds = array<i64: 128, 128>}, {pipeline_mode = #tpu.pipeline_mode<synchronous>, transform_indices = @transform_8, window_bounds = array<i64: 1, 128>}, {pipeline_mode = #tpu.pipeline_mode<synchronous>, transform_indices = @transform_9, window_bounds = array<i64: 128, 128>}, {pipeline_mode = #tpu.pipeline_mode<synchronous>, transform_indices = @transform_10, window_bounds = array<i64: 1, 128>}, {transform_indices = @transform_11, window_bounds = array<i64: 8, 128>}]} {
    %c0 = arith.constant 0 : index
    %c0_0 = arith.constant 0 : index
    %0 = vector.load %arg1[%c0, %c0_0] : memref<256x96xf32, #tpu.memory_space<vmem>>, vector<256x96xf32>
    %c0_1 = arith.constant 0 : index
    %c0_2 = arith.constant 0 : index
    %c0_3 = arith.constant 0 : index
    %1 = vector.load %arg2[%c0_1, %c0_2, %c0_3] : memref<5x96x256xf32, #tpu.memory_space<vmem>>, vector<1x96x256xf32>
    %2 = vector.shape_cast %1 : vector<1x96x256xf32> to vector<96x256xf32>
    %cst = arith.constant dense<0.000000e+00> : vector<256x256xf32>
    %3 = tpu.matmul %0, %2, %cst {dimension_numbers = #tpu.dot_dimension_numbers<[1], [0], [0], [1], [0, 0, 1, 1], [], []>} : vector<256x96xf32>, vector<96x256xf32>, vector<256x256xf32> -> vector<256x256xf32>
    %c0_4 = arith.constant 0 : index
    %c0_5 = arith.constant 0 : index
    %4 = vector.load %arg13[%c0_4, %c0_5] : memref<256x256xf32, #tpu.memory_space<vmem>>, vector<256x256xf32>
    tpu.vector_store %arg13[%c0_4, %c0_5], %3 {strides = array<i32>} : memref<256x256xf32, #tpu.memory_space<vmem>>, vector<256x256xf32>,
    %c0_6 = arith.constant 0 : index
    %c0_7 = arith.constant 0 : index
    %5 = vector.load %arg13[%c0_6, %c0_7] : memref<256x256xf32, #tpu.memory_space<vmem>>, vector<255x256xf32>
    %c1 = arith.constant 1 : index
    %c0_8 = arith.constant 0 : index
    %6 = vector.load %arg1[%c1, %c0_8] : memref<256x96xf32, #tpu.memory_space<vmem>>, vector<255x96xf32>
    %c1_9 = arith.constant 1 : index
    %c0_10 = arith.constant 0 : index
    %c0_11 = arith.constant 0 : index
    %7 = vector.load %arg2[%c1_9, %c0_10, %c0_11] : memref<5x96x256xf32, #tpu.memory_space<vmem>>, vector<1x96x256xf32>
    %8 = vector.shape_cast %7 : vector<1x96x256xf32> to vector<96x256xf32>
    %cst_12 = arith.constant dense<0.000000e+00> : vector<255x256xf32>
    %9 = tpu.matmul %6, %8, %cst_12 {dimension_numbers = #tpu.dot_dimension_numbers<[1], [0], [0], [1], [0, 0, 1, 1], [], []>} : vector<255x96xf32>, vector<96x256xf32>, vector<255x256xf32> -> vector<255x256xf32>
    %10 = arith.addf %5, %9 : vector<255x256xf32>
    %c0_13 = arith.constant 0 : index
    %c0_14 = arith.constant 0 : index
    %11 = vector.load %arg13[%c0_13, %c0_14] : memref<256x256xf32, #tpu.memory_space<vmem>>, vector<255x256xf32>
    tpu.vector_store %arg13[%c0_13, %c0_14], %10 {strides = array<i32>} : memref<256x256xf32, #tpu.memory_space<vmem>>, vector<255x256xf32>,
    %c0_15 = arith.constant 0 : index
    %c0_16 = arith.constant 0 : index
    %12 = vector.load %arg13[%c0_15, %c0_16] : memref<256x256xf32, #tpu.memory_space<vmem>>, vector<254x256xf32>
    %c2 = arith.constant 2 : index
    %c0_17 = arith.constant 0 : index
    %13 = vector.load %arg1[%c2, %c0_17] : memref<256x96xf32, #tpu.memory_space<vmem>>, vector<254x96xf32>
    %c2_18 = arith.constant 2 : index
    %c0_19 = arith.constant 0 : index
    %c0_20 = arith.constant 0 : index
    %14 = vector.load %arg2[%c2_18, %c0_19, %c0_20] : memref<5x96x256xf32, #tpu.memory_space<vmem>>, vector<1x96x256xf32>
    %15 = vector.shape_cast %14 : vector<1x96x256xf32> to vector<96x256xf32>
    %cst_21 = arith.constant dense<0.000000e+00> : vector<254x256xf32>
    %16 = tpu.matmul %13, %15, %cst_21 {dimension_numbers = #tpu.dot_dimension_numbers<[1], [0], [0], [1], [0, 0, 1, 1], [], []>} : vector<254x96xf32>, vector<96x256xf32>, vector<254x256xf32> -> vector<254x256xf32>
    %17 = arith.addf %12, %16 : vector<254x256xf32>
    %c0_22 = arith.constant 0 : index
    %c0_23 = arith.constant 0 : index
    %18 = vector.load %arg13[%c0_22, %c0_23] : memref<256x256xf32, #tpu.memory_space<vmem>>, vector<254x256xf32>
    tpu.vector_store %arg13[%c0_22, %c0_23], %17 {strides = array<i32>} : memref<256x256xf32, #tpu.memory_space<vmem>>, vector<254x256xf32>,
    %c0_24 = arith.constant 0 : index
    %c0_25 = arith.constant 0 : index
    %19 = vector.load %arg13[%c0_24, %c0_25] : memref<256x256xf32, #tpu.memory_space<vmem>>, vector<253x256xf32>
    %c3 = arith.constant 3 : index
    %c0_26 = arith.constant 0 : index
    %20 = vector.load %arg1[%c3, %c0_26] : memref<256x96xf32, #tpu.memory_space<vmem>>, vector<253x96xf32>
    %c3_27 = arith.constant 3 : index
    %c0_28 = arith.constant 0 : index
    %c0_29 = arith.constant 0 : index
    %21 = vector.load %arg2[%c3_27, %c0_28, %c0_29] : memref<5x96x256xf32, #tpu.memory_space<vmem>>, vector<1x96x256xf32>
    %22 = vector.shape_cast %21 : vector<1x96x256xf32> to vector<96x256xf32>
    %cst_30 = arith.constant dense<0.000000e+00> : vector<253x256xf32>
    %23 = tpu.matmul %20, %22, %cst_30 {dimension_numbers = #tpu.dot_dimension_numbers<[1], [0], [0], [1], [0, 0, 1, 1], [], []>} : vector<253x96xf32>, vector<96x256xf32>, vector<253x256xf32> -> vector<253x256xf32>
    %24 = arith.addf %19, %23 : vector<253x256xf32>
    %c0_31 = arith.constant 0 : index
    %c0_32 = arith.constant 0 : index
    %25 = vector.load %arg13[%c0_31, %c0_32] : memref<256x256xf32, #tpu.memory_space<vmem>>, vector<253x256xf32>
    tpu.vector_store %arg13[%c0_31, %c0_32], %24 {strides = array<i32>} : memref<256x256xf32, #tpu.memory_space<vmem>>, vector<253x256xf32>,
    %c0_33 = arith.constant 0 : index
    %c0_34 = arith.constant 0 : index
    %26 = vector.load %arg13[%c0_33, %c0_34] : memref<256x256xf32, #tpu.memory_space<vmem>>, vector<252x256xf32>
    %c4 = arith.constant 4 : index
    %c0_35 = arith.constant 0 : index
    %27 = vector.load %arg1[%c4, %c0_35] : memref<256x96xf32, #tpu.memory_space<vmem>>, vector<252x96xf32>
    %c4_36 = arith.constant 4 : index
    %c0_37 = arith.constant 0 : index
    %c0_38 = arith.constant 0 : index
    %28 = vector.load %arg2[%c4_36, %c0_37, %c0_38] : memref<5x96x256xf32, #tpu.memory_space<vmem>>, vector<1x96x256xf32>
    %29 = vector.shape_cast %28 : vector<1x96x256xf32> to vector<96x256xf32>
    %cst_39 = arith.constant dense<0.000000e+00> : vector<252x256xf32>
    %30 = tpu.matmul %27, %29, %cst_39 {dimension_numbers = #tpu.dot_dimension_numbers<[1], [0], [0], [1], [0, 0, 1, 1], [], []>} : vector<252x96xf32>, vector<96x256xf32>, vector<252x256xf32> -> vector<252x256xf32>
    %31 = arith.addf %26, %30 : vector<252x256xf32>
    %c0_40 = arith.constant 0 : index
    %c0_41 = arith.constant 0 : index
    %32 = vector.load %arg13[%c0_40, %c0_41] : memref<256x256xf32, #tpu.memory_space<vmem>>, vector<252x256xf32>
    tpu.vector_store %arg13[%c0_40, %c0_41], %31 {strides = array<i32>} : memref<256x256xf32, #tpu.memory_space<vmem>>, vector<252x256xf32>,
    %c0_42 = arith.constant 0 : index
    %c0_43 = arith.constant 0 : index
    %33 = vector.load %arg13[%c0_42, %c0_43] : memref<256x256xf32, #tpu.memory_space<vmem>>, vector<32x128xf32>
    %c0_44 = arith.constant 0 : index
    %c128 = arith.constant 128 : index
    %34 = vector.load %arg13[%c0_44, %c128] : memref<256x256xf32, #tpu.memory_space<vmem>>, vector<32x128xf32>
    %35 = arith.maximumf %33, %34 : vector<32x128xf32>
    %c0_45 = arith.constant 0 : index
    %c0_46 = arith.constant 0 : index
    %36 = vector.load %arg3[%c0_45, %c0_46] : memref<1x128xf32, #tpu.memory_space<vmem>>, vector<1x128xf32>
    %37 = vector.broadcast %36 : vector<1x128xf32> to vector<32x128xf32>
    %38 = arith.addf %35, %37 : vector<32x128xf32>
    %cst_47 = arith.constant 0.000000e+00 : f32
    %39 = vector.broadcast %cst_47 : f32 to vector<32x128xf32>
    %40 = arith.maximumf %38, %39 : vector<32x128xf32>
    %c0_48 = arith.constant 0 : index
    %c0_49 = arith.constant 0 : index
    %41 = vector.load %arg14[%c0_48, %c0_49] : memref<256x128xf32, #tpu.memory_space<vmem>>, vector<32x128xf32>
    tpu.vector_store %arg14[%c0_48, %c0_49], %40 {strides = array<i32>} : memref<256x128xf32, #tpu.memory_space<vmem>>, vector<32x128xf32>,
    %c0_50 = arith.constant 0 : index
    %c0_51 = arith.constant 0 : index
    %42 = tpu.strided_load %arg14[%c0_50, %c0_51] {strides = array<i32: 2, 1>} : memref<256x128xf32, #tpu.memory_space<vmem>>, vector<16x128xf32>
    %c1_52 = arith.constant 1 : index
    %c0_53 = arith.constant 0 : index
    %43 = tpu.strided_load %arg14[%c1_52, %c0_53] {strides = array<i32: 2, 1>} : memref<256x128xf32, #tpu.memory_space<vmem>>, vector<16x128xf32>
    %44 = arith.maximumf %42, %43 : vector<16x128xf32>
    %c0_54 = arith.constant 0 : index
    %c0_55 = arith.constant 0 : index
    %45 = vector.load %arg15[%c0_54, %c0_55] : memref<128x128xf32, #tpu.memory_space<vmem>>, vector<16x128xf32>
    tpu.vector_store %arg15[%c0_54, %c0_55], %44 {strides = array<i32>} : memref<128x128xf32, #tpu.memory_space<vmem>>, vector<16x128xf32>,
    %c32 = arith.constant 32 : index
    %c0_56 = arith.constant 0 : index
    %46 = vector.load %arg13[%c32, %c0_56] : memref<256x256xf32, #tpu.memory_space<vmem>>, vector<32x128xf32>
    %c32_57 = arith.constant 32 : index
    %c128_58 = arith.constant 128 : index
    %47 = vector.load %arg13[%c32_57, %c128_58] : memref<256x256xf32, #tpu.memory_space<vmem>>, vector<32x128xf32>
    %48 = arith.maximumf %46, %47 : vector<32x128xf32>
    %c0_59 = arith.constant 0 : index
    %c0_60 = arith.constant 0 : index
    %49 = vector.load %arg3[%c0_59, %c0_60] : memref<1x128xf32, #tpu.memory_space<vmem>>, vector<1x128xf32>
    %50 = vector.broadcast %49 : vector<1x128xf32> to vector<32x128xf32>
    %51 = arith.addf %48, %50 : vector<32x128xf32>
    %cst_61 = arith.constant 0.000000e+00 : f32
    %52 = vector.broadcast %cst_61 : f32 to vector<32x128xf32>
    %53 = arith.maximumf %51, %52 : vector<32x128xf32>
    %c32_62 = arith.constant 32 : index
    %c0_63 = arith.constant 0 : index
    %54 = vector.load %arg14[%c32_62, %c0_63] : memref<256x128xf32, #tpu.memory_space<vmem>>, vector<32x128xf32>
    tpu.vector_store %arg14[%c32_62, %c0_63], %53 {strides = array<i32>} : memref<256x128xf32, #tpu.memory_space<vmem>>, vector<32x128xf32>,
    %c32_64 = arith.constant 32 : index
    %c0_65 = arith.constant 0 : index
    %55 = tpu.strided_load %arg14[%c32_64, %c0_65] {strides = array<i32: 2, 1>} : memref<256x128xf32, #tpu.memory_space<vmem>>, vector<16x128xf32>
    %c33 = arith.constant 33 : index
    %c0_66 = arith.constant 0 : index
    %56 = tpu.strided_load %arg14[%c33, %c0_66] {strides = array<i32: 2, 1>} : memref<256x128xf32, #tpu.memory_space<vmem>>, vector<16x128xf32>
    %57 = arith.maximumf %55, %56 : vector<16x128xf32>
    %c16 = arith.constant 16 : index
    %c0_67 = arith.constant 0 : index
    %58 = vector.load %arg15[%c16, %c0_67] : memref<128x128xf32, #tpu.memory_space<vmem>>, vector<16x128xf32>
    tpu.vector_store %arg15[%c16, %c0_67], %57 {strides = array<i32>} : memref<128x128xf32, #tpu.memory_space<vmem>>, vector<16x128xf32>,
    %c64 = arith.constant 64 : index
    %c0_68 = arith.constant 0 : index
    %59 = vector.load %arg13[%c64, %c0_68] : memref<256x256xf32, #tpu.memory_space<vmem>>, vector<32x128xf32>
    %c64_69 = arith.constant 64 : index
    %c128_70 = arith.constant 128 : index
    %60 = vector.load %arg13[%c64_69, %c128_70] : memref<256x256xf32, #tpu.memory_space<vmem>>, vector<32x128xf32>
    %61 = arith.maximumf %59, %60 : vector<32x128xf32>
    %c0_71 = arith.constant 0 : index
    %c0_72 = arith.constant 0 : index
    %62 = vector.load %arg3[%c0_71, %c0_72] : memref<1x128xf32, #tpu.memory_space<vmem>>, vector<1x128xf32>
    %63 = vector.broadcast %62 : vector<1x128xf32> to vector<32x128xf32>
    %64 = arith.addf %61, %63 : vector<32x128xf32>
    %cst_73 = arith.constant 0.000000e+00 : f32
    %65 = vector.broadcast %cst_73 : f32 to vector<32x128xf32>
    %66 = arith.maximumf %64, %65 : vector<32x128xf32>
    %c64_74 = arith.constant 64 : index
    %c0_75 = arith.constant 0 : index
    %67 = vector.load %arg14[%c64_74, %c0_75] : memref<256x128xf32, #tpu.memory_space<vmem>>, vector<32x128xf32>
    tpu.vector_store %arg14[%c64_74, %c0_75], %66 {strides = array<i32>} : memref<256x128xf32, #tpu.memory_space<vmem>>, vector<32x128xf32>,
    %c64_76 = arith.constant 64 : index
    %c0_77 = arith.constant 0 : index
    %68 = tpu.strided_load %arg14[%c64_76, %c0_77] {strides = array<i32: 2, 1>} : memref<256x128xf32, #tpu.memory_space<vmem>>, vector<16x128xf32>
    %c65 = arith.constant 65 : index
    %c0_78 = arith.constant 0 : index
    %69 = tpu.strided_load %arg14[%c65, %c0_78] {strides = array<i32: 2, 1>} : memref<256x128xf32, #tpu.memory_space<vmem>>, vector<16x128xf32>
    %70 = arith.maximumf %68, %69 : vector<16x128xf32>
    %c32_79 = arith.constant 32 : index
    %c0_80 = arith.constant 0 : index
    %71 = vector.load %arg15[%c32_79, %c0_80] : memref<128x128xf32, #tpu.memory_space<vmem>>, vector<16x128xf32>
    tpu.vector_store %arg15[%c32_79, %c0_80], %70 {strides = array<i32>} : memref<128x128xf32, #tpu.memory_space<vmem>>, vector<16x128xf32>,
    %c96 = arith.constant 96 : index
    %c0_81 = arith.constant 0 : index
    %72 = vector.load %arg13[%c96, %c0_81] : memref<256x256xf32, #tpu.memory_space<vmem>>, vector<32x128xf32>
    %c96_82 = arith.constant 96 : index
    %c128_83 = arith.constant 128 : index
    %73 = vector.load %arg13[%c96_82, %c128_83] : memref<256x256xf32, #tpu.memory_space<vmem>>, vector<32x128xf32>
    %74 = arith.maximumf %72, %73 : vector<32x128xf32>
    %c0_84 = arith.constant 0 : index
    %c0_85 = arith.constant 0 : index
    %75 = vector.load %arg3[%c0_84, %c0_85] : memref<1x128xf32, #tpu.memory_space<vmem>>, vector<1x128xf32>
    %76 = vector.broadcast %75 : vector<1x128xf32> to vector<32x128xf32>
    %77 = arith.addf %74, %76 : vector<32x128xf32>
    %cst_86 = arith.constant 0.000000e+00 : f32
    %78 = vector.broadcast %cst_86 : f32 to vector<32x128xf32>
    %79 = arith.maximumf %77, %78 : vector<32x128xf32>
    %c96_87 = arith.constant 96 : index
    %c0_88 = arith.constant 0 : index
    %80 = vector.load %arg14[%c96_87, %c0_88] : memref<256x128xf32, #tpu.memory_space<vmem>>, vector<32x128xf32>
    tpu.vector_store %arg14[%c96_87, %c0_88], %79 {strides = array<i32>} : memref<256x128xf32, #tpu.memory_space<vmem>>, vector<32x128xf32>,
    %c96_89 = arith.constant 96 : index
    %c0_90 = arith.constant 0 : index
    %81 = tpu.strided_load %arg14[%c96_89, %c0_90] {strides = array<i32: 2, 1>} : memref<256x128xf32, #tpu.memory_space<vmem>>, vector<16x128xf32>
    %c97 = arith.constant 97 : index
    %c0_91 = arith.constant 0 : index
    %82 = tpu.strided_load %arg14[%c97, %c0_91] {strides = array<i32: 2, 1>} : memref<256x128xf32, #tpu.memory_space<vmem>>, vector<16x128xf32>
    %83 = arith.maximumf %81, %82 : vector<16x128xf32>
    %c48 = arith.constant 48 : index
    %c0_92 = arith.constant 0 : index
    %84 = vector.load %arg15[%c48, %c0_92] : memref<128x128xf32, #tpu.memory_space<vmem>>, vector<16x128xf32>
    tpu.vector_store %arg15[%c48, %c0_92], %83 {strides = array<i32>} : memref<128x128xf32, #tpu.memory_space<vmem>>, vector<16x128xf32>,
    %c128_93 = arith.constant 128 : index
    %c0_94 = arith.constant 0 : index
    %85 = vector.load %arg13[%c128_93, %c0_94] : memref<256x256xf32, #tpu.memory_space<vmem>>, vector<32x128xf32>
    %c128_95 = arith.constant 128 : index
    %c128_96 = arith.constant 128 : index
    %86 = vector.load %arg13[%c128_95, %c128_96] : memref<256x256xf32, #tpu.memory_space<vmem>>, vector<32x128xf32>
    %87 = arith.maximumf %85, %86 : vector<32x128xf32>
    %c0_97 = arith.constant 0 : index
    %c0_98 = arith.constant 0 : index
    %88 = vector.load %arg3[%c0_97, %c0_98] : memref<1x128xf32, #tpu.memory_space<vmem>>, vector<1x128xf32>
    %89 = vector.broadcast %88 : vector<1x128xf32> to vector<32x128xf32>
    %90 = arith.addf %87, %89 : vector<32x128xf32>
    %cst_99 = arith.constant 0.000000e+00 : f32
    %91 = vector.broadcast %cst_99 : f32 to vector<32x128xf32>
    %92 = arith.maximumf %90, %91 : vector<32x128xf32>
    %c128_100 = arith.constant 128 : index
    %c0_101 = arith.constant 0 : index
    %93 = vector.load %arg14[%c128_100, %c0_101] : memref<256x128xf32, #tpu.memory_space<vmem>>, vector<32x128xf32>
    tpu.vector_store %arg14[%c128_100, %c0_101], %92 {strides = array<i32>} : memref<256x128xf32, #tpu.memory_space<vmem>>, vector<32x128xf32>,
    %c128_102 = arith.constant 128 : index
    %c0_103 = arith.constant 0 : index
    %94 = tpu.strided_load %arg14[%c128_102, %c0_103] {strides = array<i32: 2, 1>} : memref<256x128xf32, #tpu.memory_space<vmem>>, vector<16x128xf32>
    %c129 = arith.constant 129 : index
    %c0_104 = arith.constant 0 : index
    %95 = tpu.strided_load %arg14[%c129, %c0_104] {strides = array<i32: 2, 1>} : memref<256x128xf32, #tpu.memory_space<vmem>>, vector<16x128xf32>
    %96 = arith.maximumf %94, %95 : vector<16x128xf32>
    %c64_105 = arith.constant 64 : index
    %c0_106 = arith.constant 0 : index
    %97 = vector.load %arg15[%c64_105, %c0_106] : memref<128x128xf32, #tpu.memory_space<vmem>>, vector<16x128xf32>
    tpu.vector_store %arg15[%c64_105, %c0_106], %96 {strides = array<i32>} : memref<128x128xf32, #tpu.memory_space<vmem>>, vector<16x128xf32>,
    %c160 = arith.constant 160 : index
    %c0_107 = arith.constant 0 : index
    %98 = vector.load %arg13[%c160, %c0_107] : memref<256x256xf32, #tpu.memory_space<vmem>>, vector<32x128xf32>
    %c160_108 = arith.constant 160 : index
    %c128_109 = arith.constant 128 : index
    %99 = vector.load %arg13[%c160_108, %c128_109] : memref<256x256xf32, #tpu.memory_space<vmem>>, vector<32x128xf32>
    %100 = arith.maximumf %98, %99 : vector<32x128xf32>
    %c0_110 = arith.constant 0 : index
    %c0_111 = arith.constant 0 : index
    %101 = vector.load %arg3[%c0_110, %c0_111] : memref<1x128xf32, #tpu.memory_space<vmem>>, vector<1x128xf32>
    %102 = vector.broadcast %101 : vector<1x128xf32> to vector<32x128xf32>
    %103 = arith.addf %100, %102 : vector<32x128xf32>
    %cst_112 = arith.constant 0.000000e+00 : f32
    %104 = vector.broadcast %cst_112 : f32 to vector<32x128xf32>
    %105 = arith.maximumf %103, %104 : vector<32x128xf32>
    %c160_113 = arith.constant 160 : index
    %c0_114 = arith.constant 0 : index
    %106 = vector.load %arg14[%c160_113, %c0_114] : memref<256x128xf32, #tpu.memory_space<vmem>>, vector<32x128xf32>
    tpu.vector_store %arg14[%c160_113, %c0_114], %105 {strides = array<i32>} : memref<256x128xf32, #tpu.memory_space<vmem>>, vector<32x128xf32>,
    %c160_115 = arith.constant 160 : index
    %c0_116 = arith.constant 0 : index
    %107 = tpu.strided_load %arg14[%c160_115, %c0_116] {strides = array<i32: 2, 1>} : memref<256x128xf32, #tpu.memory_space<vmem>>, vector<16x128xf32>
    %c161 = arith.constant 161 : index
    %c0_117 = arith.constant 0 : index
    %108 = tpu.strided_load %arg14[%c161, %c0_117] {strides = array<i32: 2, 1>} : memref<256x128xf32, #tpu.memory_space<vmem>>, vector<16x128xf32>
    %109 = arith.maximumf %107, %108 : vector<16x128xf32>
    %c80 = arith.constant 80 : index
    %c0_118 = arith.constant 0 : index
    %110 = vector.load %arg15[%c80, %c0_118] : memref<128x128xf32, #tpu.memory_space<vmem>>, vector<16x128xf32>
    tpu.vector_store %arg15[%c80, %c0_118], %109 {strides = array<i32>} : memref<128x128xf32, #tpu.memory_space<vmem>>, vector<16x128xf32>,
    %c192 = arith.constant 192 : index
    %c0_119 = arith.constant 0 : index
    %111 = vector.load %arg13[%c192, %c0_119] : memref<256x256xf32, #tpu.memory_space<vmem>>, vector<32x128xf32>
    %c192_120 = arith.constant 192 : index
    %c128_121 = arith.constant 128 : index
    %112 = vector.load %arg13[%c192_120, %c128_121] : memref<256x256xf32, #tpu.memory_space<vmem>>, vector<32x128xf32>
    %113 = arith.maximumf %111, %112 : vector<32x128xf32>
    %c0_122 = arith.constant 0 : index
    %c0_123 = arith.constant 0 : index
    %114 = vector.load %arg3[%c0_122, %c0_123] : memref<1x128xf32, #tpu.memory_space<vmem>>, vector<1x128xf32>
    %115 = vector.broadcast %114 : vector<1x128xf32> to vector<32x128xf32>
    %116 = arith.addf %113, %115 : vector<32x128xf32>
    %cst_124 = arith.constant 0.000000e+00 : f32
    %117 = vector.broadcast %cst_124 : f32 to vector<32x128xf32>
    %118 = arith.maximumf %116, %117 : vector<32x128xf32>
    %c192_125 = arith.constant 192 : index
    %c0_126 = arith.constant 0 : index
    %119 = vector.load %arg14[%c192_125, %c0_126] : memref<256x128xf32, #tpu.memory_space<vmem>>, vector<32x128xf32>
    tpu.vector_store %arg14[%c192_125, %c0_126], %118 {strides = array<i32>} : memref<256x128xf32, #tpu.memory_space<vmem>>, vector<32x128xf32>,
    %c192_127 = arith.constant 192 : index
    %c0_128 = arith.constant 0 : index
    %120 = tpu.strided_load %arg14[%c192_127, %c0_128] {strides = array<i32: 2, 1>} : memref<256x128xf32, #tpu.memory_space<vmem>>, vector<16x128xf32>
    %c193 = arith.constant 193 : index
    %c0_129 = arith.constant 0 : index
    %121 = tpu.strided_load %arg14[%c193, %c0_129] {strides = array<i32: 2, 1>} : memref<256x128xf32, #tpu.memory_space<vmem>>, vector<16x128xf32>
    %122 = arith.maximumf %120, %121 : vector<16x128xf32>
    %c96_130 = arith.constant 96 : index
    %c0_131 = arith.constant 0 : index
    %123 = vector.load %arg15[%c96_130, %c0_131] : memref<128x128xf32, #tpu.memory_space<vmem>>, vector<16x128xf32>
    tpu.vector_store %arg15[%c96_130, %c0_131], %122 {strides = array<i32>} : memref<128x128xf32, #tpu.memory_space<vmem>>, vector<16x128xf32>,
    %c224 = arith.constant 224 : index
    %c0_132 = arith.constant 0 : index
    %124 = vector.load %arg13[%c224, %c0_132] : memref<256x256xf32, #tpu.memory_space<vmem>>, vector<32x128xf32>
    %c224_133 = arith.constant 224 : index
    %c128_134 = arith.constant 128 : index
    %125 = vector.load %arg13[%c224_133, %c128_134] : memref<256x256xf32, #tpu.memory_space<vmem>>, vector<32x128xf32>
    %126 = arith.maximumf %124, %125 : vector<32x128xf32>
    %c0_135 = arith.constant 0 : index
    %c0_136 = arith.constant 0 : index
    %127 = vector.load %arg3[%c0_135, %c0_136] : memref<1x128xf32, #tpu.memory_space<vmem>>, vector<1x128xf32>
    %128 = vector.broadcast %127 : vector<1x128xf32> to vector<32x128xf32>
    %129 = arith.addf %126, %128 : vector<32x128xf32>
    %cst_137 = arith.constant 0.000000e+00 : f32
    %130 = vector.broadcast %cst_137 : f32 to vector<32x128xf32>
    %131 = arith.maximumf %129, %130 : vector<32x128xf32>
    %c224_138 = arith.constant 224 : index
    %c0_139 = arith.constant 0 : index
    %132 = vector.load %arg14[%c224_138, %c0_139] : memref<256x128xf32, #tpu.memory_space<vmem>>, vector<32x128xf32>
    tpu.vector_store %arg14[%c224_138, %c0_139], %131 {strides = array<i32>} : memref<256x128xf32, #tpu.memory_space<vmem>>, vector<32x128xf32>,
    %c224_140 = arith.constant 224 : index
    %c0_141 = arith.constant 0 : index
    %133 = tpu.strided_load %arg14[%c224_140, %c0_141] {strides = array<i32: 2, 1>} : memref<256x128xf32, #tpu.memory_space<vmem>>, vector<16x128xf32>
    %c225 = arith.constant 225 : index
    %c0_142 = arith.constant 0 : index
    %134 = tpu.strided_load %arg14[%c225, %c0_142] {strides = array<i32: 2, 1>} : memref<256x128xf32, #tpu.memory_space<vmem>>, vector<16x128xf32>
    %135 = arith.maximumf %133, %134 : vector<16x128xf32>
    %c112 = arith.constant 112 : index
    %c0_143 = arith.constant 0 : index
    %136 = vector.load %arg15[%c112, %c0_143] : memref<128x128xf32, #tpu.memory_space<vmem>>, vector<16x128xf32>
    tpu.vector_store %arg15[%c112, %c0_143], %135 {strides = array<i32>} : memref<128x128xf32, #tpu.memory_space<vmem>>, vector<16x128xf32>,
    %c0_144 = arith.constant 0 : index
    %c0_145 = arith.constant 0 : index
    %137 = vector.load %arg15[%c0_144, %c0_145] : memref<128x128xf32, #tpu.memory_space<vmem>>, vector<128x128xf32>
    %c0_146 = arith.constant 0 : index
    %c0_147 = arith.constant 0 : index
    %c0_148 = arith.constant 0 : index
    %138 = vector.load %arg4[%c0_146, %c0_147, %c0_148] : memref<5x128x256xf32, #tpu.memory_space<vmem>>, vector<1x128x256xf32>
    %139 = vector.shape_cast %138 : vector<1x128x256xf32> to vector<128x256xf32>
    %cst_149 = arith.constant dense<0.000000e+00> : vector<128x256xf32>
    %140 = tpu.matmul %137, %139, %cst_149 {dimension_numbers = #tpu.dot_dimension_numbers<[1], [0], [0], [1], [0, 0, 1, 1], [], []>} : vector<128x128xf32>, vector<128x256xf32>, vector<128x256xf32> -> vector<128x256xf32>
    %c0_150 = arith.constant 0 : index
    %c0_151 = arith.constant 0 : index
    %141 = vector.load %arg13[%c0_150, %c0_151] : memref<256x256xf32, #tpu.memory_space<vmem>>, vector<128x256xf32>
    tpu.vector_store %arg13[%c0_150, %c0_151], %140 {strides = array<i32>} : memref<256x256xf32, #tpu.memory_space<vmem>>, vector<128x256xf32>,
    %c0_152 = arith.constant 0 : index
    %c0_153 = arith.constant 0 : index
    %142 = vector.load %arg13[%c0_152, %c0_153] : memref<256x256xf32, #tpu.memory_space<vmem>>, vector<127x256xf32>
    %c1_154 = arith.constant 1 : index
    %c0_155 = arith.constant 0 : index
    %143 = vector.load %arg15[%c1_154, %c0_155] : memref<128x128xf32, #tpu.memory_space<vmem>>, vector<127x128xf32>
    %c1_156 = arith.constant 1 : index
    %c0_157 = arith.constant 0 : index
    %c0_158 = arith.constant 0 : index
    %144 = vector.load %arg4[%c1_156, %c0_157, %c0_158] : memref<5x128x256xf32, #tpu.memory_space<vmem>>, vector<1x128x256xf32>
    %145 = vector.shape_cast %144 : vector<1x128x256xf32> to vector<128x256xf32>
    %cst_159 = arith.constant dense<0.000000e+00> : vector<127x256xf32>
    %146 = tpu.matmul %143, %145, %cst_159 {dimension_numbers = #tpu.dot_dimension_numbers<[1], [0], [0], [1], [0, 0, 1, 1], [], []>} : vector<127x128xf32>, vector<128x256xf32>, vector<127x256xf32> -> vector<127x256xf32>
    %147 = arith.addf %142, %146 : vector<127x256xf32>
    %c0_160 = arith.constant 0 : index
    %c0_161 = arith.constant 0 : index
    %148 = vector.load %arg13[%c0_160, %c0_161] : memref<256x256xf32, #tpu.memory_space<vmem>>, vector<127x256xf32>
    tpu.vector_store %arg13[%c0_160, %c0_161], %147 {strides = array<i32>} : memref<256x256xf32, #tpu.memory_space<vmem>>, vector<127x256xf32>,
    %c0_162 = arith.constant 0 : index
    %c0_163 = arith.constant 0 : index
    %149 = vector.load %arg13[%c0_162, %c0_163] : memref<256x256xf32, #tpu.memory_space<vmem>>, vector<126x256xf32>
    %c2_164 = arith.constant 2 : index
    %c0_165 = arith.constant 0 : index
    %150 = vector.load %arg15[%c2_164, %c0_165] : memref<128x128xf32, #tpu.memory_space<vmem>>, vector<126x128xf32>
    %c2_166 = arith.constant 2 : index
    %c0_167 = arith.constant 0 : index
    %c0_168 = arith.constant 0 : index
    %151 = vector.load %arg4[%c2_166, %c0_167, %c0_168] : memref<5x128x256xf32, #tpu.memory_space<vmem>>, vector<1x128x256xf32>
    %152 = vector.shape_cast %151 : vector<1x128x256xf32> to vector<128x256xf32>
    %cst_169 = arith.constant dense<0.000000e+00> : vector<126x256xf32>
    %153 = tpu.matmul %150, %152, %cst_169 {dimension_numbers = #tpu.dot_dimension_numbers<[1], [0], [0], [1], [0, 0, 1, 1], [], []>} : vector<126x128xf32>, vector<128x256xf32>, vector<126x256xf32> -> vector<126x256xf32>
    %154 = arith.addf %149, %153 : vector<126x256xf32>
    %c0_170 = arith.constant 0 : index
    %c0_171 = arith.constant 0 : index
    %155 = vector.load %arg13[%c0_170, %c0_171] : memref<256x256xf32, #tpu.memory_space<vmem>>, vector<126x256xf32>
    tpu.vector_store %arg13[%c0_170, %c0_171], %154 {strides = array<i32>} : memref<256x256xf32, #tpu.memory_space<vmem>>, vector<126x256xf32>,
    %c0_172 = arith.constant 0 : index
    %c0_173 = arith.constant 0 : index
    %156 = vector.load %arg13[%c0_172, %c0_173] : memref<256x256xf32, #tpu.memory_space<vmem>>, vector<125x256xf32>
    %c3_174 = arith.constant 3 : index
    %c0_175 = arith.constant 0 : index
    %157 = vector.load %arg15[%c3_174, %c0_175] : memref<128x128xf32, #tpu.memory_space<vmem>>, vector<125x128xf32>
    %c3_176 = arith.constant 3 : index
    %c0_177 = arith.constant 0 : index
    %c0_178 = arith.constant 0 : index
    %158 = vector.load %arg4[%c3_176, %c0_177, %c0_178] : memref<5x128x256xf32, #tpu.memory_space<vmem>>, vector<1x128x256xf32>
    %159 = vector.shape_cast %158 : vector<1x128x256xf32> to vector<128x256xf32>
    %cst_179 = arith.constant dense<0.000000e+00> : vector<125x256xf32>
    %160 = tpu.matmul %157, %159, %cst_179 {dimension_numbers = #tpu.dot_dimension_numbers<[1], [0], [0], [1], [0, 0, 1, 1], [], []>} : vector<125x128xf32>, vector<128x256xf32>, vector<125x256xf32> -> vector<125x256xf32>
    %161 = arith.addf %156, %160 : vector<125x256xf32>
    %c0_180 = arith.constant 0 : index
    %c0_181 = arith.constant 0 : index
    %162 = vector.load %arg13[%c0_180, %c0_181] : memref<256x256xf32, #tpu.memory_space<vmem>>, vector<125x256xf32>
    tpu.vector_store %arg13[%c0_180, %c0_181], %161 {strides = array<i32>} : memref<256x256xf32, #tpu.memory_space<vmem>>, vector<125x256xf32>,
    %c0_182 = arith.constant 0 : index
    %c0_183 = arith.constant 0 : index
    %163 = vector.load %arg13[%c0_182, %c0_183] : memref<256x256xf32, #tpu.memory_space<vmem>>, vector<124x256xf32>
    %c4_184 = arith.constant 4 : index
    %c0_185 = arith.constant 0 : index
    %164 = vector.load %arg15[%c4_184, %c0_185] : memref<128x128xf32, #tpu.memory_space<vmem>>, vector<124x128xf32>
    %c4_186 = arith.constant 4 : index
    %c0_187 = arith.constant 0 : index
    %c0_188 = arith.constant 0 : index
    %165 = vector.load %arg4[%c4_186, %c0_187, %c0_188] : memref<5x128x256xf32, #tpu.memory_space<vmem>>, vector<1x128x256xf32>
    %166 = vector.shape_cast %165 : vector<1x128x256xf32> to vector<128x256xf32>
    %cst_189 = arith.constant dense<0.000000e+00> : vector<124x256xf32>
    %167 = tpu.matmul %164, %166, %cst_189 {dimension_numbers = #tpu.dot_dimension_numbers<[1], [0], [0], [1], [0, 0, 1, 1], [], []>} : vector<124x128xf32>, vector<128x256xf32>, vector<124x256xf32> -> vector<124x256xf32>
    %168 = arith.addf %163, %167 : vector<124x256xf32>
    %c0_190 = arith.constant 0 : index
    %c0_191 = arith.constant 0 : index
    %169 = vector.load %arg13[%c0_190, %c0_191] : memref<256x256xf32, #tpu.memory_space<vmem>>, vector<124x256xf32>
    tpu.vector_store %arg13[%c0_190, %c0_191], %168 {strides = array<i32>} : memref<256x256xf32, #tpu.memory_space<vmem>>, vector<124x256xf32>,
    %c0_192 = arith.constant 0 : index
    %c0_193 = arith.constant 0 : index
    %170 = vector.load %arg13[%c0_192, %c0_193] : memref<256x256xf32, #tpu.memory_space<vmem>>, vector<16x128xf32>
    %c0_194 = arith.constant 0 : index
    %c128_195 = arith.constant 128 : index
    %171 = vector.load %arg13[%c0_194, %c128_195] : memref<256x256xf32, #tpu.memory_space<vmem>>, vector<16x128xf32>
    %172 = arith.maximumf %170, %171 : vector<16x128xf32>
    %c0_196 = arith.constant 0 : index
    %c0_197 = arith.constant 0 : index
    %173 = vector.load %arg5[%c0_196, %c0_197] : memref<1x128xf32, #tpu.memory_space<vmem>>, vector<1x128xf32>
    %174 = vector.broadcast %173 : vector<1x128xf32> to vector<16x128xf32>
    %175 = arith.addf %172, %174 : vector<16x128xf32>
    %cst_198 = arith.constant 0.000000e+00 : f32
    %176 = vector.broadcast %cst_198 : f32 to vector<16x128xf32>
    %177 = arith.maximumf %175, %176 : vector<16x128xf32>
    %c0_199 = arith.constant 0 : index
    %c0_200 = arith.constant 0 : index
    %178 = vector.load %arg14[%c0_199, %c0_200] : memref<256x128xf32, #tpu.memory_space<vmem>>, vector<16x128xf32>
    tpu.vector_store %arg14[%c0_199, %c0_200], %177 {strides = array<i32>} : memref<256x128xf32, #tpu.memory_space<vmem>>, vector<16x128xf32>,
    %c0_201 = arith.constant 0 : index
    %c0_202 = arith.constant 0 : index
    %179 = tpu.strided_load %arg14[%c0_201, %c0_202] {strides = array<i32: 2, 1>} : memref<256x128xf32, #tpu.memory_space<vmem>>, vector<8x128xf32>
    %c1_203 = arith.constant 1 : index
    %c0_204 = arith.constant 0 : index
    %180 = tpu.strided_load %arg14[%c1_203, %c0_204] {strides = array<i32: 2, 1>} : memref<256x128xf32, #tpu.memory_space<vmem>>, vector<8x128xf32>
    %181 = arith.maximumf %179, %180 : vector<8x128xf32>
    %c0_205 = arith.constant 0 : index
    %c0_206 = arith.constant 0 : index
    %182 = vector.load %arg16[%c0_205, %c0_206] : memref<64x128xf32, #tpu.memory_space<vmem>>, vector<8x128xf32>
    tpu.vector_store %arg16[%c0_205, %c0_206], %181 {strides = array<i32>} : memref<64x128xf32, #tpu.memory_space<vmem>>, vector<8x128xf32>,
    %c16_207 = arith.constant 16 : index
    %c0_208 = arith.constant 0 : index
    %183 = vector.load %arg13[%c16_207, %c0_208] : memref<256x256xf32, #tpu.memory_space<vmem>>, vector<16x128xf32>
    %c16_209 = arith.constant 16 : index
    %c128_210 = arith.constant 128 : index
    %184 = vector.load %arg13[%c16_209, %c128_210] : memref<256x256xf32, #tpu.memory_space<vmem>>, vector<16x128xf32>
    %185 = arith.maximumf %183, %184 : vector<16x128xf32>
    %c0_211 = arith.constant 0 : index
    %c0_212 = arith.constant 0 : index
    %186 = vector.load %arg5[%c0_211, %c0_212] : memref<1x128xf32, #tpu.memory_space<vmem>>, vector<1x128xf32>
    %187 = vector.broadcast %186 : vector<1x128xf32> to vector<16x128xf32>
    %188 = arith.addf %185, %187 : vector<16x128xf32>
    %cst_213 = arith.constant 0.000000e+00 : f32
    %189 = vector.broadcast %cst_213 : f32 to vector<16x128xf32>
    %190 = arith.maximumf %188, %189 : vector<16x128xf32>
    %c16_214 = arith.constant 16 : index
    %c0_215 = arith.constant 0 : index
    %191 = vector.load %arg14[%c16_214, %c0_215] : memref<256x128xf32, #tpu.memory_space<vmem>>, vector<16x128xf32>
    tpu.vector_store %arg14[%c16_214, %c0_215], %190 {strides = array<i32>} : memref<256x128xf32, #tpu.memory_space<vmem>>, vector<16x128xf32>,
    %c16_216 = arith.constant 16 : index
    %c0_217 = arith.constant 0 : index
    %192 = tpu.strided_load %arg14[%c16_216, %c0_217] {strides = array<i32: 2, 1>} : memref<256x128xf32, #tpu.memory_space<vmem>>, vector<8x128xf32>
    %c17 = arith.constant 17 : index
    %c0_218 = arith.constant 0 : index
    %193 = tpu.strided_load %arg14[%c17, %c0_218] {strides = array<i32: 2, 1>} : memref<256x128xf32, #tpu.memory_space<vmem>>, vector<8x128xf32>
    %194 = arith.maximumf %192, %193 : vector<8x128xf32>
    %c8 = arith.constant 8 : index
    %c0_219 = arith.constant 0 : index
    %195 = vector.load %arg16[%c8, %c0_219] : memref<64x128xf32, #tpu.memory_space<vmem>>, vector<8x128xf32>
    tpu.vector_store %arg16[%c8, %c0_219], %194 {strides = array<i32>} : memref<64x128xf32, #tpu.memory_space<vmem>>, vector<8x128xf32>,
    %c32_220 = arith.constant 32 : index
    %c0_221 = arith.constant 0 : index
    %196 = vector.load %arg13[%c32_220, %c0_221] : memref<256x256xf32, #tpu.memory_space<vmem>>, vector<16x128xf32>
    %c32_222 = arith.constant 32 : index
    %c128_223 = arith.constant 128 : index
    %197 = vector.load %arg13[%c32_222, %c128_223] : memref<256x256xf32, #tpu.memory_space<vmem>>, vector<16x128xf32>
    %198 = arith.maximumf %196, %197 : vector<16x128xf32>
    %c0_224 = arith.constant 0 : index
    %c0_225 = arith.constant 0 : index
    %199 = vector.load %arg5[%c0_224, %c0_225] : memref<1x128xf32, #tpu.memory_space<vmem>>, vector<1x128xf32>
    %200 = vector.broadcast %199 : vector<1x128xf32> to vector<16x128xf32>
    %201 = arith.addf %198, %200 : vector<16x128xf32>
    %cst_226 = arith.constant 0.000000e+00 : f32
    %202 = vector.broadcast %cst_226 : f32 to vector<16x128xf32>
    %203 = arith.maximumf %201, %202 : vector<16x128xf32>
    %c32_227 = arith.constant 32 : index
    %c0_228 = arith.constant 0 : index
    %204 = vector.load %arg14[%c32_227, %c0_228] : memref<256x128xf32, #tpu.memory_space<vmem>>, vector<16x128xf32>
    tpu.vector_store %arg14[%c32_227, %c0_228], %203 {strides = array<i32>} : memref<256x128xf32, #tpu.memory_space<vmem>>, vector<16x128xf32>,
    %c32_229 = arith.constant 32 : index
    %c0_230 = arith.constant 0 : index
    %205 = tpu.strided_load %arg14[%c32_229, %c0_230] {strides = array<i32: 2, 1>} : memref<256x128xf32, #tpu.memory_space<vmem>>, vector<8x128xf32>
    %c33_231 = arith.constant 33 : index
    %c0_232 = arith.constant 0 : index
    %206 = tpu.strided_load %arg14[%c33_231, %c0_232] {strides = array<i32: 2, 1>} : memref<256x128xf32, #tpu.memory_space<vmem>>, vector<8x128xf32>
    %207 = arith.maximumf %205, %206 : vector<8x128xf32>
    %c16_233 = arith.constant 16 : index
    %c0_234 = arith.constant 0 : index
    %208 = vector.load %arg16[%c16_233, %c0_234] : memref<64x128xf32, #tpu.memory_space<vmem>>, vector<8x128xf32>
    tpu.vector_store %arg16[%c16_233, %c0_234], %207 {strides = array<i32>} : memref<64x128xf32, #tpu.memory_space<vmem>>, vector<8x128xf32>,
    %c48_235 = arith.constant 48 : index
    %c0_236 = arith.constant 0 : index
    %209 = vector.load %arg13[%c48_235, %c0_236] : memref<256x256xf32, #tpu.memory_space<vmem>>, vector<16x128xf32>
    %c48_237 = arith.constant 48 : index
    %c128_238 = arith.constant 128 : index
    %210 = vector.load %arg13[%c48_237, %c128_238] : memref<256x256xf32, #tpu.memory_space<vmem>>, vector<16x128xf32>
    %211 = arith.maximumf %209, %210 : vector<16x128xf32>
    %c0_239 = arith.constant 0 : index
    %c0_240 = arith.constant 0 : index
    %212 = vector.load %arg5[%c0_239, %c0_240] : memref<1x128xf32, #tpu.memory_space<vmem>>, vector<1x128xf32>
    %213 = vector.broadcast %212 : vector<1x128xf32> to vector<16x128xf32>
    %214 = arith.addf %211, %213 : vector<16x128xf32>
    %cst_241 = arith.constant 0.000000e+00 : f32
    %215 = vector.broadcast %cst_241 : f32 to vector<16x128xf32>
    %216 = arith.maximumf %214, %215 : vector<16x128xf32>
    %c48_242 = arith.constant 48 : index
    %c0_243 = arith.constant 0 : index
    %217 = vector.load %arg14[%c48_242, %c0_243] : memref<256x128xf32, #tpu.memory_space<vmem>>, vector<16x128xf32>
    tpu.vector_store %arg14[%c48_242, %c0_243], %216 {strides = array<i32>} : memref<256x128xf32, #tpu.memory_space<vmem>>, vector<16x128xf32>,
    %c48_244 = arith.constant 48 : index
    %c0_245 = arith.constant 0 : index
    %218 = tpu.strided_load %arg14[%c48_244, %c0_245] {strides = array<i32: 2, 1>} : memref<256x128xf32, #tpu.memory_space<vmem>>, vector<8x128xf32>
    %c49 = arith.constant 49 : index
    %c0_246 = arith.constant 0 : index
    %219 = tpu.strided_load %arg14[%c49, %c0_246] {strides = array<i32: 2, 1>} : memref<256x128xf32, #tpu.memory_space<vmem>>, vector<8x128xf32>
    %220 = arith.maximumf %218, %219 : vector<8x128xf32>
    %c24 = arith.constant 24 : index
    %c0_247 = arith.constant 0 : index
    %221 = vector.load %arg16[%c24, %c0_247] : memref<64x128xf32, #tpu.memory_space<vmem>>, vector<8x128xf32>
    tpu.vector_store %arg16[%c24, %c0_247], %220 {strides = array<i32>} : memref<64x128xf32, #tpu.memory_space<vmem>>, vector<8x128xf32>,
    %c64_248 = arith.constant 64 : index
    %c0_249 = arith.constant 0 : index
    %222 = vector.load %arg13[%c64_248, %c0_249] : memref<256x256xf32, #tpu.memory_space<vmem>>, vector<16x128xf32>
    %c64_250 = arith.constant 64 : index
    %c128_251 = arith.constant 128 : index
    %223 = vector.load %arg13[%c64_250, %c128_251] : memref<256x256xf32, #tpu.memory_space<vmem>>, vector<16x128xf32>
    %224 = arith.maximumf %222, %223 : vector<16x128xf32>
    %c0_252 = arith.constant 0 : index
    %c0_253 = arith.constant 0 : index
    %225 = vector.load %arg5[%c0_252, %c0_253] : memref<1x128xf32, #tpu.memory_space<vmem>>, vector<1x128xf32>
    %226 = vector.broadcast %225 : vector<1x128xf32> to vector<16x128xf32>
    %227 = arith.addf %224, %226 : vector<16x128xf32>
    %cst_254 = arith.constant 0.000000e+00 : f32
    %228 = vector.broadcast %cst_254 : f32 to vector<16x128xf32>
    %229 = arith.maximumf %227, %228 : vector<16x128xf32>
    %c64_255 = arith.constant 64 : index
    %c0_256 = arith.constant 0 : index
    %230 = vector.load %arg14[%c64_255, %c0_256] : memref<256x128xf32, #tpu.memory_space<vmem>>, vector<16x128xf32>
    tpu.vector_store %arg14[%c64_255, %c0_256], %229 {strides = array<i32>} : memref<256x128xf32, #tpu.memory_space<vmem>>, vector<16x128xf32>,
    %c64_257 = arith.constant 64 : index
    %c0_258 = arith.constant 0 : index
    %231 = tpu.strided_load %arg14[%c64_257, %c0_258] {strides = array<i32: 2, 1>} : memref<256x128xf32, #tpu.memory_space<vmem>>, vector<8x128xf32>
    %c65_259 = arith.constant 65 : index
    %c0_260 = arith.constant 0 : index
    %232 = tpu.strided_load %arg14[%c65_259, %c0_260] {strides = array<i32: 2, 1>} : memref<256x128xf32, #tpu.memory_space<vmem>>, vector<8x128xf32>
    %233 = arith.maximumf %231, %232 : vector<8x128xf32>
    %c32_261 = arith.constant 32 : index
    %c0_262 = arith.constant 0 : index
    %234 = vector.load %arg16[%c32_261, %c0_262] : memref<64x128xf32, #tpu.memory_space<vmem>>, vector<8x128xf32>
    tpu.vector_store %arg16[%c32_261, %c0_262], %233 {strides = array<i32>} : memref<64x128xf32, #tpu.memory_space<vmem>>, vector<8x128xf32>,
    %c80_263 = arith.constant 80 : index
    %c0_264 = arith.constant 0 : index
    %235 = vector.load %arg13[%c80_263, %c0_264] : memref<256x256xf32, #tpu.memory_space<vmem>>, vector<16x128xf32>
    %c80_265 = arith.constant 80 : index
    %c128_266 = arith.constant 128 : index
    %236 = vector.load %arg13[%c80_265, %c128_266] : memref<256x256xf32, #tpu.memory_space<vmem>>, vector<16x128xf32>
    %237 = arith.maximumf %235, %236 : vector<16x128xf32>
    %c0_267 = arith.constant 0 : index
    %c0_268 = arith.constant 0 : index
    %238 = vector.load %arg5[%c0_267, %c0_268] : memref<1x128xf32, #tpu.memory_space<vmem>>, vector<1x128xf32>
    %239 = vector.broadcast %238 : vector<1x128xf32> to vector<16x128xf32>
    %240 = arith.addf %237, %239 : vector<16x128xf32>
    %cst_269 = arith.constant 0.000000e+00 : f32
    %241 = vector.broadcast %cst_269 : f32 to vector<16x128xf32>
    %242 = arith.maximumf %240, %241 : vector<16x128xf32>
    %c80_270 = arith.constant 80 : index
    %c0_271 = arith.constant 0 : index
    %243 = vector.load %arg14[%c80_270, %c0_271] : memref<256x128xf32, #tpu.memory_space<vmem>>, vector<16x128xf32>
    tpu.vector_store %arg14[%c80_270, %c0_271], %242 {strides = array<i32>} : memref<256x128xf32, #tpu.memory_space<vmem>>, vector<16x128xf32>,
    %c80_272 = arith.constant 80 : index
    %c0_273 = arith.constant 0 : index
    %244 = tpu.strided_load %arg14[%c80_272, %c0_273] {strides = array<i32: 2, 1>} : memref<256x128xf32, #tpu.memory_space<vmem>>, vector<8x128xf32>
    %c81 = arith.constant 81 : index
    %c0_274 = arith.constant 0 : index
    %245 = tpu.strided_load %arg14[%c81, %c0_274] {strides = array<i32: 2, 1>} : memref<256x128xf32, #tpu.memory_space<vmem>>, vector<8x128xf32>
    %246 = arith.maximumf %244, %245 : vector<8x128xf32>
    %c40 = arith.constant 40 : index
    %c0_275 = arith.constant 0 : index
    %247 = vector.load %arg16[%c40, %c0_275] : memref<64x128xf32, #tpu.memory_space<vmem>>, vector<8x128xf32>
    tpu.vector_store %arg16[%c40, %c0_275], %246 {strides = array<i32>} : memref<64x128xf32, #tpu.memory_space<vmem>>, vector<8x128xf32>,
    %c96_276 = arith.constant 96 : index
    %c0_277 = arith.constant 0 : index
    %248 = vector.load %arg13[%c96_276, %c0_277] : memref<256x256xf32, #tpu.memory_space<vmem>>, vector<16x128xf32>
    %c96_278 = arith.constant 96 : index
    %c128_279 = arith.constant 128 : index
    %249 = vector.load %arg13[%c96_278, %c128_279] : memref<256x256xf32, #tpu.memory_space<vmem>>, vector<16x128xf32>
    %250 = arith.maximumf %248, %249 : vector<16x128xf32>
    %c0_280 = arith.constant 0 : index
    %c0_281 = arith.constant 0 : index
    %251 = vector.load %arg5[%c0_280, %c0_281] : memref<1x128xf32, #tpu.memory_space<vmem>>, vector<1x128xf32>
    %252 = vector.broadcast %251 : vector<1x128xf32> to vector<16x128xf32>
    %253 = arith.addf %250, %252 : vector<16x128xf32>
    %cst_282 = arith.constant 0.000000e+00 : f32
    %254 = vector.broadcast %cst_282 : f32 to vector<16x128xf32>
    %255 = arith.maximumf %253, %254 : vector<16x128xf32>
    %c96_283 = arith.constant 96 : index
    %c0_284 = arith.constant 0 : index
    %256 = vector.load %arg14[%c96_283, %c0_284] : memref<256x128xf32, #tpu.memory_space<vmem>>, vector<16x128xf32>
    tpu.vector_store %arg14[%c96_283, %c0_284], %255 {strides = array<i32>} : memref<256x128xf32, #tpu.memory_space<vmem>>, vector<16x128xf32>,
    %c96_285 = arith.constant 96 : index
    %c0_286 = arith.constant 0 : index
    %257 = tpu.strided_load %arg14[%c96_285, %c0_286] {strides = array<i32: 2, 1>} : memref<256x128xf32, #tpu.memory_space<vmem>>, vector<8x128xf32>
    %c97_287 = arith.constant 97 : index
    %c0_288 = arith.constant 0 : index
    %258 = tpu.strided_load %arg14[%c97_287, %c0_288] {strides = array<i32: 2, 1>} : memref<256x128xf32, #tpu.memory_space<vmem>>, vector<8x128xf32>
    %259 = arith.maximumf %257, %258 : vector<8x128xf32>
    %c48_289 = arith.constant 48 : index
    %c0_290 = arith.constant 0 : index
    %260 = vector.load %arg16[%c48_289, %c0_290] : memref<64x128xf32, #tpu.memory_space<vmem>>, vector<8x128xf32>
    tpu.vector_store %arg16[%c48_289, %c0_290], %259 {strides = array<i32>} : memref<64x128xf32, #tpu.memory_space<vmem>>, vector<8x128xf32>,
    %c112_291 = arith.constant 112 : index
    %c0_292 = arith.constant 0 : index
    %261 = vector.load %arg13[%c112_291, %c0_292] : memref<256x256xf32, #tpu.memory_space<vmem>>, vector<16x128xf32>
    %c112_293 = arith.constant 112 : index
    %c128_294 = arith.constant 128 : index
    %262 = vector.load %arg13[%c112_293, %c128_294] : memref<256x256xf32, #tpu.memory_space<vmem>>, vector<16x128xf32>
    %263 = arith.maximumf %261, %262 : vector<16x128xf32>
    %c0_295 = arith.constant 0 : index
    %c0_296 = arith.constant 0 : index
    %264 = vector.load %arg5[%c0_295, %c0_296] : memref<1x128xf32, #tpu.memory_space<vmem>>, vector<1x128xf32>
    %265 = vector.broadcast %264 : vector<1x128xf32> to vector<16x128xf32>
    %266 = arith.addf %263, %265 : vector<16x128xf32>
    %cst_297 = arith.constant 0.000000e+00 : f32
    %267 = vector.broadcast %cst_297 : f32 to vector<16x128xf32>
    %268 = arith.maximumf %266, %267 : vector<16x128xf32>
    %c112_298 = arith.constant 112 : index
    %c0_299 = arith.constant 0 : index
    %269 = vector.load %arg14[%c112_298, %c0_299] : memref<256x128xf32, #tpu.memory_space<vmem>>, vector<16x128xf32>
    tpu.vector_store %arg14[%c112_298, %c0_299], %268 {strides = array<i32>} : memref<256x128xf32, #tpu.memory_space<vmem>>, vector<16x128xf32>,
    %c112_300 = arith.constant 112 : index
    %c0_301 = arith.constant 0 : index
    %270 = tpu.strided_load %arg14[%c112_300, %c0_301] {strides = array<i32: 2, 1>} : memref<256x128xf32, #tpu.memory_space<vmem>>, vector<8x128xf32>
    %c113 = arith.constant 113 : index
    %c0_302 = arith.constant 0 : index
    %271 = tpu.strided_load %arg14[%c113, %c0_302] {strides = array<i32: 2, 1>} : memref<256x128xf32, #tpu.memory_space<vmem>>, vector<8x128xf32>
    %272 = arith.maximumf %270, %271 : vector<8x128xf32>
    %c56 = arith.constant 56 : index
    %c0_303 = arith.constant 0 : index
    %273 = vector.load %arg16[%c56, %c0_303] : memref<64x128xf32, #tpu.memory_space<vmem>>, vector<8x128xf32>
    tpu.vector_store %arg16[%c56, %c0_303], %272 {strides = array<i32>} : memref<64x128xf32, #tpu.memory_space<vmem>>, vector<8x128xf32>,
    %c0_304 = arith.constant 0 : index
    %c0_305 = arith.constant 0 : index
    %274 = tpu.strided_load %arg16[%c0_304, %c0_305] {strides = array<i32: 8, 1>} : memref<64x128xf32, #tpu.memory_space<vmem>>, vector<8x128xf32>
    %c0_306 = arith.constant 0 : index
    %c0_307 = arith.constant 0 : index
    %c0_308 = arith.constant 0 : index
    %275 = vector.load %arg6[%c0_306, %c0_307, %c0_308] : memref<5x128x128xf32, #tpu.memory_space<vmem>>, vector<1x128x128xf32>
    %276 = vector.shape_cast %275 : vector<1x128x128xf32> to vector<128x128xf32>
    %cst_309 = arith.constant dense<0.000000e+00> : vector<8x128xf32>
    %277 = tpu.matmul %274, %276, %cst_309 {dimension_numbers = #tpu.dot_dimension_numbers<[1], [0], [0], [1], [0, 0, 1, 1], [], []>} : vector<8x128xf32>, vector<128x128xf32>, vector<8x128xf32> -> vector<8x128xf32>
    %c1_310 = arith.constant 1 : index
    %c0_311 = arith.constant 0 : index
    %278 = tpu.strided_load %arg16[%c1_310, %c0_311] {strides = array<i32: 8, 1>} : memref<64x128xf32, #tpu.memory_space<vmem>>, vector<8x128xf32>
    %c1_312 = arith.constant 1 : index
    %c0_313 = arith.constant 0 : index
    %c0_314 = arith.constant 0 : index
    %279 = vector.load %arg6[%c1_312, %c0_313, %c0_314] : memref<5x128x128xf32, #tpu.memory_space<vmem>>, vector<1x128x128xf32>
    %280 = vector.shape_cast %279 : vector<1x128x128xf32> to vector<128x128xf32>
    %cst_315 = arith.constant dense<0.000000e+00> : vector<8x128xf32>
    %281 = tpu.matmul %278, %280, %cst_315 {dimension_numbers = #tpu.dot_dimension_numbers<[1], [0], [0], [1], [0, 0, 1, 1], [], []>} : vector<8x128xf32>, vector<128x128xf32>, vector<8x128xf32> -> vector<8x128xf32>
    %282 = arith.addf %277, %281 : vector<8x128xf32>
    %c2_316 = arith.constant 2 : index
    %c0_317 = arith.constant 0 : index
    %283 = tpu.strided_load %arg16[%c2_316, %c0_317] {strides = array<i32: 8, 1>} : memref<64x128xf32, #tpu.memory_space<vmem>>, vector<8x128xf32>
    %c2_318 = arith.constant 2 : index
    %c0_319 = arith.constant 0 : index
    %c0_320 = arith.constant 0 : index
    %284 = vector.load %arg6[%c2_318, %c0_319, %c0_320] : memref<5x128x128xf32, #tpu.memory_space<vmem>>, vector<1x128x128xf32>
    %285 = vector.shape_cast %284 : vector<1x128x128xf32> to vector<128x128xf32>
    %cst_321 = arith.constant dense<0.000000e+00> : vector<8x128xf32>
    %286 = tpu.matmul %283, %285, %cst_321 {dimension_numbers = #tpu.dot_dimension_numbers<[1], [0], [0], [1], [0, 0, 1, 1], [], []>} : vector<8x128xf32>, vector<128x128xf32>, vector<8x128xf32> -> vector<8x128xf32>
    %287 = arith.addf %282, %286 : vector<8x128xf32>
    %c3_322 = arith.constant 3 : index
    %c0_323 = arith.constant 0 : index
    %288 = tpu.strided_load %arg16[%c3_322, %c0_323] {strides = array<i32: 8, 1>} : memref<64x128xf32, #tpu.memory_space<vmem>>, vector<8x128xf32>
    %c3_324 = arith.constant 3 : index
    %c0_325 = arith.constant 0 : index
    %c0_326 = arith.constant 0 : index
    %289 = vector.load %arg6[%c3_324, %c0_325, %c0_326] : memref<5x128x128xf32, #tpu.memory_space<vmem>>, vector<1x128x128xf32>
    %290 = vector.shape_cast %289 : vector<1x128x128xf32> to vector<128x128xf32>
    %cst_327 = arith.constant dense<0.000000e+00> : vector<8x128xf32>
    %291 = tpu.matmul %288, %290, %cst_327 {dimension_numbers = #tpu.dot_dimension_numbers<[1], [0], [0], [1], [0, 0, 1, 1], [], []>} : vector<8x128xf32>, vector<128x128xf32>, vector<8x128xf32> -> vector<8x128xf32>
    %292 = arith.addf %287, %291 : vector<8x128xf32>
    %c4_328 = arith.constant 4 : index
    %c0_329 = arith.constant 0 : index
    %293 = tpu.strided_load %arg16[%c4_328, %c0_329] {strides = array<i32: 8, 1>} : memref<64x128xf32, #tpu.memory_space<vmem>>, vector<8x128xf32>
    %c4_330 = arith.constant 4 : index
    %c0_331 = arith.constant 0 : index
    %c0_332 = arith.constant 0 : index
    %294 = vector.load %arg6[%c4_330, %c0_331, %c0_332] : memref<5x128x128xf32, #tpu.memory_space<vmem>>, vector<1x128x128xf32>
    %295 = vector.shape_cast %294 : vector<1x128x128xf32> to vector<128x128xf32>
    %cst_333 = arith.constant dense<0.000000e+00> : vector<8x128xf32>
    %296 = tpu.matmul %293, %295, %cst_333 {dimension_numbers = #tpu.dot_dimension_numbers<[1], [0], [0], [1], [0, 0, 1, 1], [], []>} : vector<8x128xf32>, vector<128x128xf32>, vector<8x128xf32> -> vector<8x128xf32>
    %297 = arith.addf %292, %296 : vector<8x128xf32>
    %c0_334 = arith.constant 0 : index
    %c0_335 = arith.constant 0 : index
    %298 = vector.load %arg7[%c0_334, %c0_335] : memref<1x128xf32, #tpu.memory_space<vmem>>, vector<1x128xf32>
    %299 = vector.broadcast %298 : vector<1x128xf32> to vector<8x128xf32>
    %300 = arith.addf %297, %299 : vector<8x128xf32>
    %cst_336 = arith.constant 0.000000e+00 : f32
    %301 = vector.broadcast %cst_336 : f32 to vector<8x128xf32>
    %302 = arith.maximumf %300, %301 : vector<8x128xf32>
    %c0_337 = arith.constant 0 : index
    %c0_338 = arith.constant 0 : index
    %303 = vector.load %arg8[%c0_337, %c0_338] : memref<128x128xf32, #tpu.memory_space<vmem>>, vector<128x128xf32>
    %cst_339 = arith.constant dense<0.000000e+00> : vector<8x128xf32>
    %304 = tpu.matmul %302, %303, %cst_339 {dimension_numbers = #tpu.dot_dimension_numbers<[1], [0], [0], [1], [0, 0, 1, 1], [], []>} : vector<8x128xf32>, vector<128x128xf32>, vector<8x128xf32> -> vector<8x128xf32>
    %c0_340 = arith.constant 0 : index
    %c0_341 = arith.constant 0 : index
    %305 = vector.load %arg9[%c0_340, %c0_341] : memref<1x128xf32, #tpu.memory_space<vmem>>, vector<1x128xf32>
    %306 = vector.broadcast %305 : vector<1x128xf32> to vector<8x128xf32>
    %307 = arith.addf %304, %306 : vector<8x128xf32>
    %cst_342 = arith.constant 0.000000e+00 : f32
    %308 = vector.broadcast %cst_342 : f32 to vector<8x128xf32>
    %309 = arith.maximumf %307, %308 : vector<8x128xf32>
    %c0_343 = arith.constant 0 : index
    %c0_344 = arith.constant 0 : index
    %310 = vector.load %arg10[%c0_343, %c0_344] : memref<128x128xf32, #tpu.memory_space<vmem>>, vector<128x128xf32>
    %cst_345 = arith.constant dense<0.000000e+00> : vector<8x128xf32>
    %311 = tpu.matmul %309, %310, %cst_345 {dimension_numbers = #tpu.dot_dimension_numbers<[1], [0], [0], [1], [0, 0, 1, 1], [], []>} : vector<8x128xf32>, vector<128x128xf32>, vector<8x128xf32> -> vector<8x128xf32>
    %c0_346 = arith.constant 0 : index
    %c0_347 = arith.constant 0 : index
    %312 = vector.load %arg11[%c0_346, %c0_347] : memref<1x128xf32, #tpu.memory_space<vmem>>, vector<1x128xf32>
    %313 = vector.broadcast %312 : vector<1x128xf32> to vector<8x128xf32>
    %314 = arith.addf %311, %313 : vector<8x128xf32>
    %c0_348 = arith.constant 0 : index
    %c0_349 = arith.constant 0 : index
    %315 = vector.load %arg12[%c0_348, %c0_349] : memref<8x128xf32, #tpu.memory_space<vmem>>, vector<8x128xf32>
    tpu.vector_store %arg12[%c0_348, %c0_349], %314 {strides = array<i32>} : memref<8x128xf32, #tpu.memory_space<vmem>>, vector<8x128xf32>,
    return
  }
  func.func @transform_0(%arg0: i32) -> (i32, i32) {
    %c0_i32 = arith.constant 0 : i32
    %c0_i32_0 = arith.constant 0 : i32
    return %arg0, %c0_i32 : i32, i32
  }
  func.func @transform_1(%arg0: i32) -> (i32, i32, i32) {
    %c0_i32 = arith.constant 0 : i32
    %c0_i32_0 = arith.constant 0 : i32
    %c0_i32_1 = arith.constant 0 : i32
    %c0_i32_2 = arith.constant 0 : i32
    return %c0_i32, %c0_i32_0, %c0_i32_1 : i32, i32, i32
  }
  func.func @transform_2(%arg0: i32) -> (i32, i32) {
    %c0_i32 = arith.constant 0 : i32
    %c0_i32_0 = arith.constant 0 : i32
    %c0_i32_1 = arith.constant 0 : i32
    return %c0_i32, %c0_i32_0 : i32, i32
  }
  func.func @transform_3(%arg0: i32) -> (i32, i32, i32) {
    %c0_i32 = arith.constant 0 : i32
    %c0_i32_0 = arith.constant 0 : i32
    %c0_i32_1 = arith.constant 0 : i32
    %c0_i32_2 = arith.constant 0 : i32
    return %c0_i32, %c0_i32_0, %c0_i32_1 : i32, i32, i32
  }
  func.func @transform_4(%arg0: i32) -> (i32, i32) {
    %c0_i32 = arith.constant 0 : i32
    %c0_i32_0 = arith.constant 0 : i32
    %c0_i32_1 = arith.constant 0 : i32
    return %c0_i32, %c0_i32_0 : i32, i32
  }
  func.func @transform_5(%arg0: i32) -> (i32, i32, i32) {
    %c0_i32 = arith.constant 0 : i32
    %c0_i32_0 = arith.constant 0 : i32
    %c0_i32_1 = arith.constant 0 : i32
    %c0_i32_2 = arith.constant 0 : i32
    return %c0_i32, %c0_i32_0, %c0_i32_1 : i32, i32, i32
  }
  func.func @transform_6(%arg0: i32) -> (i32, i32) {
    %c0_i32 = arith.constant 0 : i32
    %c0_i32_0 = arith.constant 0 : i32
    %c0_i32_1 = arith.constant 0 : i32
    return %c0_i32, %c0_i32_0 : i32, i32
  }
  func.func @transform_7(%arg0: i32) -> (i32, i32) {
    %c0_i32 = arith.constant 0 : i32
    %c0_i32_0 = arith.constant 0 : i32
    %c0_i32_1 = arith.constant 0 : i32
    return %c0_i32, %c0_i32_0 : i32, i32
  }
  func.func @transform_8(%arg0: i32) -> (i32, i32) {
    %c0_i32 = arith.constant 0 : i32
    %c0_i32_0 = arith.constant 0 : i32
    %c0_i32_1 = arith.constant 0 : i32
    return %c0_i32, %c0_i32_0 : i32, i32
  }
  func.func @transform_9(%arg0: i32) -> (i32, i32) {
    %c0_i32 = arith.constant 0 : i32
    %c0_i32_0 = arith.constant 0 : i32
    %c0_i32_1 = arith.constant 0 : i32
    return %c0_i32, %c0_i32_0 : i32, i32
  }
  func.func @transform_10(%arg0: i32) -> (i32, i32) {
    %c0_i32 = arith.constant 0 : i32
    %c0_i32_0 = arith.constant 0 : i32
    %c0_i32_1 = arith.constant 0 : i32
    return %c0_i32, %c0_i32_0 : i32, i32
  }
  func.func @transform_11(%arg0: i32) -> (i32, i32) {
    %c0_i32 = arith.constant 0 : i32
    %c0_i32_0 = arith.constant 0 : i32
    return %arg0, %c0_i32 : i32, i32
  }
}

</mosaic_0001>

<bundles_post_ra>
// kernel: net_pallas_forward.1
= control target key start
LH: loop header
LB: loop body
LE: loop exit
PB: predicated region body
PF: predicated region fallthrough
CT: control target
= control target key end

     0   :  { %16 = vsyncpa [#allocation7], 0  ;;  %s8431_s0 = inlined_call_operand.vmem [shape: f32[256,96], index: 0, kind: input, shape index: {}]   ;;  %s8432_s1 = inlined_call_operand.vmem [shape: f32[5,96,256], index: 1, kind: input, shape index: {}]   ;;  %s8433_s2 = inlined_call_operand.vmem [shape: f32[1,128], index: 2, kind: input, shape index: {}]   ;;  %s8434_s3 = inlined_call_operand.hbm [shape: f32[5,128,256], index: 3, kind: input, shape index: {}]   ;;  %s8435_s4 = inlined_call_operand.vmem [shape: f32[1,128], index: 4, kind: input, shape index: {}]   ;;  %s8436_s5 = inlined_call_operand.hbm [shape: f32[5,128,128], index: 5, kind: input, shape index: {}]   ;;  %s8437_s6 = inlined_call_operand.vmem [shape: f32[1,128], index: 6, kind: input, shape index: {}]   ;;  %s8438_s7 = inlined_call_operand.hbm [shape: f32[128,128], index: 7, kind: input, shape index: {}]   ;;  %s8439_s8 = inlined_call_operand.vmem [shape: f32[1,128], index: 8, kind: input, shape index: {}]   ;;  %s8440_s9 = inlined_call_operand.hbm [shape: f32[128,128], index: 9, kind: input, shape index: {}]   ;;  %s8441_s10 = inlined_call_operand.vmem [shape: f32[1,128], index: 10, kind: input, shape index: {}]   ;;  %s8442_s11 = inlined_call_operand.vmem [shape: f32[8,128], index: 11, kind: output, shape index: {}]  }
   0x1   :  { %17 = vsyncpa [#allocation9], 0 }
   0x2   :  { %18 = vsyncpa [#allocation12], 0  ;;  %s6362_s17 = smov [#allocation8]  }
   0x3   :  { %s44_s18 = sshll.u32 %s6362_s17, 4  ;;  %s45_s18 = int_to_ptr.vmem [resolvable:$true] %s44_s18 }
   0x4   :  { %s6284_s19 = scalar_lea.vmem %s45_s18, 10240  ;;  %p6289_p1 = scmp.lt.s32.totalorder %s45_s18, %s45_s18 }
   0x5   :  { %p6285_p0 = scmp.ne.s32.totalorder %s45_s18, %s6284_s19  ;;  %p6290_p2 = scmp.lt.s32.totalorder %s6284_s19, %s6284_s19 }
   0x7   :  { %p6291_p3 = por %p6290_p2, %p6289_p1 }
   0x9   :  { %p6292_p4 = pnand %p6291_p3, %p6285_p0 }
   0xb   :  { %6295 = shalt.err (!%p6292_p4)
}
   0xc   :  { %s6363_s20 = smov 128   ;;  %s6364_s21 = smov 8  }
   0xd   :  { %50 = dma.hbm_to_vmem [thread:$0]  %s8436_s5, 10240, %s45_s18, [#allocation9], %s6363_s20, %s6363_s20, %s6364_s21  }
   0xe   :  { %s6365_s24 = smov [#allocation6]  }
   0xf   :  { %s30_s25 = sshll.u32 %s6365_s24, 4  ;;  %s31_s25 = int_to_ptr.vmem [resolvable:$true] %s30_s25 }
  0x10   :  { %s6304_s26 = scalar_lea.vmem %s31_s25, 20480  ;;  %p6309_p6 = scmp.lt.s32.totalorder %s31_s25, %s31_s25 }
  0x11   :  { %p6305_p5 = scmp.ne.s32.totalorder %s31_s25, %s6304_s26  ;;  %p6310_p7 = scmp.lt.s32.totalorder %s6304_s26, %s6304_s26 }
  0x13   :  { %p6311_p8 = por %p6310_p7, %p6309_p6 }
  0x15   :  { %p6312_p9 = pnand %p6311_p8, %p6305_p5 }
  0x17   :  { %6315 = shalt.err (!%p6312_p9)
}
  0x18   :  { %s6366_s27 = smov 256   ;;  %s6367_s28 = smov 16  }
  0x19   :  { %36 = dma.hbm_to_vmem [thread:$0]  %s8434_s3, 20480, %s31_s25, [#allocation7], %s6366_s27, %s6366_s27, %s6367_s28  }
  0x1a   :  { %s6368_s12 = smov [#allocation10]   ;;  %s6369_s14 = smov [#allocation11]  }
  0x1b   :  { %s58_s13 = sshll.u32 %s6368_s12, 4  ;;  %s72_s5 = sshll.u32 %s6369_s14, 4  ;;  %s59_s13 = int_to_ptr.vmem [resolvable:$true] %s58_s13  ;;  %s73_s5 = int_to_ptr.vmem [resolvable:$true] %s72_s5 }
  0x1c   :  { %s6324_s15 = scalar_lea.vmem %s59_s13, 2048  ;;  %p6329_p11 = scmp.lt.s32.totalorder %s59_s13, %s59_s13 }
  0x1d   :  { %p6325_p10 = scmp.ne.s32.totalorder %s59_s13, %s6324_s15  ;;  %p6330_p12 = scmp.lt.s32.totalorder %s6324_s15, %s6324_s15 }
  0x1f   :  { %p6331_p13 = por %p6330_p12, %p6329_p11 }
  0x21   :  { %p6332_p0 = pnand %p6331_p13, %p6325_p10 }
  0x23   :  { %6335 = shalt.err (!%p6332_p0)
}
  0x24   :  { %64 = dma.hbm_to_vmem [thread:$0]  %s8438_s7, 2048, %s59_s13, [#allocation9], %s6363_s20, %s6363_s20, %s6364_s21  }
  0x25   :  { %s6344_s3 = scalar_lea.vmem %s73_s5, 2048  ;;  %p6349_p2 = scmp.lt.s32.totalorder %s73_s5, %s73_s5 }
  0x26   :  { %p6345_p1 = scmp.ne.s32.totalorder %s73_s5, %s6344_s3  ;;  %p6350_p3 = scmp.lt.s32.totalorder %s6344_s3, %s6344_s3 }
  0x28   :  { %p6351_p4 = por %p6350_p3, %p6349_p2 }
  0x2a   :  { %p6352_p5 = pnand %p6351_p4, %p6345_p1 }
  0x2c   :  { %6355 = shalt.err (!%p6352_p5)
}
  0x2d   :  { %78 = dma.hbm_to_vmem [thread:$0]  %s8440_s9, 2048, %s73_s5, [#allocation12], %s6363_s20, %s6363_s20, %s6364_s21  }
  0x2e   :  { %6356 = dma.done.wait [#allocation7], 20480  }
  0x2f   :  { %6357 = vsyncadd [#allocation7], 4294946816 }
  0x30   :  { %6358 = dma.done.wait [#allocation9], 12288  }
  0x31   :  { %6359 = vsyncadd [#allocation9], 4294955008 }
  0x32   :  { %6360 = dma.done.wait [#allocation12], 2048  }
  0x33   :  { %6361 = vsyncadd [#allocation12], 4294965248  ;;  %v8443_v0 = vmov 0.0   ;;  %v148_v1 = vld [vmem:[%s8432_s1 + $0xb8] sm:$0xff]  ;;  %v147_v2 = vld [vmem:[%s8432_s1 + $0xb0] sm:$0xff]  ;;  %vm149_vm0 = vcmask 785408  }
  0x34   :  { %310 = vmatprep.mubr.f32.mxu0 %v8443_v0  ;;  %848 = vmatprep.mubr.f32.mxu1 %v8443_v0  ;;  %v146_v3 = vld [vmem:[%s8432_s1 + $0xa8] sm:$0xff]  ;;  %v145_v4 = vld [vmem:[%s8432_s1 + $0xa0] sm:$0xff]  ;;  %v144_v5 = vld [vmem:[%s8432_s1 + $0x98] sm:$0xff]  ;;  %vm6371_vm1 = vmmov 0  }
  0x35   :  { %254 = vmatprep.subr.mxu0 %v148_v1  ;;  %v143_v6 = vld [vmem:[%s8432_s1 + $0x90] sm:$0xff]  ;;  %v5682_v7 = vld [vmem:[%s8432_s1 + $0x178] sm:$0xff]  ;;  %v142_v9 = vld [vmem:[%s8432_s1 + $0x88] sm:$0xff] }
  0x36   :  { %255 = vmatpush1.msra.mxu0 %v147_v2  ;;  %v5681_v8 = vld [vmem:[%s8432_s1 + $0x170] sm:$0xff]  ;;  %792 = vmatprep.subr.mxu1 %v5682_v7  ;;  %v5680_v10 = vld [vmem:[%s8432_s1 + $0x168] sm:$0xff]  ;;  %v141_v11 = vld [vmem:[%s8432_s1 + $0x80] sm:$0xff] }
  0x37   :  { %256 = vmatprep.subr.mxu0 %v146_v3  ;;  %793 = vmatpush1.msra.mxu1 %v5681_v8  ;;  %v5679_v12 = vld [vmem:[%s8432_s1 + $0x160] sm:$0xff]  ;;  %v5678_v13 = vld [vmem:[%s8432_s1 + $0x158] sm:$0xff]  ;;  %v5677_v15 = vld [vmem:[%s8432_s1 + $0x150] sm:$0xff] }
  0x38   :  { %257 = vmatpush1.msra.mxu0 %v145_v4  ;;  %v140_v14 = vld [vmem:[%s8432_s1 + $0x78] sm:$0xff]  ;;  %794 = vmatprep.subr.mxu1 %v5680_v10  ;;  %v139_v16 = vld [vmem:[%s8432_s1 + $0x70] sm:$0xff]  ;;  %v5676_v17 = vld [vmem:[%s8432_s1 + $0x148] sm:$0xff] }
  0x39   :  { %258 = vmatprep.subr.mxu0 %v144_v5  ;;  %795 = vmatpush1.msra.mxu1 %v5679_v12  ;;  %v138_v18 = vld [vmem:[%s8432_s1 + $0x68] sm:$0xff]  ;;  %v5675_v19 = vld [vmem:[%s8432_s1 + $0x140] sm:$0xff]  ;;  %v5674_v21 = vld [vmem:[%s8432_s1 + $0x138] sm:$0xff] }
  0x3a   :  { %259 = vmatpush1.msra.mxu0 %v143_v6  ;;  %796 = vmatprep.subr.mxu1 %v5678_v13  ;;  %v137_v20 = vld [vmem:[%s8432_s1 + $0x60] sm:$0xff]  ;;  %v136_v22 = vld [vmem:[%s8432_s1 + $0x58] sm:$0xff]  ;;  %v5673_v23 = vld [vmem:[%s8432_s1 + $0x130] sm:$0xff] }
  0x3b   :  { %260 = vmatprep.subr.mxu0 %v142_v9  ;;  %797 = vmatpush1.msra.mxu1 %v5677_v15  ;;  %v135_v24 = vld [vmem:[%s8432_s1 + $0x50] sm:$0xff]  ;;  %v5672_v25 = vld [vmem:[%s8432_s1 + $0x128] sm:$0xff]  ;;  %v5671_v27 = vld [vmem:[%s8432_s1 + $0x120] sm:$0xff] }
  0x3c   :  { %261 = vmatpush1.msra.mxu0 %v141_v11  ;;  %798 = vmatprep.subr.mxu1 %v5676_v17  ;;  %v134_v26 = vld [vmem:[%s8432_s1 + $0x48] sm:$0xff]  ;;  %v133_v28 = vld [vmem:[%s8432_s1 + $0x40] sm:$0xff]  ;;  %v5670_v29 = vld [vmem:[%s8432_s1 + $0x118] sm:$0xff] }
  0x3d   :  { %262 = vmatprep.subr.mxu0 %v140_v14  ;;  %799 = vmatpush1.msra.mxu1 %v5675_v19  ;;  %v132_v30 = vld [vmem:[%s8432_s1 + $0x38] sm:$0xff]  ;;  %v5669_v31 = vld [vmem:[%s8432_s1 + $0x110] sm:$0xff]  ;;  %v5668_v33 = vld [vmem:[%s8432_s1 + $0x108] sm:$0xff] }
  0x3e   :  { %263 = vmatpush1.msra.mxu0 %v139_v16  ;;  %800 = vmatprep.subr.mxu1 %v5674_v21  ;;  %v131_v32 = vld [vmem:[%s8432_s1 + $0x30] sm:$0xff]  ;;  %v130_v34 = vld [vmem:[%s8432_s1 + $0x28] sm:$0xff]  ;;  %v5667_v35 = vld [vmem:[%s8432_s1 + $0x100] sm:$0xff] }
  0x3f   :  { %264 = vmatprep.subr.mxu0 %v138_v18  ;;  %801 = vmatpush1.msra.mxu1 %v5673_v23  ;;  %v129_v36 = vld [vmem:[%s8432_s1 + $0x20] sm:$0xff]  ;;  %v5666_v37 = vld [vmem:[%s8432_s1 + $0xf8] sm:$0xff]  ;;  %v5665_v39 = vld [vmem:[%s8432_s1 + $0xf0] sm:$0xff] }
  0x40   :  { %265 = vmatpush1.msra.mxu0 %v137_v20  ;;  %802 = vmatprep.subr.mxu1 %v5672_v25  ;;  %v128_v38 = vld [vmem:[%s8432_s1 + $0x18] sm:$0xff]  ;;  %v127_v40 = vld [vmem:[%s8432_s1 + $0x10] sm:$0xff]  ;;  %v5664_v41 = vld [vmem:[%s8432_s1 + $0xe8] sm:$0xff] }
  0x41   :  { %266 = vmatprep.subr.mxu0 %v136_v22  ;;  %803 = vmatpush1.msra.mxu1 %v5671_v27  ;;  %v126_v42 = vld [vmem:[%s8432_s1 + $0x8] sm:$0xff]  ;;  %v5663_v43 = vld [vmem:[%s8432_s1 + $0xe0] sm:$0xff]  ;;  %v5662_v45 = vld [vmem:[%s8432_s1 + $0xd8] sm:$0xff] }
  0x42   :  { %267 = vmatpush1.msra.mxu0 %v135_v24  ;;  %804 = vmatprep.subr.mxu1 %v5670_v29  ;;  %v125_v44 = vld [vmem:[%s8432_s1] sm:$0xff]  ;;  %v5738_v47 = vld [vmem:[%s8432_s1 + $0x238] sm:$0xff]  ;;  %v5737_v48 = vld [vmem:[%s8432_s1 + $0x230] sm:$0xff] }
  0x43   :  { %268 = vmatprep.subr.mxu0 %v134_v26  ;;  %805 = vmatpush1.msra.mxu1 %v5669_v31  ;;  %v93_v46 = vld [vmem:[%s8431_s0] sm:$0xff]  ;;  %v5661_v49 = vld [vmem:[%s8432_s1 + $0xd0] sm:$0xff]  ;;  %v5736_v50 = vld [vmem:[%s8432_s1 + $0x228] sm:$0xff] }
  0x44   :  { %269 = vmatpush1.msra.mxu0 %v133_v28  ;;  %806 = vmatprep.subr.mxu1 %v5668_v33  ;;  %v5660_v51 = vld [vmem:[%s8432_s1 + $0xc8] sm:$0xff]  ;;  %v5735_v52 = vld [vmem:[%s8432_s1 + $0x220] sm:$0xff]  ;;  %v5734_v56 = vld [vmem:[%s8432_s1 + $0x218] sm:$0xff] }
  0x45   :  { %270 = vmatprep.subr.mxu0 %v132_v30  ;;  %807 = vmatpush1.msra.mxu1 %v5667_v35  ;;  %v94_v53 = vld [vmem:[%s8431_s0 + $0x8] sm:$0xff]  ;;  %v5659_v54 = vld [vmem:[%s8432_s1 + $0xc0] sm:$0xff]  ;;  %v5733_v57 = vld [vmem:[%s8432_s1 + $0x210] sm:$0xff] }
  0x46   :  { %271 = vmatpush1.msra.mxu0 %v131_v32  ;;  %808 = vmatprep.subr.mxu1 %v5666_v37  ;;  %v631_v55 = vld [vmem:[%s8431_s0 + $0x1] sm:$0xff]  ;;  %v95_v58 = vld [vmem:[%s8431_s0 + $0x10] sm:$0xff]  ;;  %v5730_v62 = vld [vmem:[%s8432_s1 + $0x1f8] sm:$0xff] }
  0x47   :  { %272 = vmatprep.subr.mxu0 %v130_v34  ;;  %809 = vmatpush1.msra.mxu1 %v5665_v39  ;;  %v5732_v59 = vld [vmem:[%s8432_s1 + $0x208] sm:$0xff]  ;;  %v5731_v61 = vld [vmem:[%s8432_s1 + $0x200] sm:$0xff]  ;;  %v96_v63 = vld [vmem:[%s8431_s0 + $0x18] sm:$0xff] }
  0x48   :  { %273 = vmatpush1.msra.mxu0 %v129_v36  ;;  %810 = vmatprep.subr.mxu1 %v5664_v41  ;;  %v632_v60 = vld [vmem:[%s8431_s0 + $0x9] sm:$0xff]  ;;  %v633_v1 = vld [vmem:[%s8431_s0 + $0x11] sm:$0xff]  ;;  %v97_v4 = vld [vmem:[%s8431_s0 + $0x20] sm:$0xff] }
  0x49   :  { %274 = vmatprep.subr.mxu0 %v128_v38  ;;  %811 = vmatpush1.msra.mxu1 %v5663_v43  ;;  %v5729_v2 = vld [vmem:[%s8432_s1 + $0x1f0] sm:$0xff]  ;;  %v5728_v3 = vld [vmem:[%s8432_s1 + $0x1e8] sm:$0xff]  ;;  %v634_v5 = vld [vmem:[%s8431_s0 + $0x19] sm:$0xff] }
  0x4a   :  { %275 = vmatpush1.msra.mxu0 %v127_v40  ;;  %812 = vmatprep.subr.mxu1 %v5662_v45  ;;  %v5727_v6 = vld [vmem:[%s8432_s1 + $0x1e0] sm:$0xff]  ;;  %v5726_v7 = vld [vmem:[%s8432_s1 + $0x1d8] sm:$0xff]  ;;  %v98_v8 = vld [vmem:[%s8431_s0 + $0x28] sm:$0xff] }
  0x4b   :  { %276 = vmatprep.subr.mxu0 %v126_v42  ;;  %813 = vmatpush1.msra.mxu1 %v5661_v49  ;;  %v5794_v9 = vld [vmem:[%s8432_s1 + $0x2f8] sm:$0xff]  ;;  %v5793_v10 = vld [vmem:[%s8432_s1 + $0x2f0] sm:$0xff]  ;;  %v635_v11 = vld [vmem:[%s8431_s0 + $0x21] sm:$0xff] }
  0x4c   :  { %277 = vmatpush1.msra.mxu0 %v125_v44  ;;  %814 = vmatprep.subr.mxu1 %v5660_v51  ;;  %v5725_v12 = vld [vmem:[%s8432_s1 + $0x1d0] sm:$0xff]  ;;  %v5724_v13 = vld [vmem:[%s8432_s1 + $0x1c8] sm:$0xff]  ;;  %v5791_v16 = vld [vmem:[%s8432_s1 + $0x2e0] sm:$0xff] }
  0x4d   :  { %5627 = vmatmul.mubr.msk.f32.vlgmr.msra.gmra.mxu0 %vm149_vm0, %v93_v46  ;;  %1394 = vmatprep.subr.mxu0 %v5738_v47  ;;  %v5792_v14 = vld [vmem:[%s8432_s1 + $0x2e8] sm:$0xff]  ;;  %v99_v15 = vld [vmem:[%s8431_s0 + $0x30] sm:$0xff]  ;;  %v5723_v18 = vld [vmem:[%s8432_s1 + $0x1c0] sm:$0xff] }
  0x4e   :  { %1395 = vmatpush1.msra.mxu0 %v5737_v48  ;;  %316 = vmatprep.mubr.f32.mxu0 %v8443_v0  ;;  %v636_v17 = vld [vmem:[%s8431_s0 + $0x29] sm:$0xff]  ;;  %v5722_v19 = vld [vmem:[%s8432_s1 + $0x1b8] sm:$0xff]  ;;  %v101_v27 = vld [vmem:[%s8431_s0 + $0x40] sm:$0xff] }
  0x4f   :  { %1396 = vmatprep.subr.mxu0 %v5736_v50  ;;  %815 = vmatpush1.msra.mxu1 %v5659_v54  ;;  %v5790_v20 = vld [vmem:[%s8432_s1 + $0x2d8] sm:$0xff]  ;;  %v5789_v22 = vld [vmem:[%s8432_s1 + $0x2d0] sm:$0xff]  ;;  %v5720_v25 = vld [vmem:[%s8432_s1 + $0x1a8] sm:$0xff] }
  0x50   :  { %1397 = vmatpush1.msra.mxu0 %v5735_v52  ;;  %5683 = vmatmul.mubr.msk.f32.vlgmr.msra.gmra.mxu1 %vm149_vm0, %v631_v55  ;;  %v100_v21 = vld [vmem:[%s8431_s0 + $0x38] sm:$0xff]  ;;  %v5721_v24 = vld [vmem:[%s8432_s1 + $0x1b0] sm:$0xff]  ;;  %v5788_v26 = vld [vmem:[%s8432_s1 + $0x2c8] sm:$0xff] }
  0x51   :  { %5628 = vmatmul.mubr.msk.f32.gmra.mxu0 %vm149_vm0, %v94_v53  ;;  %854 = vmatprep.mubr.f32.mxu1 %v8443_v0  ;;  %v637_v23 = vld [vmem:[%s8431_s0 + $0x31] sm:$0xff]  ;;  %v5787_v28 = vld [vmem:[%s8432_s1 + $0x2c0] sm:$0xff]  ;;  %v102_v33 = vld [vmem:[%s8431_s0 + $0x48] sm:$0xff] }
  0x52   :  { %322 = vmatprep.mubr.f32.mxu0 %v8443_v0  ;;  %1398 = vmatprep.subr.mxu0 %v5734_v56  ;;  %v638_v29 = vld [vmem:[%s8431_s0 + $0x39] sm:$0xff]  ;;  %v5785_v34 = vld [vmem:[%s8432_s1 + $0x2b0] sm:$0xff]  ;;  %v639_v35 = vld [vmem:[%s8431_s0 + $0x41] sm:$0xff] }
  0x53   :  { %1399 = vmatpush1.msra.mxu0 %v5733_v57  ;;  %1996 = vmatprep.subr.mxu1 %v5794_v9  ;;  %v5719_v30 = vld [vmem:[%s8432_s1 + $0x1a0] sm:$0xff]  ;;  %v5718_v31 = vld [vmem:[%s8432_s1 + $0x198] sm:$0xff]  ;;  %v5717_v36 = vld [vmem:[%s8432_s1 + $0x190] sm:$0xff] }
  0x54   :  { %1400 = vmatprep.subr.mxu0 %v5732_v59  ;;  %5684 = vmatmul.mubr.msk.f32.gmra.mxu1 %vm149_vm0, %v632_v60  ;;  %v5786_v32 = vld [vmem:[%s8432_s1 + $0x2b8] sm:$0xff]  ;;  %v5716_v37 = vld [vmem:[%s8432_s1 + $0x188] sm:$0xff]  ;;  %v103_v39 = vld [vmem:[%s8431_s0 + $0x50] sm:$0xff] }
  0x55   :  { %5629 = vmatmul.mubr.msk.f32.gmra.mxu0 %vm149_vm0, %v95_v58  ;;  %860 = vmatprep.mubr.f32.mxu1 %v8443_v0  ;;  %v5784_v38 = vld [vmem:[%s8432_s1 + $0x2a8] sm:$0xff]  ;;  %v5783_v40 = vld [vmem:[%s8432_s1 + $0x2a0] sm:$0xff]  ;;  %v5782_v43 = vld [vmem:[%s8432_s1 + $0x298] sm:$0xff] }
  0x56   :  { %328 = vmatprep.mubr.f32.mxu0 %v8443_v0  ;;  %1401 = vmatpush1.msra.mxu0 %v5731_v61  ;;  %v640_v41 = vld [vmem:[%s8431_s0 + $0x49] sm:$0xff]  ;;  %v5715_v42 = vld [vmem:[%s8432_s1 + $0x180] sm:$0xff]  ;;  %v5850_v44 = vld [vmem:[%s8432_s1 + $0x3b8] sm:$0xff] }
  0x57   :  { %1402 = vmatprep.subr.mxu0 %v5730_v62  ;;  %1997 = vmatpush1.msra.mxu1 %v5793_v10  ;;  %v104_v45 = vld [vmem:[%s8431_s0 + $0x58] sm:$0xff]  ;;  %v5781_v46 = vld [vmem:[%s8432_s1 + $0x290] sm:$0xff]  ;;  %v5780_v48 = vld [vmem:[%s8432_s1 + $0x288] sm:$0xff] }
  0x58   :  { %5685 = vmatmul.mubr.msk.f32.gmra.mxu1 %vm149_vm0, %v633_v1  ;;  %1403 = vmatpush1.msra.mxu0 %v5729_v2  ;;  %v641_v47 = vld [vmem:[%s8431_s0 + $0x51] sm:$0xff]  ;;  %v5779_v49 = vld [vmem:[%s8432_s1 + $0x280] sm:$0xff]  ;;  %v5776_v54 = vld [vmem:[%s8432_s1 + $0x268] sm:$0xff] }
  0x59   :  { %5630 = vmatmul.mubr.msk.f32.gmra.mxu0 %vm149_vm0, %v96_v63  ;;  %866 = vmatprep.mubr.f32.mxu1 %v8443_v0  ;;  %v105_v50 = vld [vmem:[%s8431_s0 + $0x60] sm:$0xff]  ;;  %v5778_v51 = vld [vmem:[%s8432_s1 + $0x278] sm:$0xff]  ;;  %v5777_v53 = vld [vmem:[%s8432_s1 + $0x270] sm:$0xff] }
  0x5a   :  { %334 = vmatprep.mubr.f32.mxu0 %v8443_v0  ;;  %1404 = vmatprep.subr.mxu0 %v5728_v3  ;;  %v642_v52 = vld [vmem:[%s8431_s0 + $0x59] sm:$0xff]  ;;  %v106_v55 = vld [vmem:[%s8431_s0 + $0x68] sm:$0xff]  ;;  %v5773_v59 = vld [vmem:[%s8432_s1 + $0x250] sm:$0xff] }
  0x5b   :  { %1405 = vmatpush1.msra.mxu0 %v5727_v6  ;;  %1998 = vmatprep.subr.mxu1 %v5792_v14  ;;  %v5775_v56 = vld [vmem:[%s8432_s1 + $0x260] sm:$0xff]  ;;  %v5774_v58 = vld [vmem:[%s8432_s1 + $0x258] sm:$0xff]  ;;  %v107_v60 = vld [vmem:[%s8431_s0 + $0x70] sm:$0xff] }
  0x5c   :  { %5686 = vmatmul.mubr.msk.f32.gmra.mxu1 %vm149_vm0, %v634_v5  ;;  %1406 = vmatprep.subr.mxu0 %v5726_v7  ;;  %v643_v57 = vld [vmem:[%s8431_s0 + $0x61] sm:$0xff]  ;;  %v644_v62 = vld [vmem:[%s8431_s0 + $0x69] sm:$0xff]  ;;  %v108_v1 = vld [vmem:[%s8431_s0 + $0x78] sm:$0xff] }
  0x5d   :  { %5631 = vmatmul.mubr.msk.f32.gmra.mxu0 %vm149_vm0, %v97_v4  ;;  %872 = vmatprep.mubr.f32.mxu1 %v8443_v0  ;;  %v5772_v61 = vld [vmem:[%s8432_s1 + $0x248] sm:$0xff]  ;;  %v5771_v63 = vld [vmem:[%s8432_s1 + $0x240] sm:$0xff]  ;;  %v645_v2 = vld [vmem:[%s8431_s0 + $0x71] sm:$0xff] }
  0x5e   :  { %340 = vmatprep.mubr.f32.mxu0 %v8443_v0  ;;  %1407 = vmatpush1.msra.mxu0 %v5725_v12  ;;  %v109_v3 = vld [vmem:[%s8431_s0 + $0x80] sm:$0xff]  ;;  %v110_v5 = vld [vmem:[%s8431_s0 + $0x88] sm:$0xff]  ;;  %v111_v7 = vld [vmem:[%s8431_s0 + $0x90] sm:$0xff] }
  0x5f   :  { %1408 = vmatprep.subr.mxu0 %v5724_v13  ;;  %1999 = vmatpush1.msra.mxu1 %v5791_v16  ;;  %v646_v4 = vld [vmem:[%s8431_s0 + $0x79] sm:$0xff]  ;;  %v647_v6 = vld [vmem:[%s8431_s0 + $0x81] sm:$0xff]  ;;  %v649_v10 = vld [vmem:[%s8431_s0 + $0x91] sm:$0xff] }
  0x60   :  { %5687 = vmatmul.mubr.msk.f32.gmra.mxu1 %vm149_vm0, %v635_v11  ;;  %1409 = vmatpush1.msra.mxu0 %v5723_v18  ;;  %v112_v9 = vld [vmem:[%s8431_s0 + $0x98] sm:$0xff]  ;;  %v113_v11 = vld [vmem:[%s8431_s0 + $0xa0] sm:$0xff]  ;;  %v114_v13 = vld [vmem:[%s8431_s0 + $0xa8] sm:$0xff] }
  0x61   :  { %5632 = vmatmul.mubr.msk.f32.gmra.mxu0 %vm149_vm0, %v98_v8  ;;  %878 = vmatprep.mubr.f32.mxu1 %v8443_v0  ;;  %v648_v8 = vld [vmem:[%s8431_s0 + $0x89] sm:$0xff]  ;;  %v650_v12 = vld [vmem:[%s8431_s0 + $0x99] sm:$0xff]  ;;  %v651_v14 = vld [vmem:[%s8431_s0 + $0xa1] sm:$0xff] }
  0x62   :  { %346 = vmatprep.mubr.f32.mxu0 %v8443_v0  ;;  %1410 = vmatprep.subr.mxu0 %v5722_v19  ;;  %v652_v16 = vld [vmem:[%s8431_s0 + $0xa9] sm:$0xff]  ;;  %v653_v18 = vld [vmem:[%s8431_s0 + $0xb1] sm:$0xff]  ;;  %v117_v19 = vld [vmem:[%s8431_s0 + $0xc0] sm:$0xff] }
  0x63   :  { %2000 = vmatprep.subr.mxu1 %v5790_v20  ;;  %1411 = vmatpush1.msra.mxu0 %v5721_v24  ;;  %v654_v20 = vld [vmem:[%s8431_s0 + $0xb9] sm:$0xff]  ;;  %v656_v24 = vld [vmem:[%s8431_s0 + $0xc9] sm:$0xff] }
  0x64   :  { %5688 = vmatmul.mubr.msk.f32.gmra.mxu1 %vm149_vm0, %v636_v17  ;;  %1412 = vmatprep.subr.mxu0 %v5720_v25  ;;  %v116_v17 = vld [vmem:[%s8431_s0 + $0xb8] sm:$0xff] }
  0x65   :  { %5633 = vmatmul.mubr.msk.f32.gmra.mxu0 %vm149_vm0, %v99_v15  ;;  %884 = vmatprep.mubr.f32.mxu1 %v8443_v0  ;;  %v115_v15 = vld [vmem:[%s8431_s0 + $0xb0] sm:$0xff]  ;;  %v120_v25 = vld [vmem:[%s8431_s0 + $0xd8] sm:$0xff] }
  0x66   :  { %352 = vmatprep.mubr.f32.mxu0 %v8443_v0  ;;  %2001 = vmatpush1.msra.mxu1 %v5789_v22  ;;  %v655_v22 = vld [vmem:[%s8431_s0 + $0xc1] sm:$0xff] }
  0x67   :  { %2002 = vmatprep.subr.mxu1 %v5788_v26  ;;  %1413 = vmatpush1.msra.mxu0 %v5719_v30  ;;  %v657_v26 = vld [vmem:[%s8431_s0 + $0xd1] sm:$0xff]  ;;  %v659_v30 = vld [vmem:[%s8431_s0 + $0xe1] sm:$0xff] }
  0x68   :  { %5689 = vmatmul.mubr.msk.f32.gmra.mxu1 %vm149_vm0, %v637_v23  ;;  %1414 = vmatprep.subr.mxu0 %v5718_v31  ;;  %v119_v23 = vld [vmem:[%s8431_s0 + $0xd0] sm:$0xff] }
  0x69   :  { %5634 = vmatmul.mubr.msk.f32.gmra.mxu0 %vm149_vm0, %v100_v21  ;;  %890 = vmatprep.mubr.f32.mxu1 %v8443_v0  ;;  %v118_v21 = vld [vmem:[%s8431_s0 + $0xc8] sm:$0xff]  ;;  %v123_v31 = vld [vmem:[%s8431_s0 + $0xf0] sm:$0xff] }
  0x6a   :  { %358 = vmatprep.mubr.f32.mxu0 %v8443_v0  ;;  %2003 = vmatpush1.msra.mxu1 %v5787_v28  ;;  %v658_v28 = vld [vmem:[%s8431_s0 + $0xd9] sm:$0xff] }
  0x6b   :  { %2004 = vmatprep.subr.mxu1 %v5786_v32  ;;  %1415 = vmatpush1.msra.mxu0 %v5717_v36  ;;  %v660_v32 = vld [vmem:[%s8431_s0 + $0xe9] sm:$0xff] }
  0x6c   :  { %5690 = vmatmul.mubr.msk.f32.gmra.mxu1 %vm149_vm0, %v638_v29  ;;  %1416 = vmatprep.subr.mxu0 %v5716_v37  ;;  %v122_v29 = vld [vmem:[%s8431_s0 + $0xe8] sm:$0xff]  ;;  %v5849_v36 = vld [vmem:[%s8432_s1 + $0x3b0] sm:$0xff]  ;;  %v662_v37 = vld [vmem:[%s8431_s0 + $0xf9] sm:$0x7f] }
  0x6d   :  { %5635 = vmatmul.mubr.msk.f32.gmra.mxu0 %vm149_vm0, %v101_v27  ;;  %896 = vmatprep.mubr.f32.mxu1 %v8443_v0  ;;  %v121_v27 = vld [vmem:[%s8431_s0 + $0xe0] sm:$0xff] }
  0x6e   :  { %364 = vmatprep.mubr.f32.mxu0 %v8443_v0  ;;  %2005 = vmatpush1.msra.mxu1 %v5785_v34  ;;  %v661_v34 = vld [vmem:[%s8431_s0 + $0xf1] sm:$0xff] }
  0x6f   :  { %2006 = vmatprep.subr.mxu1 %v5784_v38  ;;  %1417 = vmatpush1.msra.mxu0 %v5715_v42  ;;  %v5848_v38 = vld [vmem:[%s8432_s1 + $0x3a8] sm:$0xff]  ;;  %v5845_v42 = vld [vmem:[%s8432_s1 + $0x390] sm:$0xff] }
  0x70   :  { %5691 = vmatmul.mubr.msk.f32.gmra.mxu1 %vm149_vm0, %v639_v35  ;;  %2598 = vmatprep.subr.mxu0 %v5850_v44  ;;  %v1233_v35 = vld [vmem:[%s8431_s0 + $0x2] sm:$0xff] }
  0x71   :  { %5636 = vmatmul.mubr.msk.f32.gmra.mxu0 %vm149_vm0, %v102_v33  ;;  %902 = vmatprep.mubr.f32.mxu1 %v8443_v0  ;;  %v124_v33 = vld [vmem:[%s8431_s0 + $0xf8] sm:$0xff]  ;;  %v5844_v44 = vld [vmem:[%s8432_s1 + $0x388] sm:$0xff] }
  0x72   :  { %370 = vmatprep.mubr.f32.mxu0 %v8443_v0  ;;  %2007 = vmatpush1.msra.mxu1 %v5783_v40  ;;  %v1234_v40 = vld [vmem:[%s8431_s0 + $0xa] sm:$0xff] }
  0x73   :  { %2008 = vmatprep.subr.mxu1 %v5782_v43  ;;  %v1835_v43 = vld [vmem:[%s8431_s0 + $0x3] sm:$0xff] }
  0x74   :  { %5692 = vmatmul.mubr.msk.f32.gmra.mxu1 %vm149_vm0, %v640_v41  ;;  %v5846_v41 = vld [vmem:[%s8432_s1 + $0x398] sm:$0xff] }
  0x75   :  { %5637 = vmatmul.mubr.msk.f32.gmra.mxu0 %vm149_vm0, %v103_v39  ;;  %908 = vmatprep.mubr.f32.mxu1 %v8443_v0  ;;  %v5847_v39 = vld [vmem:[%s8432_s1 + $0x3a0] sm:$0xff] }
  0x76   :  { %376 = vmatprep.mubr.f32.mxu0 %v8443_v0  ;;  %2009 = vmatpush1.msra.mxu1 %v5781_v46  ;;  %v1235_v46 = vld [vmem:[%s8431_s0 + $0x12] sm:$0xff] }
  0x77   :  { %2010 = vmatprep.subr.mxu1 %v5780_v48  ;;  %v5841_v48 = vld [vmem:[%s8432_s1 + $0x370] sm:$0xff] }
  0x78   :  { %5693 = vmatmul.mubr.msk.f32.gmra.mxu1 %vm149_vm0, %v641_v47  ;;  %v5842_v47 = vld [vmem:[%s8432_s1 + $0x378] sm:$0xff] }
  0x79   :  { %5638 = vmatmul.mubr.msk.f32.gmra.mxu0 %vm149_vm0, %v104_v45  ;;  %914 = vmatprep.mubr.f32.mxu1 %v8443_v0  ;;  %v5843_v45 = vld [vmem:[%s8432_s1 + $0x380] sm:$0xff] }
  0x7a   :  { %382 = vmatprep.mubr.f32.mxu0 %v8443_v0  ;;  %2011 = vmatpush1.msra.mxu1 %v5779_v49  ;;  %v1836_v49 = vld [vmem:[%s8431_s0 + $0xb] sm:$0xff] }
  0x7b   :  { %2012 = vmatprep.subr.mxu1 %v5778_v51  ;;  %v5839_v51 = vld [vmem:[%s8432_s1 + $0x360] sm:$0xff] }
  0x7c   :  { %5694 = vmatmul.mubr.msk.f32.gmra.mxu1 %vm149_vm0, %v642_v52  ;;  %v1236_v52 = vld [vmem:[%s8431_s0 + $0x1a] sm:$0xff] }
  0x7d   :  { %5639 = vmatmul.mubr.msk.f32.gmra.mxu0 %vm149_vm0, %v105_v50  ;;  %920 = vmatprep.mubr.f32.mxu1 %v8443_v0  ;;  %v5840_v50 = vld [vmem:[%s8432_s1 + $0x368] sm:$0xff] }
  0x7e   :  { %388 = vmatprep.mubr.f32.mxu0 %v8443_v0  ;;  %2013 = vmatpush1.msra.mxu1 %v5777_v53  ;;  %v5838_v53 = vld [vmem:[%s8432_s1 + $0x358] sm:$0xff] }
  0x7f   :  { %2014 = vmatprep.subr.mxu1 %v5776_v54  ;;  %v5837_v54 = vld [vmem:[%s8432_s1 + $0x350] sm:$0xff] }
  0x80   :  { %2015 = vmatpush1.msra.mxu1 %v5775_v56  ;;  %v5836_v56 = vld [vmem:[%s8432_s1 + $0x348] sm:$0xff] }
  0x81   :  { %5640 = vmatmul.mubr.msk.f32.gmra.mxu0 %vm149_vm0, %v106_v55  ;;  %5695 = vmatmul.mubr.msk.f32.gmra.mxu1 %vm149_vm0, %v643_v57  ;;  %v1837_v55 = vld [vmem:[%s8431_s0 + $0x13] sm:$0xff]  ;;  %v5835_v57 = vld [vmem:[%s8432_s1 + $0x340] sm:$0xff] }
  0x82   :  { %394 = vmatprep.mubr.f32.mxu0 %v8443_v0  ;;  %926 = vmatprep.mubr.f32.mxu1 %v8443_v0 }
  0x83   :  { %2016 = vmatprep.subr.mxu1 %v5774_v58  ;;  %v1237_v58 = vld [vmem:[%s8431_s0 + $0x22] sm:$0xff] }
  0x84   :  { %2017 = vmatpush1.msra.mxu1 %v5773_v59  ;;  %v5834_v59 = vld [vmem:[%s8432_s1 + $0x338] sm:$0xff] }
  0x85   :  { %5641 = vmatmul.mubr.msk.f32.gmra.mxu0 %vm149_vm0, %v107_v60  ;;  %2018 = vmatprep.subr.mxu1 %v5772_v61  ;;  %v5833_v60 = vld [vmem:[%s8432_s1 + $0x330] sm:$0xff]  ;;  %v1838_v61 = vld [vmem:[%s8431_s0 + $0x1b] sm:$0xff] }
  0x86   :  { %400 = vmatprep.mubr.f32.mxu0 %v8443_v0  ;;  %5696 = vmatmul.mubr.msk.f32.gmra.mxu1 %vm149_vm0, %v644_v62  ;;  %v5832_v62 = vld [vmem:[%s8432_s1 + $0x328] sm:$0xff] }
  0x87   :  { %932 = vmatprep.mubr.f32.mxu1 %v8443_v0  ;;  %2019 = vmatpush1.msra.mxu1 %v5771_v63  ;;  %v5831_v63 = vld [vmem:[%s8432_s1 + $0x320] sm:$0xff] }
  0x89   :  { %5642 = vmatmul.mubr.msk.f32.gmra.mxu0 %vm149_vm0, %v108_v1  ;;  %v1238_v1 = vld [vmem:[%s8431_s0 + $0x2a] sm:$0xff] }
  0x8a   :  { %406 = vmatprep.mubr.f32.mxu0 %v8443_v0  ;;  %5697 = vmatmul.mubr.msk.f32.gmra.mxu1 %vm149_vm0, %v645_v2  ;;  %v5830_v2 = vld [vmem:[%s8432_s1 + $0x318] sm:$0xff] }
  0x8b   :  { %938 = vmatprep.mubr.f32.mxu1 %v8443_v0 }
  0x8d   :  { %5643 = vmatmul.mubr.msk.f32.gmra.mxu0 %vm149_vm0, %v109_v3  ;;  %v5829_v3 = vld [vmem:[%s8432_s1 + $0x310] sm:$0xff] }
  0x8e   :  { %412 = vmatprep.mubr.f32.mxu0 %v8443_v0  ;;  %5698 = vmatmul.mubr.msk.f32.gmra.mxu1 %vm149_vm0, %v646_v4  ;;  %v1839_v4 = vld [vmem:[%s8431_s0 + $0x23] sm:$0xff] }
  0x8f   :  { %944 = vmatprep.mubr.f32.mxu1 %v8443_v0 }
  0x91   :  { %5644 = vmatmul.mubr.msk.f32.gmra.mxu0 %vm149_vm0, %v110_v5  ;;  %v5828_v5 = vld [vmem:[%s8432_s1 + $0x308] sm:$0xff] }
  0x92   :  { %418 = vmatprep.mubr.f32.mxu0 %v8443_v0  ;;  %5699 = vmatmul.mubr.msk.f32.gmra.mxu1 %vm149_vm0, %v647_v6  ;;  %v5827_v6 = vld [vmem:[%s8432_s1 + $0x300] sm:$0xff] }
  0x93   :  { %950 = vmatprep.mubr.f32.mxu1 %v8443_v0 }
  0x95   :  { %5645 = vmatmul.mubr.msk.f32.gmra.mxu0 %vm149_vm0, %v111_v7  ;;  %v1239_v7 = vld [vmem:[%s8431_s0 + $0x32] sm:$0xff] }
  0x96   :  { %424 = vmatprep.mubr.f32.mxu0 %v8443_v0  ;;  %5700 = vmatmul.mubr.msk.f32.gmra.mxu1 %vm149_vm0, %v648_v8  ;;  %v1840_v8 = vld [vmem:[%s8431_s0 + $0x2b] sm:$0xff] }
  0x97   :  { %956 = vmatprep.mubr.f32.mxu1 %v8443_v0 }
  0x99   :  { %5646 = vmatmul.mubr.msk.f32.gmra.mxu0 %vm149_vm0, %v112_v9  ;;  %v1240_v9 = vld [vmem:[%s8431_s0 + $0x3a] sm:$0xff] }
  0x9a   :  { %430 = vmatprep.mubr.f32.mxu0 %v8443_v0  ;;  %5701 = vmatmul.mubr.msk.f32.gmra.mxu1 %vm149_vm0, %v649_v10  ;;  %v1841_v10 = vld [vmem:[%s8431_s0 + $0x33] sm:$0xff] }
  0x9b   :  { %962 = vmatprep.mubr.f32.mxu1 %v8443_v0 }
  0x9d   :  { %5647 = vmatmul.mubr.msk.f32.gmra.mxu0 %vm149_vm0, %v113_v11  ;;  %v1241_v11 = vld [vmem:[%s8431_s0 + $0x42] sm:$0xff] }
  0x9e   :  { %436 = vmatprep.mubr.f32.mxu0 %v8443_v0  ;;  %5702 = vmatmul.mubr.msk.f32.gmra.mxu1 %vm149_vm0, %v650_v12  ;;  %v1842_v12 = vld [vmem:[%s8431_s0 + $0x3b] sm:$0xff] }
  0x9f   :  { %968 = vmatprep.mubr.f32.mxu1 %v8443_v0 }
  0xa1   :  { %5648 = vmatmul.mubr.msk.f32.gmra.mxu0 %vm149_vm0, %v114_v13  ;;  %v1242_v13 = vld [vmem:[%s8431_s0 + $0x4a] sm:$0xff] }
  0xa2   :  { %442 = vmatprep.mubr.f32.mxu0 %v8443_v0  ;;  %5703 = vmatmul.mubr.msk.f32.gmra.mxu1 %vm149_vm0, %v651_v14  ;;  %v1843_v14 = vld [vmem:[%s8431_s0 + $0x43] sm:$0xff] }
  0xa3   :  { %974 = vmatprep.mubr.f32.mxu1 %v8443_v0 }
  0xa5   :  { %5649 = vmatmul.mubr.msk.f32.gmra.mxu0 %vm149_vm0, %v115_v15  ;;  %v1243_v15 = vld [vmem:[%s8431_s0 + $0x52] sm:$0xff] }
  0xa6   :  { %448 = vmatprep.mubr.f32.mxu0 %v8443_v0  ;;  %5704 = vmatmul.mubr.msk.f32.gmra.mxu1 %vm149_vm0, %v652_v16  ;;  %v1844_v16 = vld [vmem:[%s8431_s0 + $0x4b] sm:$0xff] }
  0xa7   :  { %980 = vmatprep.mubr.f32.mxu1 %v8443_v0 }
  0xa9   :  { %5650 = vmatmul.mubr.msk.f32.gmra.mxu0 %vm149_vm0, %v116_v17  ;;  %v1244_v17 = vld [vmem:[%s8431_s0 + $0x5a] sm:$0xff] }
  0xaa   :  { %454 = vmatprep.mubr.f32.mxu0 %v8443_v0  ;;  %5705 = vmatmul.mubr.msk.f32.gmra.mxu1 %vm149_vm0, %v653_v18  ;;  %v1845_v18 = vld [vmem:[%s8431_s0 + $0x53] sm:$0xff] }
  0xab   :  { %986 = vmatprep.mubr.f32.mxu1 %v8443_v0 }
  0xad   :  { %5651 = vmatmul.mubr.msk.f32.gmra.mxu0 %vm149_vm0, %v117_v19  ;;  %v1245_v19 = vld [vmem:[%s8431_s0 + $0x62] sm:$0xff] }
  0xae   :  { %460 = vmatprep.mubr.f32.mxu0 %v8443_v0  ;;  %5706 = vmatmul.mubr.msk.f32.gmra.mxu1 %vm149_vm0, %v654_v20  ;;  %v1846_v20 = vld [vmem:[%s8431_s0 + $0x5b] sm:$0xff] }
  0xaf   :  { %992 = vmatprep.mubr.f32.mxu1 %v8443_v0 }
  0xb1   :  { %5652 = vmatmul.mubr.msk.f32.gmra.mxu0 %vm149_vm0, %v118_v21  ;;  %v1246_v21 = vld [vmem:[%s8431_s0 + $0x6a] sm:$0xff] }
  0xb2   :  { %466 = vmatprep.mubr.f32.mxu0 %v8443_v0  ;;  %5707 = vmatmul.mubr.msk.f32.gmra.mxu1 %vm149_vm0, %v655_v22  ;;  %v1847_v22 = vld [vmem:[%s8431_s0 + $0x63] sm:$0xff] }
  0xb3   :  { %998 = vmatprep.mubr.f32.mxu1 %v8443_v0 }
  0xb5   :  { %5653 = vmatmul.mubr.msk.f32.gmra.mxu0 %vm149_vm0, %v119_v23  ;;  %v1247_v23 = vld [vmem:[%s8431_s0 + $0x72] sm:$0xff] }
  0xb6   :  { %472 = vmatprep.mubr.f32.mxu0 %v8443_v0  ;;  %5708 = vmatmul.mubr.msk.f32.gmra.mxu1 %vm149_vm0, %v656_v24  ;;  %v1848_v24 = vld [vmem:[%s8431_s0 + $0x6b] sm:$0xff] }
  0xb7   :  { %1004 = vmatprep.mubr.f32.mxu1 %v8443_v0 }
  0xb9   :  { %5654 = vmatmul.mubr.msk.f32.gmra.mxu0 %vm149_vm0, %v120_v25  ;;  %v1248_v25 = vld [vmem:[%s8431_s0 + $0x7a] sm:$0xff] }
  0xba   :  { %478 = vmatprep.mubr.f32.mxu0 %v8443_v0  ;;  %5709 = vmatmul.mubr.msk.f32.gmra.mxu1 %vm149_vm0, %v657_v26  ;;  %v1849_v26 = vld [vmem:[%s8431_s0 + $0x73] sm:$0xff] }
  0xbb   :  { %1010 = vmatprep.mubr.f32.mxu1 %v8443_v0 }
  0xbd   :  { %5655 = vmatmul.mubr.msk.f32.gmra.mxu0 %vm149_vm0, %v121_v27  ;;  %v1249_v27 = vld [vmem:[%s8431_s0 + $0x82] sm:$0xff] }
  0xbe   :  { %484 = vmatprep.mubr.f32.mxu0 %v8443_v0  ;;  %5710 = vmatmul.mubr.msk.f32.gmra.mxu1 %vm149_vm0, %v658_v28  ;;  %v1850_v28 = vld [vmem:[%s8431_s0 + $0x7b] sm:$0xff] }
  0xbf   :  { %1016 = vmatprep.mubr.f32.mxu1 %v8443_v0 }
  0xc1   :  { %5656 = vmatmul.mubr.msk.f32.gmra.mxu0 %vm149_vm0, %v122_v29 }
  0xc2   :  { %490 = vmatprep.mubr.f32.mxu0 %v8443_v0  ;;  %5711 = vmatmul.mubr.msk.f32.gmra.mxu1 %vm149_vm0, %v659_v30  ;;  %v1250_v30 = vld [vmem:[%s8431_s0 + $0x8a] sm:$0xff] }
  0xc3   :  { %1022 = vmatprep.mubr.f32.mxu1 %v8443_v0 }
  0xc5   :  { %5657 = vmatmul.mubr.msk.f32.gmra.mxu0 %vm149_vm0, %v123_v31 }
  0xc6   :  { %496 = vmatprep.mubr.f32.mxu0 %v8443_v0  ;;  %5712 = vmatmul.mubr.msk.f32.gmra.mxu1 %vm149_vm0, %v660_v32  ;;  %v1851_v32 = vld [vmem:[%s8431_s0 + $0x83] sm:$0xff] }
  0xc7   :  { %1028 = vmatprep.mubr.f32.mxu1 %v8443_v0 }
  0xc9   :  { %5658 = vmatmul.mubr.msk.f32.gmra.mxu0 %vm149_vm0, %v124_v33 }
  0xca   :  { %1450 = vmatprep.mubr.f32.mxu0 %v8443_v0  ;;  %5713 = vmatmul.mubr.msk.f32.gmra.mxu1 %vm149_vm0, %v661_v34 }
  0xcb   :  { %1034 = vmatprep.mubr.f32.mxu1 %v8443_v0 }
  0xcd   :  { %5739 = vmatmul.mubr.msk.f32.vlgmr.msra.gmra.mxu0 %vm149_vm0, %v1233_v35  ;;  %v1251_v35 = vld [vmem:[%s8431_s0 + $0x92] sm:$0xff] }
  0xce   :  { %2599 = vmatpush1.msra.mxu0 %v5849_v36  ;;  %1456 = vmatprep.mubr.f32.mxu0 %v8443_v0 }
  0xcf   :  { %5714 = vmatmul.mubr.msk.f32.gmra.mxu1 %vm149_vm0, %v662_v37  ;;  %2600 = vmatprep.subr.mxu0 %v5848_v38 }
  0xd0   :  { %2052 = vmatprep.mubr.f32.mxu1 %v8443_v0  ;;  %2601 = vmatpush1.msra.mxu0 %v5847_v39  ;;  %v1852_v39 = vld [vmem:[%s8431_s0 + $0x8b] sm:$0xff] }
  0xd1   :  { %5740 = vmatmul.mubr.msk.f32.gmra.mxu0 %vm149_vm0, %v1234_v40  ;;  %2602 = vmatprep.subr.mxu0 %v5846_v41 }
  0xd2   :  { %1462 = vmatprep.mubr.f32.mxu0 %v8443_v0  ;;  %2603 = vmatpush1.msra.mxu0 %v5845_v42 }
  0xd3   :  { %5795 = vmatmul.mubr.msk.f32.vlgmr.msra.gmra.mxu1 %vm149_vm0, %v1835_v43  ;;  %2604 = vmatprep.subr.mxu0 %v5844_v44  ;;  %v1252_v43 = vld [vmem:[%s8431_s0 + $0x9a] sm:$0xff] }
  0xd4   :  { %2058 = vmatprep.mubr.f32.mxu1 %v8443_v0  ;;  %2605 = vmatpush1.msra.mxu0 %v5843_v45 }
  0xd5   :  { %5741 = vmatmul.mubr.msk.f32.gmra.mxu0 %vm149_vm0, %v1235_v46  ;;  %2606 = vmatprep.subr.mxu0 %v5842_v47  ;;  %v1853_v47 = vld [vmem:[%s8431_s0 + $0x93] sm:$0xff] }
  0xd6   :  { %1468 = vmatprep.mubr.f32.mxu0 %v8443_v0  ;;  %2607 = vmatpush1.msra.mxu0 %v5841_v48 }
  0xd7   :  { %5796 = vmatmul.mubr.msk.f32.gmra.mxu1 %vm149_vm0, %v1836_v49  ;;  %2608 = vmatprep.subr.mxu0 %v5840_v50 }
  0xd8   :  { %2064 = vmatprep.mubr.f32.mxu1 %v8443_v0  ;;  %2609 = vmatpush1.msra.mxu0 %v5839_v51  ;;  %v1253_v51 = vld [vmem:[%s8431_s0 + $0xa2] sm:$0xff] }
  0xd9   :  { %5742 = vmatmul.mubr.msk.f32.gmra.mxu0 %vm149_vm0, %v1236_v52  ;;  %2610 = vmatprep.subr.mxu0 %v5838_v53 }
  0xda   :  { %1474 = vmatprep.mubr.f32.mxu0 %v8443_v0  ;;  %2611 = vmatpush1.msra.mxu0 %v5837_v54 }
  0xdb   :  { %5797 = vmatmul.mubr.msk.f32.gmra.mxu1 %vm149_vm0, %v1837_v55  ;;  %2612 = vmatprep.subr.mxu0 %v5836_v56  ;;  %v1854_v55 = vld [vmem:[%s8431_s0 + $0x9b] sm:$0xff] }
  0xdc   :  { %2070 = vmatprep.mubr.f32.mxu1 %v8443_v0  ;;  %2613 = vmatpush1.msra.mxu0 %v5835_v57 }
  0xdd   :  { %5743 = vmatmul.mubr.msk.f32.gmra.mxu0 %vm149_vm0, %v1237_v58  ;;  %2614 = vmatprep.subr.mxu0 %v5834_v59  ;;  %v1254_v59 = vld [vmem:[%s8431_s0 + $0xaa] sm:$0xff] }
  0xde   :  { %1480 = vmatprep.mubr.f32.mxu0 %v8443_v0  ;;  %2615 = vmatpush1.msra.mxu0 %v5833_v60 }
  0xdf   :  { %5798 = vmatmul.mubr.msk.f32.gmra.mxu1 %vm149_vm0, %v1838_v61  ;;  %2616 = vmatprep.subr.mxu0 %v5832_v62 }
  0xe0   :  { %2076 = vmatprep.mubr.f32.mxu1 %v8443_v0  ;;  %2617 = vmatpush1.msra.mxu0 %v5831_v63  ;;  %v1855_v63 = vld [vmem:[%s8431_s0 + $0xa3] sm:$0xff] }
  0xe1   :  { %5744 = vmatmul.mubr.msk.f32.gmra.mxu0 %vm149_vm0, %v1238_v1  ;;  %2618 = vmatprep.subr.mxu0 %v5830_v2 }
  0xe2   :  { %1486 = vmatprep.mubr.f32.mxu0 %v8443_v0  ;;  %2619 = vmatpush1.msra.mxu0 %v5829_v3 }
  0xe3   :  { %5799 = vmatmul.mubr.msk.f32.gmra.mxu1 %vm149_vm0, %v1839_v4  ;;  %2620 = vmatprep.subr.mxu0 %v5828_v5  ;;  %v1255_v4 = vld [vmem:[%s8431_s0 + $0xb2] sm:$0xff] }
  0xe4   :  { %2082 = vmatprep.mubr.f32.mxu1 %v8443_v0  ;;  %2621 = vmatpush1.msra.mxu0 %v5827_v6 }
  0xe5   :  { %5745 = vmatmul.mubr.msk.f32.gmra.mxu0 %vm149_vm0, %v1239_v7 }
  0xe6   :  { %1492 = vmatprep.mubr.f32.mxu0 %v8443_v0 }
  0xe7   :  { %5800 = vmatmul.mubr.msk.f32.gmra.mxu1 %vm149_vm0, %v1840_v8  ;;  %v1856_v8 = vld [vmem:[%s8431_s0 + $0xab] sm:$0xff] }
  0xe8   :  { %2088 = vmatprep.mubr.f32.mxu1 %v8443_v0 }
  0xe9   :  { %5746 = vmatmul.mubr.msk.f32.gmra.mxu0 %vm149_vm0, %v1240_v9 }
  0xea   :  { %1498 = vmatprep.mubr.f32.mxu0 %v8443_v0 }
  0xeb   :  { %5801 = vmatmul.mubr.msk.f32.gmra.mxu1 %vm149_vm0, %v1841_v10 }
  0xec   :  { %2094 = vmatprep.mubr.f32.mxu1 %v8443_v0 }
  0xed   :  { %5747 = vmatmul.mubr.msk.f32.gmra.mxu0 %vm149_vm0, %v1241_v11 }
  0xee   :  { %1504 = vmatprep.mubr.f32.mxu0 %v8443_v0 }
  0xef   :  { %5802 = vmatmul.mubr.msk.f32.gmra.mxu1 %vm149_vm0, %v1842_v12  ;;  %v1256_v12 = vld [vmem:[%s8431_s0 + $0xba] sm:$0xff] }
  0xf0   :  { %2100 = vmatprep.mubr.f32.mxu1 %v8443_v0 }
  0xf1   :  { %5748 = vmatmul.mubr.msk.f32.gmra.mxu0 %vm149_vm0, %v1242_v13 }
  0xf2   :  { %1510 = vmatprep.mubr.f32.mxu0 %v8443_v0 }
  0xf3   :  { %5803 = vmatmul.mubr.msk.f32.gmra.mxu1 %vm149_vm0, %v1843_v14 }
  0xf4   :  { %2106 = vmatprep.mubr.f32.mxu1 %v8443_v0 }
  0xf5   :  { %5749 = vmatmul.mubr.msk.f32.gmra.mxu0 %vm149_vm0, %v1243_v15 }
  0xf6   :  { %1516 = vmatprep.mubr.f32.mxu0 %v8443_v0 }
  0xf7   :  { %5804 = vmatmul.mubr.msk.f32.gmra.mxu1 %vm149_vm0, %v1844_v16  ;;  %v1857_v16 = vld [vmem:[%s8431_s0 + $0xb3] sm:$0xff] }
  0xf8   :  { %2112 = vmatprep.mubr.f32.mxu1 %v8443_v0 }
  0xf9   :  { %5750 = vmatmul.mubr.msk.f32.gmra.mxu0 %vm149_vm0, %v1244_v17 }
  0xfa   :  { %1522 = vmatprep.mubr.f32.mxu0 %v8443_v0 }
  0xfb   :  { %5805 = vmatmul.mubr.msk.f32.gmra.mxu1 %vm149_vm0, %v1845_v18 }
  0xfc   :  { %2118 = vmatprep.mubr.f32.mxu1 %v8443_v0 }
  0xfd   :  { %5751 = vmatmul.mubr.msk.f32.gmra.mxu0 %vm149_vm0, %v1245_v19 }
  0xfe   :  { %1528 = vmatprep.mubr.f32.mxu0 %v8443_v0 }
  0xff   :  { %5806 = vmatmul.mubr.msk.f32.gmra.mxu1 %vm149_vm0, %v1846_v20  ;;  %v1257_v20 = vld [vmem:[%s8431_s0 + $0xc2] sm:$0xff] }
 0x100   :  { %2124 = vmatprep.mubr.f32.mxu1 %v8443_v0 }
 0x101   :  { %5752 = vmatmul.mubr.msk.f32.gmra.mxu0 %vm149_vm0, %v1246_v21 }
 0x102   :  { %1534 = vmatprep.mubr.f32.mxu0 %v8443_v0 }
 0x103   :  { %5807 = vmatmul.mubr.msk.f32.gmra.mxu1 %vm149_vm0, %v1847_v22 }
 0x104   :  { %2130 = vmatprep.mubr.f32.mxu1 %v8443_v0 }
 0x105   :  { %5753 = vmatmul.mubr.msk.f32.gmra.mxu0 %vm149_vm0, %v1247_v23 }
 0x106   :  { %1540 = vmatprep.mubr.f32.mxu0 %v8443_v0 }
 0x107   :  { %5808 = vmatmul.mubr.msk.f32.gmra.mxu1 %vm149_vm0, %v1848_v24  ;;  %v1858_v24 = vld [vmem:[%s8431_s0 + $0xbb] sm:$0xff] }
 0x108   :  { %2136 = vmatprep.mubr.f32.mxu1 %v8443_v0 }
 0x109   :  { %5754 = vmatmul.mubr.msk.f32.gmra.mxu0 %vm149_vm0, %v1248_v25 }
 0x10a   :  { %1546 = vmatprep.mubr.f32.mxu0 %v8443_v0 }
 0x10b   :  { %5809 = vmatmul.mubr.msk.f32.gmra.mxu1 %vm149_vm0, %v1849_v26 }
 0x10c   :  { %2142 = vmatprep.mubr.f32.mxu1 %v8443_v0 }
 0x10d   :  { %v312_v29 = vpop.f32.mrf.mxu0  ;;  %5755 = vmatmul.mubr.msk.f32.gmra.mxu0 %vm149_vm0, %v1249_v27 }
 0x10e   :  { %1552 = vmatprep.mubr.f32.mxu0 %v8443_v0 }
 0x10f   :  { %v314_v31 = vpop.f32.mrf.mxu0  ;;  %5810 = vmatmul.mubr.msk.f32.gmra.mxu1 %vm149_vm0, %v1850_v28  ;;  %v1258_v28 = vld [vmem:[%s8431_s0 + $0xca] sm:$0xff] }
 0x110   :  { %2148 = vmatprep.mubr.f32.mxu1 %v8443_v0  ;;  %v850_v34 = vpop.f32.mrf.mxu1 }
 0x111   :  { %v318_v33 = vpop.f32.mrf.mxu0  ;;  %5756 = vmatmul.mubr.msk.f32.gmra.mxu0 %vm149_vm0, %v1250_v30  ;;  %v1041_v37 = vadd.f32 %v850_v34, %v312_v29 }
 0x112   :  { %1558 = vmatprep.mubr.f32.mxu0 %v8443_v0  ;;  %v852_v38 = vpop.f32.mrf.mxu1 }
 0x113   :  { %v320_v36 = vpop.f32.mrf.mxu0  ;;  %5811 = vmatmul.mubr.msk.f32.gmra.mxu1 %vm149_vm0, %v1851_v32  ;;  %1105 = vst [vmem:[#allocation2 + $0xb0] sm:$0xff] %v1041_v37  ;;  %v1042_v41 = vadd.f32 %v852_v38, %v314_v31  ;;  %v1859_v32 = vld [vmem:[%s8431_s0 + $0xc3] sm:$0xff] }
 0x114   :  { %2154 = vmatprep.mubr.f32.mxu1 %v8443_v0  ;;  %v856_v42 = vpop.f32.mrf.mxu1 }
 0x115   :  { %v324_v40 = vpop.f32.mrf.mxu0  ;;  %5757 = vmatmul.mubr.msk.f32.gmra.mxu0 %vm149_vm0, %v1251_v35  ;;  %1106 = vst [vmem:[#allocation2 + $0x1b0] sm:$0xff] %v1042_v41  ;;  %v1043_v45 = vadd.f32 %v856_v42, %v318_v33 }
 0x116   :  { %1564 = vmatprep.mubr.f32.mxu0 %v8443_v0  ;;  %v858_v46 = vpop.f32.mrf.mxu1 }
 0x117   :  { %v326_v44 = vpop.f32.mrf.mxu0  ;;  %5812 = vmatmul.mubr.msk.f32.gmra.mxu1 %vm149_vm0, %v1852_v39  ;;  %1107 = vst [vmem:[#allocation2 + $0xd8] sm:$0xff] %v1043_v45  ;;  %v1044_v49 = vadd.f32 %v858_v46, %v320_v36  ;;  %v1259_v36 = vld [vmem:[%s8431_s0 + $0xd2] sm:$0xff] }
 0x118   :  { %2160 = vmatprep.mubr.f32.mxu1 %v8443_v0  ;;  %v862_v50 = vpop.f32.mrf.mxu1 }
 0x119   :  { %v330_v48 = vpop.f32.mrf.mxu0  ;;  %5758 = vmatmul.mubr.msk.f32.gmra.mxu0 %vm149_vm0, %v1252_v43  ;;  %1108 = vst [vmem:[#allocation2 + $0x18] sm:$0xff] %v1044_v49  ;;  %v7331_v53 = vadd.f32 %v862_v50, %v324_v40  ;;  %v1860_v40 = vld [vmem:[%s8431_s0 + $0xcb] sm:$0xff]  ;;  %v1260_v43 = vld [vmem:[%s8431_s0 + $0xda] sm:$0xff]  ;;  %v1261_v50 = vld [vmem:[%s8431_s0 + $0xe2] sm:$0xff] }
 0x11a   :  { %1570 = vmatprep.mubr.f32.mxu0 %v8443_v0  ;;  %v864_v54 = vpop.f32.mrf.mxu1 }
 0x11b   :  { %v332_v52 = vpop.f32.mrf.mxu0  ;;  %5813 = vmatmul.mubr.msk.f32.gmra.mxu1 %vm149_vm0, %v1853_v47  ;;  %v7339_v57 = vadd.f32 %v864_v54, %v326_v44  ;;  %v1861_v47 = vld [vmem:[%s8431_s0 + $0xd3] sm:$0xff] }
 0x11c   :  { %2166 = vmatprep.mubr.f32.mxu1 %v8443_v0  ;;  %v868_v58 = vpop.f32.mrf.mxu1 }
 0x11d   :  { %v336_v56 = vpop.f32.mrf.mxu0  ;;  %5759 = vmatmul.mubr.msk.f32.gmra.mxu0 %vm149_vm0, %v1253_v51  ;;  %v7345_v61 = vadd.f32 %v868_v58, %v330_v48 }
 0x11e   :  { %1576 = vmatprep.mubr.f32.mxu0 %v8443_v0  ;;  %v870_v62 = vpop.f32.mrf.mxu1 }
 0x11f   :  { %v338_v60 = vpop.f32.mrf.mxu0  ;;  %5814 = vmatmul.mubr.msk.f32.gmra.mxu1 %vm149_vm0, %v1854_v55  ;;  %v7353_v2 = vadd.f32 %v870_v62, %v332_v52  ;;  %v1862_v55 = vld [vmem:[%s8431_s0 + $0xdb] sm:$0xff] }
 0x120   :  { %2172 = vmatprep.mubr.f32.mxu1 %v8443_v0  ;;  %v874_v3 = vpop.f32.mrf.mxu1 }
 0x121   :  { %v342_v1 = vpop.f32.mrf.mxu0  ;;  %5760 = vmatmul.mubr.msk.f32.gmra.mxu0 %vm149_vm0, %v1254_v59  ;;  %v7359_v6 = vadd.f32 %v874_v3, %v336_v56  ;;  %v1262_v59 = vld [vmem:[%s8431_s0 + $0xea] sm:$0xff] }
 0x122   :  { %1582 = vmatprep.mubr.f32.mxu0 %v8443_v0  ;;  %v876_v7 = vpop.f32.mrf.mxu1 }
 0x123   :  { %v344_v5 = vpop.f32.mrf.mxu0  ;;  %5815 = vmatmul.mubr.msk.f32.gmra.mxu1 %vm149_vm0, %v1855_v63  ;;  %v7367_v10 = vadd.f32 %v876_v7, %v338_v60 }
 0x124   :  { %2178 = vmatprep.mubr.f32.mxu1 %v8443_v0  ;;  %v880_v11 = vpop.f32.mrf.mxu1 }
 0x125   :  { %v348_v9 = vpop.f32.mrf.mxu0  ;;  %5761 = vmatmul.mubr.msk.f32.gmra.mxu0 %vm149_vm0, %v1255_v4  ;;  %v7373_v14 = vadd.f32 %v880_v11, %v342_v1  ;;  %v1863_v1 = vld [vmem:[%s8431_s0 + $0xe3] sm:$0xff]  ;;  %v1864_v11 = vld [vmem:[%s8431_s0 + $0xeb] sm:$0xff] }
 0x126   :  { %1588 = vmatprep.mubr.f32.mxu0 %v8443_v0  ;;  %v882_v15 = vpop.f32.mrf.mxu1 }
 0x127   :  { %v350_v13 = vpop.f32.mrf.mxu0  ;;  %5816 = vmatmul.mubr.msk.f32.gmra.mxu1 %vm149_vm0, %v1856_v8  ;;  %v7381_v18 = vadd.f32 %v882_v15, %v344_v5  ;;  %v1263_v5 = vld [vmem:[%s8431_s0 + $0xf2] sm:$0xff]  ;;  %v1264_v15 = vld [vmem:[%s8431_s0 + $0xfa] sm:$0x3f] }
 0x128   :  { %2184 = vmatprep.mubr.f32.mxu1 %v8443_v0  ;;  %v886_v19 = vpop.f32.mrf.mxu1 }
 0x129   :  { %v354_v17 = vpop.f32.mrf.mxu0  ;;  %5762 = vmatmul.mubr.msk.f32.gmra.mxu0 %vm149_vm0, %v1256_v12  ;;  %v7387_v22 = vadd.f32 %v886_v19, %v348_v9 }
 0x12a   :  { %1594 = vmatprep.mubr.f32.mxu0 %v8443_v0  ;;  %v888_v23 = vpop.f32.mrf.mxu1 }
 0x12b   :  { %v356_v21 = vpop.f32.mrf.mxu0  ;;  %5817 = vmatmul.mubr.msk.f32.gmra.mxu1 %vm149_vm0, %v1857_v16  ;;  %v7395_v26 = vadd.f32 %v888_v23, %v350_v13 }
 0x12c   :  { %2190 = vmatprep.mubr.f32.mxu1 %v8443_v0  ;;  %v892_v27 = vpop.f32.mrf.mxu1 }
 0x12d   :  { %v360_v25 = vpop.f32.mrf.mxu0  ;;  %5763 = vmatmul.mubr.msk.f32.gmra.mxu0 %vm149_vm0, %v1257_v20  ;;  %v7403_v30 = vadd.f32 %v892_v27, %v354_v17  ;;  %v1865_v20 = vld [vmem:[%s8431_s0 + $0xf3] sm:$0xff] }
 0x12e   :  { %1600 = vmatprep.mubr.f32.mxu0 %v8443_v0  ;;  %v894_v31 = vpop.f32.mrf.mxu1 }
 0x12f   :  { %v7401_v29 = vpop.f32.mrf.mxu0  ;;  %5818 = vmatmul.mubr.msk.f32.gmra.mxu1 %vm149_vm0, %v1858_v24  ;;  %v7411_v34 = vadd.f32 %v894_v31, %v356_v21  ;;  %v2437_v24 = vld [vmem:[%s8431_s0 + $0x4] sm:$0xff]  ;;  %v1866_v31 = vld [vmem:[%s8431_s0 + $0xfb] sm:$0x1f] }
 0x130   :  { %2196 = vmatprep.mubr.f32.mxu1 %v8443_v0  ;;  %v898_v35 = vpop.f32.mrf.mxu1 }
 0x131   :  { %v366_v33 = vpop.f32.mrf.mxu0  ;;  %5764 = vmatmul.mubr.msk.f32.gmra.mxu0 %vm149_vm0, %v1258_v28  ;;  %v7419_v38 = vadd.f32 %v898_v35, %v360_v25  ;;  %v2438_v35 = vld [vmem:[%s8431_s0 + $0xc] sm:$0xff] }
 0x132   :  { %1606 = vmatprep.mubr.f32.mxu0 %v8443_v0  ;;  %v7422_v39 = vpop.f32.mrf.mxu1 }
 0x133   :  { %v7417_v37 = vpop.f32.mrf.mxu0  ;;  %5819 = vmatmul.mubr.msk.f32.gmra.mxu1 %vm149_vm0, %v1859_v32 }
 0x134   :  { %2202 = vmatprep.mubr.f32.mxu1 %v8443_v0  ;;  %v904_v42 = vpop.f32.mrf.mxu1 }
 0x135   :  { %v372_v41 = vpop.f32.mrf.mxu0  ;;  %5765 = vmatmul.mubr.msk.f32.gmra.mxu0 %vm149_vm0, %v1259_v36  ;;  %v7435_v45 = vadd.f32 %v904_v42, %v366_v33 }
 0x136   :  { %1612 = vmatprep.mubr.f32.mxu0 %v8443_v0  ;;  %v7438_v46 = vpop.f32.mrf.mxu1 }
 0x137   :  { %v7433_v44 = vpop.f32.mrf.mxu0  ;;  %5820 = vmatmul.mubr.msk.f32.gmra.mxu1 %vm149_vm0, %v1860_v40 }
 0x138   :  { %2208 = vmatprep.mubr.f32.mxu1 %v8443_v0  ;;  %v910_v49 = vpop.f32.mrf.mxu1 }
 0x139   :  { %v378_v48 = vpop.f32.mrf.mxu0  ;;  %5766 = vmatmul.mubr.msk.f32.gmra.mxu0 %vm149_vm0, %v1260_v43  ;;  %v7451_v52 = vadd.f32 %v910_v49, %v372_v41 }
 0x13a   :  { %1618 = vmatprep.mubr.f32.mxu0 %v8443_v0  ;;  %v7454_v54 = vpop.f32.mrf.mxu1 }
 0x13b   :  { %v7449_v51 = vpop.f32.mrf.mxu0  ;;  %5821 = vmatmul.mubr.msk.f32.gmra.mxu1 %vm149_vm0, %v1861_v47  ;;  %v2439_v47 = vld [vmem:[%s8431_s0 + $0x14] sm:$0xff] }
 0x13c   :  { %2214 = vmatprep.mubr.f32.mxu1 %v8443_v0  ;;  %v916_v58 = vpop.f32.mrf.mxu1 }
 0x13d   :  { %v384_v56 = vpop.f32.mrf.mxu0  ;;  %5767 = vmatmul.mubr.msk.f32.gmra.mxu0 %vm149_vm0, %v1261_v50  ;;  %v7467_v62 = vadd.f32 %v916_v58, %v378_v48  ;;  %v2440_v58 = vld [vmem:[%s8431_s0 + $0x1c] sm:$0xff] }
 0x13e   :  { %1624 = vmatprep.mubr.f32.mxu0 %v8443_v0  ;;  %v7470_v63 = vpop.f32.mrf.mxu1 }
 0x13f   :  { %v7465_v60 = vpop.f32.mrf.mxu0  ;;  %5822 = vmatmul.mubr.msk.f32.gmra.mxu1 %vm149_vm0, %v1862_v55 }
 0x140   :  { %2220 = vmatprep.mubr.f32.mxu1 %v8443_v0 }
 0x141   :  { %v390_v3 = vpop.f32.mrf.mxu0  ;;  %5768 = vmatmul.mubr.msk.f32.gmra.mxu0 %vm149_vm0, %v1262_v59  ;;  %v922_v4 = vpop.f32.mrf.mxu1 }
 0x142   :  { %1630 = vmatprep.mubr.f32.mxu0 %v8443_v0  ;;  %v7483_v8 = vadd.f32 %v922_v4, %v384_v56 }
 0x143   :  { %v7481_v7 = vpop.f32.mrf.mxu0  ;;  %5823 = vmatmul.mubr.msk.f32.gmra.mxu1 %vm149_vm0, %v1863_v1  ;;  %v7486_v9 = vpop.f32.mrf.mxu1 }
 0x144   :  { %2226 = vmatprep.mubr.f32.mxu1 %v8443_v0 }
 0x145   :  { %v396_v12 = vpop.f32.mrf.mxu0  ;;  %5769 = vmatmul.mubr.msk.f32.gmra.mxu0 %vm149_vm0, %v1263_v5 }
 0x146   :  { %1636 = vmatprep.mubr.f32.mxu0 %v8443_v0  ;;  %v928_v13 = vpop.f32.mrf.mxu1 }
 0x147   :  { %v7497_v16 = vpop.f32.mrf.mxu0  ;;  %v7499_v17 = vadd.f32 %v928_v13, %v390_v3  ;;  %5824 = vmatmul.mubr.msk.f32.gmra.mxu1 %vm149_vm0, %v1864_v11  ;;  %v2441_v11 = vld [vmem:[%s8431_s0 + $0x24] sm:$0xff] }
 0x148   :  { %v7502_v19 = vpop.f32.mrf.mxu1  ;;  %2232 = vmatprep.mubr.f32.mxu1 %v8443_v0 }
 0x149   :  { %v402_v21 = vpop.f32.mrf.mxu0  ;;  %5770 = vmatmul.mubr.msk.f32.gmra.mxu0 %vm149_vm0, %v1264_v15 }
 0x14a   :  { %2654 = vmatprep.mubr.f32.mxu0 %v8443_v0  ;;  %v934_v23 = vpop.f32.mrf.mxu1 }
 0x14b   :  { %v7513_v25 = vpop.f32.mrf.mxu0  ;;  %v7515_v27 = vadd.f32 %v934_v23, %v396_v12  ;;  %5825 = vmatmul.mubr.msk.f32.gmra.mxu1 %vm149_vm0, %v1865_v20  ;;  %v2442_v23 = vld [vmem:[%s8431_s0 + $0x2c] sm:$0xff] }
 0x14c   :  { %v7518_v28 = vpop.f32.mrf.mxu1  ;;  %2238 = vmatprep.mubr.f32.mxu1 %v8443_v0 }
 0x14d   :  { %v408_v32 = vpop.f32.mrf.mxu0  ;;  %5851 = vmatmul.mubr.msk.f32.vlgmr.msra.gmra.mxu0 %vm149_vm0, %v2437_v24 }
 0x14e   :  { %2660 = vmatprep.mubr.f32.mxu0 %v8443_v0  ;;  %v940_v33 = vpop.f32.mrf.mxu1 }
 0x14f   :  { %v7529_v36 = vpop.f32.mrf.mxu0  ;;  %v7531_v40 = vadd.f32 %v940_v33, %v402_v21  ;;  %5826 = vmatmul.mubr.msk.f32.gmra.mxu1 %vm149_vm0, %v1866_v31 }
 0x150   :  { %v7534_v41 = vpop.f32.mrf.mxu1  ;;  %3430 = vmatprep.mubr.f32.mxu1 %v8443_v0 }
 0x151   :  { %v414_v42 = vpop.f32.mrf.mxu0  ;;  %5852 = vmatmul.mubr.msk.f32.gmra.mxu0 %vm149_vm0, %v2438_v35 }
 0x152   :  { %2666 = vmatprep.mubr.f32.mxu0 %v8443_v0  ;;  %v946_v43 = vpop.f32.mrf.mxu1 }
 0x153   :  { %v7542_v48 = vpop.f32.mrf.mxu0  ;;  %v7544_v49 = vadd.f32 %v946_v43, %v408_v32 }
 0x154   :  { %v7546_v50 = vpop.f32.mrf.mxu1 }
 0x155   :  { %v420_v55 = vpop.f32.mrf.mxu0  ;;  %5853 = vmatmul.mubr.msk.f32.gmra.mxu0 %vm149_vm0, %v2439_v47 }
 0x156   :  { %2672 = vmatprep.mubr.f32.mxu0 %v8443_v0  ;;  %v952_v56 = vpop.f32.mrf.mxu1 }
 0x157   :  { %v7553_v59 = vpop.f32.mrf.mxu0  ;;  %v7555_v1 = vadd.f32 %v952_v56, %v414_v42  ;;  %v2443_v42 = vld [vmem:[%s8431_s0 + $0x34] sm:$0xff] }
 0x158   :  { %8446 = vst [vmem:[#allocation16_spill] sm:$0xff] %v7553_v59  ;;  %v7557_v3 = vpop.f32.mrf.mxu1  ;;  %v8467_v59 = vmov 0.0  }
 0x159   :  { %v426_v4 = vpop.f32.mrf.mxu0  ;;  %5854 = vmatmul.mubr.msk.f32.gmra.mxu0 %vm149_vm0, %v2440_v58 }
 0x15a   :  { %2678 = vmatprep.mubr.f32.mxu0 %v8443_v0  ;;  %v958_v5 = vpop.f32.mrf.mxu1 }
 0x15b   :  { %v7564_v12 = vpop.f32.mrf.mxu0  ;;  %v7566_v13 = vadd.f32 %v958_v5, %v420_v55 }
 0x15c   :  { %8447 = vst [vmem:[#allocation17_spill] sm:$0xff] %v7564_v12  ;;  %v7568_v15 = vpop.f32.mrf.mxu1 }
 0x15d   :  { %8448 = vst [vmem:[#allocation18_spill] sm:$0xff] %v7566_v13  ;;  %8449 = vst [vmem:[#allocation19_spill] sm:$0xff] %v7568_v15  ;;  %v432_v20 = vpop.f32.mrf.mxu0  ;;  %5855 = vmatmul.mubr.msk.f32.gmra.mxu0 %vm149_vm0, %v2441_v11 }
 0x15e   :  { %2684 = vmatprep.mubr.f32.mxu0 %v8443_v0  ;;  %v964_v21 = vpop.f32.mrf.mxu1 }
 0x15f   :  { %v7575_v24 = vpop.f32.mrf.mxu0  ;;  %v7577_v31 = vadd.f32 %v964_v21, %v426_v4  ;;  %v2444_v4 = vld [vmem:[%s8431_s0 + $0x3c] sm:$0xff] }
 0x160   :  { %8450 = vst [vmem:[#allocation20_spill] sm:$0xff] %v7575_v24  ;;  %v7579_v32 = vpop.f32.mrf.mxu1 }
 0x161   :  { %8451 = vst [vmem:[#allocation21_spill] sm:$0xff] %v7577_v31  ;;  %8452 = vst [vmem:[#allocation22_spill] sm:$0xff] %v7579_v32  ;;  %v438_v33 = vpop.f32.mrf.mxu0  ;;  %5856 = vmatmul.mubr.msk.f32.gmra.mxu0 %vm149_vm0, %v2442_v23 }
 0x162   :  { %2690 = vmatprep.mubr.f32.mxu0 %v8443_v0  ;;  %v970_v35 = vpop.f32.mrf.mxu1 }
 0x163   :  { %v7586_v43 = vpop.f32.mrf.mxu0  ;;  %v7588_v47 = vadd.f32 %v970_v35, %v432_v20  ;;  %v2445_v35 = vld [vmem:[%s8431_s0 + $0x44] sm:$0xff] }
 0x164   :  { %8453 = vst [vmem:[#allocation23_spill] sm:$0xff] %v7586_v43  ;;  %v7590_v55 = vpop.f32.mrf.mxu1 }
 0x165   :  { %8454 = vst [vmem:[#allocation24_spill] sm:$0xff] %v7588_v47  ;;  %8455 = vst [vmem:[#allocation25_spill] sm:$0xff] %v7590_v55  ;;  %v444_v56 = vpop.f32.mrf.mxu0  ;;  %5857 = vmatmul.mubr.msk.f32.gmra.mxu0 %vm149_vm0, %v2443_v42 }
 0x166   :  { %2696 = vmatprep.mubr.f32.mxu0 %v8443_v0  ;;  %v976_v58 = vpop.f32.mrf.mxu1 }
 0x167   :  { %v7597_v5 = vpop.f32.mrf.mxu0  ;;  %v7599_v11 = vadd.f32 %v976_v58, %v438_v33 }
 0x168   :  { %8456 = vst [vmem:[#allocation26_spill] sm:$0xff] %v7597_v5  ;;  %v7601_v21 = vpop.f32.mrf.mxu1 }
 0x169   :  { %8457 = vst [vmem:[#allocation27_spill] sm:$0xff] %v7599_v11  ;;  %8458 = vst [vmem:[#allocation28_spill] sm:$0xff] %v7601_v21  ;;  %v450_v20 = vpop.f32.mrf.mxu0  ;;  %5858 = vmatmul.mubr.msk.f32.gmra.mxu0 %vm149_vm0, %v2444_v4  ;;  %v2446_v4 = vld [vmem:[%s8431_s0 + $0x4c] sm:$0xff] }
 0x16a   :  { %2702 = vmatprep.mubr.f32.mxu0 %v8443_v0  ;;  %v982_v23 = vpop.f32.mrf.mxu1 }
 0x16b   :  { %v7608_v42 = vpop.f32.mrf.mxu0  ;;  %v7610_v43 = vadd.f32 %v982_v23, %v444_v56 }
 0x16c   :  { %8459 = vst [vmem:[#allocation29_spill] sm:$0xff] %v7608_v42  ;;  %v7612_v47 = vpop.f32.mrf.mxu1  ;;  %v3365_v42 = vld [vmem:[#allocation6 + $0xf8] sm:$0xff] }
 0x16d   :  { %8460 = vst [vmem:[#allocation30_spill] sm:$0xff] %v7610_v43  ;;  %8461 = vst [vmem:[#allocation31_spill] sm:$0xff] %v7612_v47  ;;  %v456_v33 = vpop.f32.mrf.mxu0  ;;  %5859 = vmatmul.mubr.msk.f32.gmra.mxu0 %vm149_vm0, %v2445_v35  ;;  %v2447_v35 = vld [vmem:[%s8431_s0 + $0x54] sm:$0xff]  ;;  %3366 = vmatprep.subr.mxu1 %v3365_v42 }
 0x16e   :  { %2708 = vmatprep.mubr.f32.mxu0 %v8443_v0  ;;  %v988_v58 = vpop.f32.mrf.mxu1 }
 0x16f   :  { %v7619_v5 = vpop.f32.mrf.mxu0  ;;  %v7621_v11 = vadd.f32 %v988_v58, %v450_v20  ;;  %v3364_v20 = vld [vmem:[#allocation6 + $0xf0] sm:$0xff] }
 0x170   :  { %8462 = vst [vmem:[#allocation32_spill] sm:$0xff] %v7619_v5  ;;  %v7623_v21 = vpop.f32.mrf.mxu1  ;;  %3367 = vmatpush1.msra.mxu1 %v3364_v20  ;;  %v3363_v20 = vld [vmem:[#allocation6 + $0xe8] sm:$0xff] }
 0x171   :  { %8463 = vst [vmem:[#allocation33_spill] sm:$0xff] %v7621_v11  ;;  %8464 = vst [vmem:[#allocation34_spill] sm:$0xff] %v7623_v21  ;;  %v462_v56 = vpop.f32.mrf.mxu0  ;;  %5860 = vmatmul.mubr.msk.f32.gmra.mxu0 %vm149_vm0, %v2446_v4  ;;  %v2448_v11 = vld [vmem:[%s8431_s0 + $0x5c] sm:$0xff]  ;;  %3368 = vmatprep.subr.mxu1 %v3363_v20 }
 0x172   :  { %2714 = vmatprep.mubr.f32.mxu0 %v8443_v0  ;;  %v994_v23 = vpop.f32.mrf.mxu1 }
 0x173   :  { %v464_v43 = vpop.f32.mrf.mxu0  ;;  %v7630_v47 = vadd.f32 %v994_v23, %v456_v33 }
 0x174   :  { %v7632_v5 = vpop.f32.mrf.mxu1 }
 0x175   :  { %8465 = vst [vmem:[#allocation35_spill] sm:$0xff] %v7630_v47  ;;  %8466 = vst [vmem:[#allocation36_spill] sm:$0xff] %v7632_v5  ;;  %v468_v58 = vpop.f32.mrf.mxu0  ;;  %5861 = vmatmul.mubr.msk.f32.gmra.mxu0 %vm149_vm0, %v2447_v35  ;;  %v2449_v35 = vld [vmem:[%s8431_s0 + $0x64] sm:$0xff] }
 0x176   :  { %2720 = vmatprep.mubr.f32.mxu0 %v8443_v0  ;;  %v1000_v4 = vpop.f32.mrf.mxu1 }
 0x177   :  { %v470_v21 = vpop.f32.mrf.mxu0  ;;  %v1091_v55 = vadd.f32 %v1000_v4, %v462_v56  ;;  %v3362_v56 = vld [vmem:[#allocation6 + $0xe0] sm:$0xff] }
 0x178   :  { %v1002_v24 = vpop.f32.mrf.mxu1  ;;  %3369 = vmatpush1.msra.mxu1 %v3362_v56 }
 0x179   :  { %v474_v33 = vpop.f32.mrf.mxu0  ;;  %1155 = vst [vmem:[#allocation2 + $0xa8] sm:$0xff] %v1091_v55  ;;  %5862 = vmatmul.mubr.msk.f32.gmra.mxu0 %vm149_vm0, %v2448_v11  ;;  %v1092_v42 = vadd.f32 %v1002_v24, %v464_v43  ;;  %v2450_v43 = vld [vmem:[%s8431_s0 + $0x6c] sm:$0xff] }
 0x17a   :  { %2726 = vmatprep.mubr.f32.mxu0 %v8443_v0  ;;  %v1006_v23 = vpop.f32.mrf.mxu1 }
 0x17b   :  { %v476_v47 = vpop.f32.mrf.mxu0  ;;  %1156 = vst [vmem:[#allocation2 + $0x1c8] sm:$0xff] %v1092_v42  ;;  %v1093_v5 = vadd.f32 %v1006_v23, %v468_v58 }
 0x17c   :  { %v1008_v31 = vpop.f32.mrf.mxu1 }
 0x17d   :  { %v480_v4 = vpop.f32.mrf.mxu0  ;;  %1157 = vst [vmem:[#allocation2 + $0x170] sm:$0xff] %v1093_v5  ;;  %5863 = vmatmul.mubr.msk.f32.gmra.mxu0 %vm149_vm0, %v2449_v35  ;;  %v1094_v55 = vadd.f32 %v1008_v31, %v470_v21  ;;  %v2451_v21 = vld [vmem:[%s8431_s0 + $0x74] sm:$0xff] }
 0x17e   :  { %2732 = vmatprep.mubr.f32.mxu0 %v8443_v0  ;;  %v1012_v24 = vpop.f32.mrf.mxu1  ;;  %v3361_v35 = vld [vmem:[#allocation6 + $0xd8] sm:$0xff] }
 0x17f   :  { %v482_v11 = vpop.f32.mrf.mxu0  ;;  %1158 = vst [vmem:[#allocation2 + $0x178] sm:$0xff] %v1094_v55  ;;  %v1095_v42 = vadd.f32 %v1012_v24, %v474_v33  ;;  %3370 = vmatprep.subr.mxu1 %v3361_v35  ;;  %v3360_v33 = vld [vmem:[#allocation6 + $0xd0] sm:$0xff] }
 0x180   :  { %v1014_v58 = vpop.f32.mrf.mxu1  ;;  %3371 = vmatpush1.msra.mxu1 %v3360_v33 }
 0x181   :  { %v486_v23 = vpop.f32.mrf.mxu0  ;;  %1159 = vst [vmem:[#allocation2 + $0x68] sm:$0xff] %v1095_v42  ;;  %5864 = vmatmul.mubr.msk.f32.gmra.mxu0 %vm149_vm0, %v2450_v43  ;;  %v1096_v5 = vadd.f32 %v1014_v58, %v476_v47  ;;  %v2452_v42 = vld [vmem:[%s8431_s0 + $0x7c] sm:$0xff] }
 0x182   :  { %2738 = vmatprep.mubr.f32.mxu0 %v8443_v0  ;;  %v1018_v31 = vpop.f32.mrf.mxu1 }
 0x183   :  { %v488_v20 = vpop.f32.mrf.mxu0  ;;  %1160 = vst [vmem:[#allocation2 + $0x190] sm:$0xff] %v1096_v5  ;;  %v1097_v56 = vadd.f32 %v1018_v31, %v480_v4 }
 0x184   :  { %v1020_v55 = vpop.f32.mrf.mxu1 }
 0x185   :  { %v492_v24 = vpop.f32.mrf.mxu0  ;;  %1161 = vst [vmem:[#allocation2 + $0x198] sm:$0xff] %v1097_v56  ;;  %5865 = vmatmul.mubr.msk.f32.gmra.mxu0 %vm149_vm0, %v2451_v21  ;;  %v1098_v43 = vadd.f32 %v1020_v55, %v482_v11  ;;  %v2453_v21 = vld [vmem:[%s8431_s0 + $0x84] sm:$0xff] }
 0x186   :  { %2744 = vmatprep.mubr.f32.mxu0 %v8443_v0  ;;  %v1024_v47 = vpop.f32.mrf.mxu1 }
 0x187   :  { %v494_v58 = vpop.f32.mrf.mxu0  ;;  %1162 = vst [vmem:[#allocation2 + $0x38] sm:$0xff] %v1098_v43  ;;  %v1099_v5 = vadd.f32 %v1024_v47, %v486_v23  ;;  %v3359_v23 = vld [vmem:[#allocation6 + $0xc8] sm:$0xff] }
 0x188   :  { %v1026_v4 = vpop.f32.mrf.mxu1  ;;  %3372 = vmatprep.subr.mxu1 %v3359_v23  ;;  %v3357_v23 = vld [vmem:[#allocation6 + $0xb8] sm:$0xff] }
 0x189   :  { %v498_v31 = vpop.f32.mrf.mxu0  ;;  %1163 = vst [vmem:[#allocation2 + $0xc0] sm:$0xff] %v1099_v5  ;;  %5866 = vmatmul.mubr.msk.f32.gmra.mxu0 %vm149_vm0, %v2452_v42  ;;  %v1100_v35 = vadd.f32 %v1026_v4, %v488_v20  ;;  %v2454_v20 = vld [vmem:[%s8431_s0 + $0x8c] sm:$0xff]  ;;  %v3358_v42 = vld [vmem:[#allocation6 + $0xc0] sm:$0xff] }
 0x18a   :  { %565 = vst [vmem:[#allocation2 + $0x58] sm:$0xff] %v498_v31  ;;  %2750 = vmatprep.mubr.f32.mxu0 %v8443_v0  ;;  %v1030_v11 = vpop.f32.mrf.mxu1  ;;  %v1169_v5 = vld [vmem:[#allocation2 + $0xb0] sm:$0xff]  ;;  %3373 = vmatpush1.msra.mxu1 %v3358_v42 }
 0x18b   :  { %v500_v56 = vpop.f32.mrf.mxu0  ;;  %1164 = vst [vmem:[#allocation2 + $0x1c0] sm:$0xff] %v1100_v35  ;;  %v1101_v55 = vadd.f32 %v1030_v11, %v492_v24  ;;  %v1170_v35 = vld [vmem:[#allocation2 + $0x1b0] sm:$0xff]  ;;  %3374 = vmatprep.subr.mxu1 %v3357_v23 }
 0x18c   :  { %566 = vst [vmem:[#allocation2 + $0xa0] sm:$0xff] %v500_v56  ;;  %v1032_v33 = vpop.f32.mrf.mxu1 }
 0x18d   :  { %1165 = vst [vmem:[#allocation2 + $0x158] sm:$0xff] %v1101_v55  ;;  %v1452_v43 = vpop.f32.mrf.mxu0  ;;  %5867 = vmatmul.mubr.msk.f32.gmra.mxu0 %vm149_vm0, %v2453_v21  ;;  %v1102_v47 = vadd.f32 %v1032_v33, %v494_v58  ;;  %v2455_v33 = vld [vmem:[%s8431_s0 + $0x94] sm:$0xff] }
 0x18e   :  { %2756 = vmatprep.mubr.f32.mxu0 %v8443_v0  ;;  %v1643_v31 = vadd.f32 %v1452_v43, %v1169_v5  ;;  %v3356_v43 = vld [vmem:[#allocation6 + $0xb0] sm:$0xff] }
 0x18f   :  { %1166 = vst [vmem:[#allocation2 + $0x10] sm:$0xff] %v1102_v47  ;;  %v1454_v4 = vpop.f32.mrf.mxu0  ;;  %v1036_v24 = vpop.f32.mrf.mxu1  ;;  %v1171_v47 = vld [vmem:[#allocation2 + $0xd8] sm:$0xff]  ;;  %3375 = vmatpush1.msra.mxu1 %v3356_v43 }
 0x190   :  { %v1644_v21 = vadd.f32 %v1454_v4, %v1170_v35  ;;  %v3355_v4 = vld [vmem:[#allocation6 + $0xa8] sm:$0xff] }
 0x191   :  { %v629_v11 = vld [vmem:[#allocation2 + $0x58] sm:$0x7f]  ;;  %v1458_v56 = vpop.f32.mrf.mxu0  ;;  %5868 = vmatmul.mubr.msk.f32.gmra.mxu0 %vm149_vm0, %v2454_v20  ;;  %v1038_v58 = vpop.f32.mrf.mxu1  ;;  %3376 = vmatprep.subr.mxu1 %v3355_v4 }
 0x192   :  { %v1103_v55 = vadd.f32 %v1036_v24, %v629_v11  ;;  %2762 = vmatprep.mubr.f32.mxu0 %v8443_v0  ;;  %v1645_v5 = vadd.f32 %v1458_v56, %v1171_v47  ;;  %v1172_v24 = vld [vmem:[#allocation2 + $0x18] sm:$0xff]  ;;  %v3354_v0 = vld [vmem:[#allocation6 + $0xa0] sm:$0xff] }
 0x193   :  { %v630_v32 = vld [vmem:[#allocation2 + $0xa0] sm:$0x7f]  ;;  %v1460_v12 = vpop.f32.mrf.mxu0  ;;  %v2054_v42 = vpop.f32.mrf.mxu1  ;;  %3377 = vmatpush1.msra.mxu1 %v3354_v0 }
 0x194   :  { %1167 = vst [vmem:[#allocation2 + $0x58] sm:$0x7f] %v1103_v55  ;;  %v1104_v13 = vadd.f32 %v1038_v58, %v630_v32  ;;  %v2245_v20 = vadd.f32 %v2054_v42, %v1643_v31  ;;  %v1646_v15 = vadd.f32 %v1460_v12, %v1172_v24  ;;  %v2456_v32 = vld [vmem:[%s8431_s0 + $0x9c] sm:$0xff]  ;;  %v3352_v55 = vld [vmem:[#allocation6 + $0x90] sm:$0xff]  ;;  %v3351_v12 = vld [vmem:[#allocation6 + $0x88] sm:$0xff] }
 0x195   :  { %v1464_v35 = vpop.f32.mrf.mxu0  ;;  %5869 = vmatmul.mubr.msk.f32.gmra.mxu0 %vm149_vm0, %v2455_v33  ;;  %v2056_v11 = vpop.f32.mrf.mxu1  ;;  %v3353_v31 = vld [vmem:[#allocation6 + $0x98] sm:$0xff]  ;;  %v3350_v42 = vld [vmem:[#allocation6 + $0x80] sm:$0xff] }
 0x196   :  { %1168 = vst [vmem:[#allocation2 + $0xa0] sm:$0x7f] %v1104_v13  ;;  %2309 = vst [vmem:[#allocation2 + $0xb0] sm:$0xff] %v2245_v20  ;;  %2768 = vmatprep.mubr.f32.mxu0 %v8467_v59  ;;  %v2246_v23 = vadd.f32 %v2056_v11, %v1644_v21  ;;  %3378 = vmatprep.subr.mxu1 %v3353_v31  ;;  %v1647_v33 = vadd.f32 %v1464_v35, %v7331_v53  ;;  %v2457_v53 = vld [vmem:[%s8431_s0 + $0xa4] sm:$0xff]  ;;  %v3945_v20 = vld [vmem:[#allocation6 + $0x2f8] sm:$0xff] }
 0x197   :  { %v1466_v56 = vpop.f32.mrf.mxu0  ;;  %v2060_v58 = vpop.f32.mrf.mxu1  ;;  %3379 = vmatpush1.msra.mxu1 %v3352_v55  ;;  %3946 = vmatprep.subr.mxu0 %v3945_v20  ;;  %v3944_v35 = vld [vmem:[#allocation6 + $0x2f0] sm:$0xff] }
 0x198   :  { %2310 = vst [vmem:[#allocation2 + $0x1b0] sm:$0xff] %v2246_v23  ;;  %v2247_v47 = vadd.f32 %v2060_v58, %v1645_v5  ;;  %3380 = vmatprep.subr.mxu1 %v3351_v12  ;;  %v1648_v43 = vadd.f32 %v1466_v56, %v7339_v57  ;;  %v3349_v5 = vld [vmem:[#allocation6 + $0x78] sm:$0xff]  ;;  %v3348_v11 = vld [vmem:[#allocation6 + $0x70] sm:$0xff]  ;;  %3947 = vmatpush1.msra.mxu0 %v3944_v35  ;;  %v3942_v58 = vld [vmem:[#allocation6 + $0x2e0] sm:$0xff] }
 0x199   :  { %v1470_v13 = vpop.f32.mrf.mxu0  ;;  %5870 = vmatmul.mubr.msk.f32.gmra.mxu0 %vm149_vm0, %v2456_v32  ;;  %v2062_v21 = vpop.f32.mrf.mxu1  ;;  %3381 = vmatpush1.msra.mxu1 %v3350_v42  ;;  %v3943_v32 = vld [vmem:[#allocation6 + $0x2e8] sm:$0xff]  ;;  %v3346_v12 = vld [vmem:[#allocation6 + $0x60] sm:$0xff]  ;;  %v3940_v42 = vld [vmem:[#allocation6 + $0x2d0] sm:$0xff] }
 0x19a   :  { %2311 = vst [vmem:[#allocation2 + $0xd8] sm:$0xff] %v2247_v47  ;;  %2774 = vmatprep.mubr.f32.mxu0 %v8467_v59  ;;  %v2248_v0 = vadd.f32 %v2062_v21, %v1646_v15  ;;  %3382 = vmatprep.subr.mxu1 %v3349_v5  ;;  %v1649_v23 = vadd.f32 %v1470_v13, %v7345_v61  ;;  %v3347_v15 = vld [vmem:[#allocation6 + $0x68] sm:$0xff] }
 0x19b   :  { %v1472_v4 = vpop.f32.mrf.mxu0  ;;  %v2066_v24 = vpop.f32.mrf.mxu1  ;;  %3383 = vmatpush1.msra.mxu1 %v3348_v11  ;;  %3948 = vmatprep.subr.mxu0 %v3943_v32  ;;  %v2458_v61 = vld [vmem:[%s8431_s0 + $0xac] sm:$0xff] }
 0x19c   :  { %2312 = vst [vmem:[#allocation2 + $0x18] sm:$0xff] %v2248_v0  ;;  %v2249_v57 = vadd.f32 %v2066_v24, %v1647_v33  ;;  %v1650_v55 = vadd.f32 %v1472_v4, %v7353_v2  ;;  %3949 = vmatpush1.msra.mxu0 %v3942_v58  ;;  %v3941_v33 = vld [vmem:[#allocation6 + $0x2d8] sm:$0xff]  ;;  %3384 = vmatprep.subr.mxu1 %v3347_v15  ;;  %v3938_v4 = vld [vmem:[#allocation6 + $0x2c0] sm:$0xff]  ;;  %v3344_v24 = vld [vmem:[#allocation6 + $0x50] sm:$0xff] }
 0x19d   :  { %v1476_v31 = vpop.f32.mrf.mxu0  ;;  %5871 = vmatmul.mubr.msk.f32.gmra.mxu0 %vm149_vm0, %v2457_v53  ;;  %v2068_v56 = vpop.f32.mrf.mxu1  ;;  %3950 = vmatprep.subr.mxu0 %v3941_v33  ;;  %v3939_v53 = vld [vmem:[#allocation6 + $0x2c8] sm:$0xff]  ;;  %v3936_v15 = vld [vmem:[#allocation6 + $0x2b0] sm:$0xff]  ;;  %v3342_v33 = vld [vmem:[#allocation6 + $0x40] sm:$0xff] }
 0x19e   :  { %2313 = vst [vmem:[#allocation2 + $0x50] sm:$0xff] %v2249_v57  ;;  %2780 = vmatprep.mubr.f32.mxu0 %v8467_v59  ;;  %v2250_v47 = vadd.f32 %v2068_v56, %v1648_v43  ;;  %v1651_v0 = vadd.f32 %v1476_v31, %v7359_v6  ;;  %3951 = vmatpush1.msra.mxu0 %v3940_v42  ;;  %v3345_v43 = vld [vmem:[#allocation6 + $0x58] sm:$0xff]  ;;  %v3343_v58 = vld [vmem:[#allocation6 + $0x48] sm:$0xff] }
 0x19f   :  { %v1478_v13 = vpop.f32.mrf.mxu0  ;;  %v2072_v21 = vpop.f32.mrf.mxu1  ;;  %3385 = vmatpush1.msra.mxu1 %v3346_v12  ;;  %3952 = vmatprep.subr.mxu0 %v3939_v53  ;;  %v2459_v6 = vld [vmem:[%s8431_s0 + $0xb4] sm:$0xff] }
 0x1a0   :  { %2314 = vst [vmem:[#allocation2 + $0x168] sm:$0xff] %v2250_v47  ;;  %v2251_v2 = vadd.f32 %v2072_v21, %v1649_v23  ;;  %v1652_v35 = vadd.f32 %v1478_v13, %v7367_v10  ;;  %3953 = vmatpush1.msra.mxu0 %v3938_v4  ;;  %v3937_v23 = vld [vmem:[#allocation6 + $0x2b8] sm:$0xff]  ;;  %3386 = vmatprep.subr.mxu1 %v3345_v43  ;;  %v3935_v10 = vld [vmem:[#allocation6 + $0x2a8] sm:$0xff] }
 0x1a1   :  { %v1482_v20 = vpop.f32.mrf.mxu0  ;;  %5872 = vmatmul.mubr.msk.f32.gmra.mxu0 %vm149_vm0, %v2458_v61  ;;  %v2074_v5 = vpop.f32.mrf.mxu1  ;;  %3954 = vmatprep.subr.mxu0 %v3937_v23  ;;  %v3934_v61 = vld [vmem:[#allocation6 + $0x2a0] sm:$0xff]  ;;  %v3933_v21 = vld [vmem:[#allocation6 + $0x298] sm:$0xff] }
 0x1a2   :  { %2315 = vst [vmem:[#allocation2 + $0x130] sm:$0xff] %v2251_v2  ;;  %2786 = vmatprep.mubr.f32.mxu0 %v8467_v59  ;;  %v2252_v11 = vadd.f32 %v2074_v5, %v1650_v55  ;;  %v1653_v31 = vadd.f32 %v1482_v20, %v7373_v14  ;;  %3955 = vmatpush1.msra.mxu0 %v3936_v15  ;;  %v2460_v14 = vld [vmem:[%s8431_s0 + $0xbc] sm:$0xff]  ;;  %v3932_v2 = vld [vmem:[#allocation6 + $0x290] sm:$0xff] }
 0x1a3   :  { %v1484_v57 = vpop.f32.mrf.mxu0  ;;  %v2078_v32 = vpop.f32.mrf.mxu1  ;;  %3387 = vmatpush1.msra.mxu1 %v3344_v24  ;;  %3956 = vmatprep.subr.mxu0 %v3935_v10  ;;  %v3341_v20 = vld [vmem:[#allocation6 + $0x38] sm:$0xff]  ;;  %v3930_v24 = vld [vmem:[#allocation6 + $0x280] sm:$0xff]  ;;  %v3927_v10 = vld [vmem:[#allocation6 + $0x268] sm:$0xff] }
 0x1a4   :  { %2316 = vst [vmem:[#allocation2 + $0x48] sm:$0xff] %v2252_v11  ;;  %v2253_v56 = vadd.f32 %v2078_v32, %v1651_v0  ;;  %v1654_v12 = vadd.f32 %v1484_v57, %v7381_v18  ;;  %3957 = vmatpush1.msra.mxu0 %v3934_v61  ;;  %3388 = vmatprep.subr.mxu1 %v3343_v58  ;;  %v3931_v18 = vld [vmem:[#allocation6 + $0x288] sm:$0xff]  ;;  %v3929_v23 = vld [vmem:[#allocation6 + $0x278] sm:$0xff]  ;;  %v3338_v58 = vld [vmem:[#allocation6 + $0x20] sm:$0xff] }
 0x1a5   :  { %v1488_v55 = vpop.f32.mrf.mxu0  ;;  %5873 = vmatmul.mubr.msk.f32.gmra.mxu0 %vm149_vm0, %v2459_v6  ;;  %v2080_v47 = vpop.f32.mrf.mxu1  ;;  %3958 = vmatprep.subr.mxu0 %v3933_v21  ;;  %v3339_v57 = vld [vmem:[#allocation6 + $0x28] sm:$0xff]  ;;  %v3926_v61 = vld [vmem:[#allocation6 + $0x260] sm:$0xff]  ;;  %v3336_v21 = vld [vmem:[#allocation6 + $0x10] sm:$0xff] }
 0x1a6   :  { %2317 = vst [vmem:[#allocation2 + $0x180] sm:$0xff] %v2253_v56  ;;  %2792 = vmatprep.mubr.f32.mxu0 %v8467_v59  ;;  %v2254_v13 = vadd.f32 %v2080_v47, %v1652_v35  ;;  %v1655_v53 = vadd.f32 %v1488_v55, %v7387_v22  ;;  %3959 = vmatpush1.msra.mxu0 %v3932_v2  ;;  %v3340_v35 = vld [vmem:[#allocation6 + $0x30] sm:$0xff]  ;;  %v2461_v22 = vld [vmem:[%s8431_s0 + $0xc4] sm:$0xff] }
 0x1a7   :  { %v1490_v42 = vpop.f32.mrf.mxu0  ;;  %v2084_v0 = vpop.f32.mrf.mxu1  ;;  %3389 = vmatpush1.msra.mxu1 %v3342_v33  ;;  %3960 = vmatprep.subr.mxu0 %v3931_v18  ;;  %v3337_v33 = vld [vmem:[#allocation6 + $0x18] sm:$0xff]  ;;  %v3924_v2 = vld [vmem:[#allocation6 + $0x250] sm:$0xff]  ;;  %v3335_v18 = vld [vmem:[#allocation6 + $0x8] sm:$0xff] }
 0x1a8   :  { %2318 = vst [vmem:[#allocation2 + $0x110] sm:$0xff] %v2254_v13  ;;  %v2255_v43 = vadd.f32 %v2084_v0, %v1653_v31  ;;  %v1656_v11 = vadd.f32 %v1490_v42, %v7395_v26  ;;  %3961 = vmatpush1.msra.mxu0 %v3930_v24  ;;  %3390 = vmatprep.subr.mxu1 %v3341_v20  ;;  %v3928_v31 = vld [vmem:[#allocation6 + $0x270] sm:$0xff]  ;;  %v3923_v20 = vld [vmem:[#allocation6 + $0x248] sm:$0xff]  ;;  %v3334_v24 = vld [vmem:[#allocation6] sm:$0xff] }
 0x1a9   :  { %v1494_v5 = vpop.f32.mrf.mxu0  ;;  %5874 = vmatmul.mubr.msk.f32.gmra.mxu0 %vm149_vm0, %v2460_v14  ;;  %v2086_v4 = vpop.f32.mrf.mxu1  ;;  %3962 = vmatprep.subr.mxu0 %v3929_v23  ;;  %v3925_v14 = vld [vmem:[#allocation6 + $0x258] sm:$0xff]  ;;  %v3920_v23 = vld [vmem:[#allocation6 + $0x230] sm:$0xff] }
 0x1aa   :  { %2319 = vst [vmem:[#allocation2 + $0x118] sm:$0xff] %v2255_v43  ;;  %2798 = vmatprep.mubr.f32.mxu0 %v8467_v59  ;;  %v2256_v6 = vadd.f32 %v2086_v4, %v1654_v12  ;;  %v1657_v56 = vadd.f32 %v1494_v5, %v7403_v30  ;;  %3391 = vmatpush1.msra.mxu1 %v3340_v35  ;;  %v2462_v30 = vld [vmem:[%s8431_s0 + $0xcc] sm:$0xff]  ;;  %v3922_v35 = vld [vmem:[#allocation6 + $0x240] sm:$0xff] }
 0x1ab   :  { %v1496_v32 = vpop.f32.mrf.mxu0  ;;  %v2090_v15 = vpop.f32.mrf.mxu1  ;;  %3963 = vmatpush1.msra.mxu0 %v3928_v31  ;;  %3392 = vmatprep.subr.mxu1 %v3339_v57  ;;  %v1060_v57 = vadd.f32 %v7438_v46, %v7417_v37  ;;  %v3919_v31 = vld [vmem:[#allocation6 + $0x228] sm:$0xff]  ;;  %v2464_v37 = vld [vmem:[%s8431_s0 + $0xdc] sm:$0xff] }
 0x1ac   :  { %2320 = vst [vmem:[#allocation2 + $0x98] sm:$0xff] %v2256_v6  ;;  %v2257_v26 = vadd.f32 %v2090_v15, %v1655_v53  ;;  %v1658_v12 = vadd.f32 %v1496_v32, %v7411_v34  ;;  %3964 = vmatprep.subr.mxu0 %v3927_v10  ;;  %3393 = vmatpush1.msra.mxu1 %v3338_v58  ;;  %v3918_v10 = vld [vmem:[#allocation6 + $0x220] sm:$0xff] }
 0x1ad   :  { %v1500_v55 = vpop.f32.mrf.mxu0  ;;  %5875 = vmatmul.mubr.msk.f32.gmra.mxu0 %vm149_vm0, %v2461_v22  ;;  %v2092_v47 = vpop.f32.mrf.mxu1  ;;  %v1058_v53 = vadd.f32 %v7422_v39, %v7401_v29  ;;  %3394 = vmatprep.subr.mxu1 %v3337_v33  ;;  %v3921_v39 = vld [vmem:[#allocation6 + $0x238] sm:$0xff]  ;;  %v1062_v33 = vadd.f32 %v7454_v54, %v7433_v44  ;;  %v2465_v44 = vld [vmem:[%s8431_s0 + $0xe4] sm:$0xff] }
 0x1ae   :  { %2321 = vst [vmem:[#allocation2 + $0x120] sm:$0xff] %v2257_v26  ;;  %2804 = vmatprep.mubr.f32.mxu0 %v8467_v59  ;;  %v2258_v13 = vadd.f32 %v2092_v47, %v1656_v11  ;;  %3965 = vmatpush1.msra.mxu0 %v3926_v61  ;;  %v1659_v34 = vadd.f32 %v1500_v55, %v7419_v38  ;;  %v2463_v38 = vld [vmem:[%s8431_s0 + $0xd4] sm:$0xff] }
 0x1af   :  { %v1502_v42 = vpop.f32.mrf.mxu0  ;;  %v2096_v0 = vpop.f32.mrf.mxu1  ;;  %3966 = vmatprep.subr.mxu0 %v3925_v14  ;;  %3395 = vmatpush1.msra.mxu1 %v3336_v21  ;;  %v3916_v61 = vld [vmem:[#allocation6 + $0x210] sm:$0xff] }
 0x1b0   :  { %2322 = vst [vmem:[#allocation2 + $0x150] sm:$0xff] %v2258_v13  ;;  %v2259_v43 = vadd.f32 %v2096_v0, %v1657_v56  ;;  %v1660_v11 = vadd.f32 %v1502_v42, %v1058_v53  ;;  %3967 = vmatpush1.msra.mxu0 %v3924_v2  ;;  %3396 = vmatprep.subr.mxu1 %v3335_v18  ;;  %v3914_v42 = vld [vmem:[#allocation6 + $0x200] sm:$0xff] }
 0x1b1   :  { %v1506_v5 = vpop.f32.mrf.mxu0  ;;  %5876 = vmatmul.mubr.msk.f32.gmra.mxu0 %vm149_vm0, %v2462_v30  ;;  %v2098_v4 = vpop.f32.mrf.mxu1  ;;  %3968 = vmatprep.subr.mxu0 %v3923_v20  ;;  %v3915_v30 = vld [vmem:[#allocation6 + $0x208] sm:$0xff]  ;;  %v1064_v53 = vadd.f32 %v7470_v63, %v7449_v51 }
 0x1b2   :  { %2323 = vst [vmem:[#allocation2 + $0x108] sm:$0xff] %v2259_v43  ;;  %2810 = vmatprep.mubr.f32.mxu0 %v8467_v59  ;;  %v2260_v29 = vadd.f32 %v2098_v4, %v1658_v12  ;;  %v1661_v32 = vadd.f32 %v1506_v5, %v7435_v45  ;;  %3397 = vmatpush1.msra.mxu1 %v3334_v24  ;;  %v3917_v45 = vld [vmem:[#allocation6 + $0x218] sm:$0xff]  ;;  %v2466_v24 = vld [vmem:[%s8431_s0 + $0xec] sm:$0xff] }
 0x1b3   :  { %v1508_v6 = vpop.f32.mrf.mxu0  ;;  %v2102_v22 = vpop.f32.mrf.mxu1  ;;  %3969 = vmatpush1.msra.mxu0 %v3922_v35 }
 0x1b4   :  { %2324 = vst [vmem:[#allocation2 + $0x60] sm:$0xff] %v2260_v29  ;;  %v2261_v15 = vadd.f32 %v2102_v22, %v1659_v34  ;;  %3970 = vmatprep.subr.mxu0 %v3921_v39  ;;  %v1662_v58 = vadd.f32 %v1508_v6, %v1060_v57  ;;  %v2467_v22 = vld [vmem:[%s8431_s0 + $0xf4] sm:$0xff] }
 0x1b5   :  { %v1512_v56 = vpop.f32.mrf.mxu0  ;;  %5877 = vmatmul.mubr.msk.f32.gmra.mxu0 %vm149_vm0, %v2463_v38  ;;  %v2104_v26 = vpop.f32.mrf.mxu1 }
 0x1b6   :  { %2325 = vst [vmem:[#allocation2 + $0xe0] sm:$0xff] %v2261_v15  ;;  %2816 = vmatprep.mubr.f32.mxu0 %v8467_v59  ;;  %v2262_v55 = vadd.f32 %v2104_v26, %v1660_v11  ;;  %3971 = vmatpush1.msra.mxu0 %v3920_v23  ;;  %v1663_v12 = vadd.f32 %v1512_v56, %v7451_v52  ;;  %v2468_v26 = vld [vmem:[%s8431_s0 + $0xfc] sm:$0xf] }
 0x1b7   :  { %v1514_v46 = vpop.f32.mrf.mxu0  ;;  %v2108_v47 = vpop.f32.mrf.mxu1  ;;  %3972 = vmatprep.subr.mxu0 %v3919_v31 }
 0x1b8   :  { %2326 = vst [vmem:[#allocation2 + $0x188] sm:$0xff] %v2262_v55  ;;  %v2263_v13 = vadd.f32 %v2108_v47, %v1661_v32  ;;  %3973 = vmatpush1.msra.mxu0 %v3918_v10  ;;  %v1664_v0 = vadd.f32 %v1514_v46, %v1062_v33  ;;  %v1072_v33 = vadd.f32 %v7534_v41, %v7513_v25 }
 0x1b9   :  { %v1518_v14 = vpop.f32.mrf.mxu0  ;;  %5878 = vmatmul.mubr.msk.f32.gmra.mxu0 %vm149_vm0, %v2464_v37  ;;  %v2110_v21 = vpop.f32.mrf.mxu1  ;;  %3974 = vmatprep.subr.mxu0 %v3917_v45 }
 0x1ba   :  { %2327 = vst [vmem:[#allocation2 + $0x138] sm:$0xff] %v2263_v13  ;;  %2822 = vmatprep.mubr.f32.mxu0 %v8467_v59  ;;  %v2264_v2 = vadd.f32 %v2110_v21, %v1662_v58  ;;  %3975 = vmatpush1.msra.mxu0 %v3916_v61  ;;  %v1665_v34 = vadd.f32 %v1518_v14, %v7467_v62 }
 0x1bb   :  { %v1520_v52 = vpop.f32.mrf.mxu0  ;;  %v2114_v54 = vpop.f32.mrf.mxu1  ;;  %3976 = vmatprep.subr.mxu0 %v3915_v30  ;;  %v1066_v62 = vadd.f32 %v7486_v9, %v7465_v60  ;;  %v1068_v60 = vadd.f32 %v7502_v19, %v7481_v7  ;;  %v1070_v7 = vadd.f32 %v7518_v28, %v7497_v16 }
 0x1bc   :  { %2328 = vst [vmem:[#allocation2 + $0x140] sm:$0xff] %v2264_v2  ;;  %v2265_v43 = vadd.f32 %v2114_v54, %v1663_v12  ;;  %3977 = vmatpush1.msra.mxu0 %v3914_v42  ;;  %v1666_v5 = vadd.f32 %v1520_v52, %v1064_v53  ;;  %v1074_v42 = vadd.f32 %v7546_v50, %v7529_v36 }
 0x1bd   :  { %v1524_v18 = vpop.f32.mrf.mxu0  ;;  %5879 = vmatmul.mubr.msk.f32.gmra.mxu0 %vm149_vm0, %v2465_v44  ;;  %v2116_v20 = vpop.f32.mrf.mxu1  ;;  %v1076_v53 = vadd.f32 %v7557_v3, %v7542_v48 }
 0x1be   :  { %2329 = vst [vmem:[#allocation2 + $0x80] sm:$0xff] %v2265_v43  ;;  %2828 = vmatprep.mubr.f32.mxu0 %v8467_v59  ;;  %v2266_v4 = vadd.f32 %v2116_v20, %v1664_v0  ;;  %v1667_v63 = vadd.f32 %v1524_v18, %v7483_v8 }
 0x1bf   :  { %v1526_v35 = vpop.f32.mrf.mxu0  ;;  %v2120_v51 = vpop.f32.mrf.mxu1 }
 0x1c0   :  { %2330 = vst [vmem:[#allocation2 + $0x1a8] sm:$0xff] %v2266_v4  ;;  %v2267_v11 = vadd.f32 %v2120_v51, %v1665_v34  ;;  %v1668_v39 = vadd.f32 %v1526_v35, %v1066_v62  ;;  %v8468_v4 = vld [vmem:[#allocation16_spill] sm:$0xff]  ;;  %v8470_v51 = vld [vmem:[#allocation18_spill] sm:$0xff] }
 0x1c1   :  { %v1530_v29 = vpop.f32.mrf.mxu0  ;;  %5880 = vmatmul.mubr.msk.f32.gmra.mxu0 %vm149_vm0, %v2466_v24  ;;  %v2122_v38 = vpop.f32.mrf.mxu1  ;;  %v8469_v24 = vld [vmem:[#allocation19_spill] sm:$0xff] }
 0x1c2   :  { %2331 = vst [vmem:[#allocation2 + $0x1b8] sm:$0xff] %v2267_v11  ;;  %2834 = vmatprep.mubr.f32.mxu0 %v8467_v59  ;;  %v2268_v6 = vadd.f32 %v2122_v38, %v1666_v5  ;;  %v1669_v8 = vadd.f32 %v1530_v29, %v7499_v17  ;;  %v1078_v35 = vadd.f32 %v8469_v24, %v8468_v4  ;;  %v8485_v4 = vld [vmem:[#allocation33_spill] sm:$0xff] }
 0x1c3   :  { %v1532_v23 = vpop.f32.mrf.mxu0  ;;  %v2126_v57 = vpop.f32.mrf.mxu1 }
 0x1c4   :  { %2332 = vst [vmem:[#allocation2 + $0x28] sm:$0xff] %v2268_v6  ;;  %v2269_v9 = vadd.f32 %v2126_v57, %v1667_v63  ;;  %v1670_v31 = vadd.f32 %v1532_v23, %v1068_v60  ;;  %v8472_v6 = vld [vmem:[#allocation22_spill] sm:$0xff]  ;;  %v8473_v23 = vld [vmem:[#allocation21_spill] sm:$0xff] }
 0x1c5   :  { %v1536_v32 = vpop.f32.mrf.mxu0  ;;  %5881 = vmatmul.mubr.msk.f32.gmra.mxu0 %vm149_vm0, %v2467_v22  ;;  %v2128_v15 = vpop.f32.mrf.mxu1 }
 0x1c6   :  { %2333 = vst [vmem:[#allocation2 + $0x1e8] sm:$0xff] %v2269_v9  ;;  %2840 = vmatprep.mubr.f32.mxu0 %v8467_v59  ;;  %v2270_v56 = vadd.f32 %v2128_v15, %v1668_v39  ;;  %v1671_v17 = vadd.f32 %v1536_v32, %v7515_v27  ;;  %v8471_v39 = vld [vmem:[#allocation17_spill] sm:$0xff] }
 0x1c7   :  { %v1538_v10 = vpop.f32.mrf.mxu0  ;;  %v2132_v58 = vpop.f32.mrf.mxu1  ;;  %v1080_v22 = vadd.f32 %v8472_v6, %v8471_v39  ;;  %v8488_v39 = vld [vmem:[#allocation35_spill] sm:$0xff] }
 0x1c8   :  { %2334 = vst [vmem:[#allocation2 + $0xf8] sm:$0xff] %v2270_v56  ;;  %v2271_v19 = vadd.f32 %v2132_v58, %v1669_v8  ;;  %v1672_v45 = vadd.f32 %v1538_v10, %v1070_v7  ;;  %v8475_v10 = vld [vmem:[#allocation25_spill] sm:$0xff]  ;;  %v8476_v7 = vld [vmem:[#allocation24_spill] sm:$0xff] }
 0x1c9   :  { %v1542_v55 = vpop.f32.mrf.mxu0  ;;  %5882 = vmatmul.mubr.msk.f32.gmra.mxu0 %vm149_vm0, %v2468_v26  ;;  %v2134_v37 = vpop.f32.mrf.mxu1  ;;  %v8474_v26 = vld [vmem:[#allocation20_spill] sm:$0xff] }
 0x1ca   :  { %2335 = vst [vmem:[#allocation2 + $0x160] sm:$0xff] %v2271_v19  ;;  %v2272_v46 = vadd.f32 %v2134_v37, %v1670_v31  ;;  %4010 = vmatprep.mubr.f32.mxu0 %v8467_v59  ;;  %v1673_v16 = vadd.f32 %v1542_v55, %v7531_v40  ;;  %v1082_v58 = vadd.f32 %v8475_v10, %v8474_v26  ;;  %v1220_v26 = vld [vmem:[#allocation2 + $0x1c8] sm:$0xff] }
 0x1cb   :  { %v1544_v47 = vpop.f32.mrf.mxu0  ;;  %v2138_v61 = vpop.f32.mrf.mxu1 }
 0x1cc   :  { %2336 = vst [vmem:[#allocation2 + $0x30] sm:$0xff] %v2272_v46  ;;  %v2273_v27 = vadd.f32 %v2138_v61, %v1671_v17  ;;  %v1674_v13 = vadd.f32 %v1544_v47, %v1072_v33  ;;  %v8477_v33 = vld [vmem:[#allocation23_spill] sm:$0xff] }
 0x1cd   :  { %v1548_v28 = vpop.f32.mrf.mxu0  ;;  %v2140_v12 = vpop.f32.mrf.mxu1 }
 0x1ce   :  { %2337 = vst [vmem:[#allocation2 + $0x1e0] sm:$0xff] %v2273_v27  ;;  %v2274_v30 = vadd.f32 %v2140_v12, %v1672_v45  ;;  %v1675_v0 = vadd.f32 %v1548_v28, %v7544_v49  ;;  %v8479_v28 = vld [vmem:[#allocation27_spill] sm:$0xff] }
 0x1cf   :  { %v1550_v14 = vpop.f32.mrf.mxu0  ;;  %v2144_v21 = vpop.f32.mrf.mxu1 }
 0x1d0   :  { %2338 = vst [vmem:[#allocation2] sm:$0xff] %v2274_v30  ;;  %v2275_v2 = vadd.f32 %v2144_v21, %v1673_v16  ;;  %v1676_v41 = vadd.f32 %v1550_v14, %v1074_v42  ;;  %v8478_v16 = vld [vmem:[#allocation28_spill] sm:$0xff] }
 0x1d1   :  { %v1554_v44 = vpop.f32.mrf.mxu0  ;;  %v2146_v25 = vpop.f32.mrf.mxu1  ;;  %v1084_v27 = vadd.f32 %v8478_v16, %v8477_v33 }
 0x1d2   :  { %2339 = vst [vmem:[#allocation2 + $0xf0] sm:$0xff] %v2275_v2  ;;  %v2276_v40 = vadd.f32 %v2146_v25, %v1674_v13  ;;  %v1677_v34 = vadd.f32 %v1554_v44, %v7555_v1  ;;  %v8480_v44 = vld [vmem:[#allocation26_spill] sm:$0xff]  ;;  %v8481_v25 = vld [vmem:[#allocation31_spill] sm:$0xff] }
 0x1d3   :  { %v1556_v52 = vpop.f32.mrf.mxu0  ;;  %v2150_v54 = vpop.f32.mrf.mxu1 }
 0x1d4   :  { %2340 = vst [vmem:[#allocation2 + $0x8] sm:$0xff] %v2276_v40  ;;  %v2277_v43 = vadd.f32 %v2150_v54, %v1675_v0  ;;  %v1678_v50 = vadd.f32 %v1556_v52, %v1076_v53  ;;  %v8482_v40 = vld [vmem:[#allocation30_spill] sm:$0xff] }
 0x1d5   :  { %v1560_v18 = vpop.f32.mrf.mxu0  ;;  %v2152_v36 = vpop.f32.mrf.mxu1 }
 0x1d6   :  { %2341 = vst [vmem:[#allocation2 + $0x148] sm:$0xff] %v2277_v43  ;;  %v2278_v49 = vadd.f32 %v2152_v36, %v1676_v41  ;;  %v1679_v62 = vadd.f32 %v1560_v18, %v8470_v51  ;;  %v1086_v41 = vadd.f32 %v8481_v25, %v8480_v44 }
 0x1d7   :  { %v1562_v20 = vpop.f32.mrf.mxu0  ;;  %v2156_v5 = vpop.f32.mrf.mxu1 }
 0x1d8   :  { %2342 = vst [vmem:[#allocation2 + $0x1d0] sm:$0xff] %v2278_v49  ;;  %v2279_v63 = vadd.f32 %v2156_v5, %v1677_v34  ;;  %v1680_v3 = vadd.f32 %v1562_v20, %v1078_v35  ;;  %v8483_v49 = vld [vmem:[#allocation29_spill] sm:$0xff]  ;;  %v8484_v20 = vld [vmem:[#allocation34_spill] sm:$0xff] }
 0x1d9   :  { %v1566_v11 = vpop.f32.mrf.mxu0  ;;  %v2158_v48 = vpop.f32.mrf.mxu1  ;;  %v1088_v5 = vadd.f32 %v8484_v20, %v8483_v49  ;;  %v1227_v49 = vld [vmem:[#allocation2 + $0xc0] sm:$0xff] }
 0x1da   :  { %2343 = vst [vmem:[#allocation2 + $0x100] sm:$0xff] %v2279_v63  ;;  %v2280_v1 = vadd.f32 %v2158_v48, %v1678_v50  ;;  %v1681_v57 = vadd.f32 %v1566_v11, %v8473_v23 }
 0x1db   :  { %v1568_v29 = vpop.f32.mrf.mxu0  ;;  %v2162_v38 = vpop.f32.mrf.mxu1 }
 0x1dc   :  { %2344 = vst [vmem:[#allocation2 + $0xc8] sm:$0xff] %v2280_v1  ;;  %v2281_v60 = vadd.f32 %v2162_v38, %v1679_v62  ;;  %v1682_v32 = vadd.f32 %v1568_v29, %v1080_v22  ;;  %v8486_v1 = vld [vmem:[#allocation32_spill] sm:$0xff] }
 0x1dd   :  { %v1572_v8 = vpop.f32.mrf.mxu0  ;;  %v2164_v9 = vpop.f32.mrf.mxu1  ;;  %v8487_v29 = vld [vmem:[#allocation36_spill] sm:$0xff] }
 0x1de   :  { %2345 = vst [vmem:[#allocation2 + $0x40] sm:$0xff] %v2281_v60  ;;  %v2282_v15 = vadd.f32 %v2164_v9, %v1680_v3  ;;  %v1683_v17 = vadd.f32 %v1572_v8, %v8476_v7  ;;  %v1090_v38 = vadd.f32 %v8487_v29, %v8486_v1  ;;  %v1219_v9 = vld [vmem:[#allocation2 + $0xa8] sm:$0xff] }
 0x1df   :  { %v1574_v31 = vpop.f32.mrf.mxu0  ;;  %v2168_v56 = vpop.f32.mrf.mxu1 }
 0x1e0   :  { %2346 = vst [vmem:[#allocation2 + $0x1f8] sm:$0xff] %v2282_v15  ;;  %v2283_v19 = vadd.f32 %v2168_v56, %v1681_v57  ;;  %v1684_v45 = vadd.f32 %v1574_v31, %v1082_v58 }
 0x1e1   :  { %v1578_v55 = vpop.f32.mrf.mxu0  ;;  %v2170_v37 = vpop.f32.mrf.mxu1 }
 0x1e2   :  { %2347 = vst [vmem:[#allocation2 + $0x20] sm:$0xff] %v2283_v19  ;;  %v2284_v46 = vadd.f32 %v2170_v37, %v1682_v32  ;;  %v1685_v12 = vadd.f32 %v1578_v55, %v8479_v28  ;;  %v1221_v19 = vld [vmem:[#allocation2 + $0x170] sm:$0xff] }
 0x1e3   :  { %v1580_v47 = vpop.f32.mrf.mxu0  ;;  %v2174_v61 = vpop.f32.mrf.mxu1 }
 0x1e4   :  { %2348 = vst [vmem:[#allocation2 + $0x128] sm:$0xff] %v2284_v46  ;;  %v2285_v13 = vadd.f32 %v2174_v61, %v1683_v17  ;;  %v1686_v21 = vadd.f32 %v1580_v47, %v1084_v27  ;;  %v3639_v47 = vld [vmem:[#allocation6 + $0x1f8] sm:$0xff] }
 0x1e5   :  { %v1584_v30 = vpop.f32.mrf.mxu0  ;;  %v2176_v14 = vpop.f32.mrf.mxu1  ;;  %v1222_v61 = vld [vmem:[#allocation2 + $0x178] sm:$0xff]  ;;  %3640 = vmatprep.subr.mxu1 %v3639_v47 }
 0x1e6   :  { %2349 = vst [vmem:[#allocation2 + $0x1a0] sm:$0xff] %v2285_v13  ;;  %v2286_v42 = vadd.f32 %v2176_v14, %v1684_v45  ;;  %v1687_v52 = vadd.f32 %v1584_v30, %v8482_v40 }
 0x1e7   :  { %v1586_v0 = vpop.f32.mrf.mxu0  ;;  %v2180_v2 = vpop.f32.mrf.mxu1 }
 0x1e8   :  { %2350 = vst [vmem:[#allocation2 + $0x1f0] sm:$0xff] %v2286_v42  ;;  %v2287_v54 = vadd.f32 %v2180_v2, %v1685_v12  ;;  %v1688_v43 = vadd.f32 %v1586_v0, %v1086_v41  ;;  %v1223_v12 = vld [vmem:[#allocation2 + $0x68] sm:$0xff]  ;;  %v1224_v42 = vld [vmem:[#allocation2 + $0x190] sm:$0xff]  ;;  %v1225_v41 = vld [vmem:[#allocation2 + $0x198] sm:$0xff] }
 0x1e9   :  { %v1590_v53 = vpop.f32.mrf.mxu0  ;;  %v2182_v34 = vpop.f32.mrf.mxu1 }
 0x1ea   :  { %2351 = vst [vmem:[#allocation2 + $0xe8] sm:$0xff] %v2287_v54  ;;  %v2288_v18 = vadd.f32 %v2182_v34, %v1686_v21  ;;  %v1689_v24 = vadd.f32 %v1590_v53, %v8485_v4  ;;  %v1226_v34 = vld [vmem:[#allocation2 + $0x38] sm:$0xff] }
 0x1eb   :  { %v1592_v36 = vpop.f32.mrf.mxu0  ;;  %v2186_v50 = vpop.f32.mrf.mxu1 }
 0x1ec   :  { %2352 = vst [vmem:[#allocation2 + $0x78] sm:$0xff] %v2288_v18  ;;  %v2289_v35 = vadd.f32 %v2186_v50, %v1687_v52  ;;  %v1690_v63 = vadd.f32 %v1592_v36, %v1088_v5 }
 0x1ed   :  { %v1596_v51 = vpop.f32.mrf.mxu0  ;;  %v2188_v62 = vpop.f32.mrf.mxu1 }
 0x1ee   :  { %2353 = vst [vmem:[#allocation2 + $0x70] sm:$0xff] %v2289_v35  ;;  %v2290_v11 = vadd.f32 %v2188_v62, %v1688_v43  ;;  %v1691_v6 = vadd.f32 %v1596_v51, %v8488_v39  ;;  %v1228_v35 = vld [vmem:[#allocation2 + $0x1c0] sm:$0xff]  ;;  %v1230_v39 = vld [vmem:[#allocation2 + $0x10] sm:$0xff] }
 0x1ef   :  { %v1598_v48 = vpop.f32.mrf.mxu0  ;;  %v2192_v3 = vpop.f32.mrf.mxu1 }
 0x1f0   :  { %2354 = vst [vmem:[#allocation2 + $0x90] sm:$0xff] %v2290_v11  ;;  %v2291_v22 = vadd.f32 %v2192_v3, %v1689_v24  ;;  %v1692_v60 = vadd.f32 %v1598_v48, %v1090_v38  ;;  %v1229_v48 = vld [vmem:[#allocation2 + $0x158] sm:$0xff] }
 0x1f1   :  { %v1602_v23 = vpop.f32.mrf.mxu0  ;;  %v2194_v57 = vpop.f32.mrf.mxu1 }
 0x1f2   :  { %2355 = vst [vmem:[#allocation2 + $0x1d8] sm:$0xff] %v2291_v22  ;;  %v2292_v8 = vadd.f32 %v2194_v57, %v1690_v63  ;;  %v1693_v31 = vadd.f32 %v1602_v23, %v1219_v9  ;;  %v1232_v9 = vld [vmem:[#allocation2 + $0xa0] sm:$0x3f] }
 0x1f3   :  { %v1604_v32 = vpop.f32.mrf.mxu0  ;;  %v2198_v15 = vpop.f32.mrf.mxu1 }
 0x1f4   :  { %2356 = vst [vmem:[#allocation2 + $0xd0] sm:$0xff] %v2292_v8  ;;  %v2293_v56 = vadd.f32 %v2198_v15, %v1691_v6  ;;  %v1694_v7 = vadd.f32 %v1604_v32, %v1220_v26  ;;  %v1231_v6 = vld [vmem:[#allocation2 + $0x58] sm:$0x3f] }
 0x1f5   :  { %v1608_v10 = vpop.f32.mrf.mxu0  ;;  %v2200_v58 = vpop.f32.mrf.mxu1 }
 0x1f6   :  { %2357 = vst [vmem:[#allocation2 + $0xb8] sm:$0xff] %v2293_v56  ;;  %v2294_v17 = vadd.f32 %v2200_v58, %v1692_v60  ;;  %v1695_v45 = vadd.f32 %v1608_v10, %v1221_v19 }
 0x1f7   :  { %v1610_v55 = vpop.f32.mrf.mxu0  ;;  %v2204_v37 = vpop.f32.mrf.mxu1 }
 0x1f8   :  { %2358 = vst [vmem:[#allocation2 + $0x88] sm:$0xff] %v2294_v17  ;;  %v2295_v46 = vadd.f32 %v2204_v37, %v1693_v31  ;;  %v1696_v27 = vadd.f32 %v1610_v55, %v1222_v61  ;;  %v2374_v17 = vld [vmem:[#allocation2 + $0x1b0] sm:$0xff] }
 0x1f9   :  { %v1614_v33 = vpop.f32.mrf.mxu0  ;;  %v2206_v16 = vpop.f32.mrf.mxu1 }
 0x1fa   :  { %2359 = vst [vmem:[#allocation2 + $0xa8] sm:$0xff] %v2295_v46  ;;  %v2296_v28 = vadd.f32 %v2206_v16, %v1694_v7  ;;  %v1697_v14 = vadd.f32 %v1614_v33, %v1223_v12  ;;  %v2373_v7 = vld [vmem:[#allocation2 + $0xb0] sm:$0xff]  ;;  %v7807_v46 = vld [vmem:[%s8433_s2] ss:$0 sm:$0xff]  ;;  %v2375_v33 = vld [vmem:[#allocation2 + $0xd8] sm:$0xff] }
 0x1fb   :  { %v1616_v13 = vpop.f32.mrf.mxu0  ;;  %v2210_v30 = vpop.f32.mrf.mxu1 }
 0x1fc   :  { %2360 = vst [vmem:[#allocation2 + $0x1c8] sm:$0xff] %v2296_v28  ;;  %v2297_v21 = vadd.f32 %v2210_v30, %v1695_v45  ;;  %v1698_v44 = vadd.f32 %v1616_v13, %v1224_v42 }
 0x1fd   :  { %v1620_v0 = vpop.f32.mrf.mxu0  ;;  %v2212_v2 = vpop.f32.mrf.mxu1 }
 0x1fe   :  { %2361 = vst [vmem:[#allocation2 + $0x170] sm:$0xff] %v2297_v21  ;;  %v2298_v25 = vadd.f32 %v2212_v2, %v1696_v27  ;;  %v1699_v54 = vadd.f32 %v1620_v0, %v1225_v41  ;;  %v2376_v27 = vld [vmem:[#allocation2 + $0x18] sm:$0xff]  ;;  %v2377_v41 = vld [vmem:[#allocation2 + $0x50] sm:$0xff] }
 0x1ff   :  { %v1622_v40 = vpop.f32.mrf.mxu0  ;;  %v2216_v52 = vpop.f32.mrf.mxu1 }
 0x200   :  { %2362 = vst [vmem:[#allocation2 + $0x178] sm:$0xff] %v2298_v25  ;;  %v2299_v53 = vadd.f32 %v2216_v52, %v1697_v14  ;;  %v1700_v36 = vadd.f32 %v1622_v40, %v1226_v34  ;;  %v2378_v40 = vld [vmem:[#allocation2 + $0x168] sm:$0xff] }
 0x201   :  { %v1626_v43 = vpop.f32.mrf.mxu0  ;;  %v2218_v18 = vpop.f32.mrf.mxu1 }
 0x202   :  { %2363 = vst [vmem:[#allocation2 + $0x68] sm:$0xff] %v2299_v53  ;;  %v2300_v50 = vadd.f32 %v2218_v18, %v1698_v44  ;;  %v1701_v4 = vadd.f32 %v1626_v43, %v1227_v49  ;;  %v2379_v49 = vld [vmem:[#allocation2 + $0x130] sm:$0xff] }
 0x203   :  { %v1628_v20 = vpop.f32.mrf.mxu0  ;;  %v2222_v5 = vpop.f32.mrf.mxu1 }
 0x204   :  { %2364 = vst [vmem:[#allocation2 + $0x190] sm:$0xff] %v2300_v50  ;;  %v2301_v24 = vadd.f32 %v2222_v5, %v1699_v54  ;;  %v1702_v63 = vadd.f32 %v1628_v20, %v1228_v35  ;;  %v4557_v50 = vld [vmem:[#allocation6 + $0x4f8] sm:$0xff]  ;;  %v2380_v20 = vld [vmem:[#allocation2 + $0x48] sm:$0xff] }
 0x205   :  { %v1632_v51 = vpop.f32.mrf.mxu0  ;;  %v2224_v62 = vpop.f32.mrf.mxu1  ;;  %4558 = vmatprep.subr.mxu0 %v4557_v50  ;;  %v3628_v50 = vld [vmem:[#allocation6 + $0x1a0] sm:$0xff] }
 0x206   :  { %2365 = vst [vmem:[#allocation2 + $0x198] sm:$0xff] %v2301_v24  ;;  %v2302_v11 = vadd.f32 %v2224_v62, %v1700_v36  ;;  %v1703_v29 = vadd.f32 %v1632_v51, %v1229_v48  ;;  %v2382_v48 = vld [vmem:[#allocation2 + $0x110] sm:$0xff] }
 0x207   :  { %v1634_v3 = vpop.f32.mrf.mxu0  ;;  %v2228_v1 = vpop.f32.mrf.mxu1 }
 0x208   :  { %2366 = vst [vmem:[#allocation2 + $0x38] sm:$0xff] %v2302_v11  ;;  %v2303_v38 = vadd.f32 %v2228_v1, %v1701_v4  ;;  %v1704_v57 = vadd.f32 %v1634_v3, %v1230_v39  ;;  %v2381_v11 = vld [vmem:[#allocation2 + $0x180] sm:$0xff] }
 0x209   :  { %v1638_v22 = vpop.f32.mrf.mxu0  ;;  %v2230_v23 = vpop.f32.mrf.mxu1 }
 0x20a   :  { %v1705_v60 = vadd.f32 %v1638_v22, %v1231_v6  ;;  %2367 = vst [vmem:[#allocation2 + $0xc0] sm:$0xff] %v2303_v38  ;;  %v2304_v8 = vadd.f32 %v2230_v23, %v1702_v63  ;;  %v2383_v23 = vld [vmem:[#allocation2 + $0x118] sm:$0xff] }
 0x20b   :  { %v1640_v32 = vpop.f32.mrf.mxu0  ;;  %v2234_v15 = vpop.f32.mrf.mxu1 }
 0x20c   :  { %1769 = vst [vmem:[#allocation2 + $0x58] sm:$0x3f] %v1705_v60  ;;  %v1706_v31 = vadd.f32 %v1640_v32, %v1232_v9  ;;  %2368 = vst [vmem:[#allocation2 + $0x1c0] sm:$0xff] %v2304_v8  ;;  %v2305_v56 = vadd.f32 %v2234_v15, %v1703_v29 }
 0x20d   :  { %v2656_v26 = vpop.f32.mrf.mxu0  ;;  %v2236_v10 = vpop.f32.mrf.mxu1 }
 0x20e   :  { %1770 = vst [vmem:[#allocation2 + $0xa0] sm:$0x3f] %v1706_v31  ;;  %2369 = vst [vmem:[#allocation2 + $0x158] sm:$0xff] %v2305_v56  ;;  %v2306_v58 = vadd.f32 %v2236_v10, %v1704_v57  ;;  %v2847_v37 = vadd.f32 %v2656_v26, %v2373_v7  ;;  %v2384_v57 = vld [vmem:[#allocation2 + $0x98] sm:$0xff]  ;;  %v3638_v26 = vld [vmem:[#allocation6 + $0x1f0] sm:$0xff] }
 0x20f   :  { %v2658_v19 = vpop.f32.mrf.mxu0  ;;  %v2240_v55 = vpop.f32.mrf.mxu1 }
 0x210   :  { %v2848_v45 = vadd.f32 %v2658_v19, %v2374_v17  ;;  %2370 = vst [vmem:[#allocation2 + $0x10] sm:$0xff] %v2306_v58  ;;  %v3637_v58 = vld [vmem:[#allocation6 + $0x1e8] sm:$0xff]  ;;  %v3636_v19 = vld [vmem:[#allocation6 + $0x1e0] sm:$0xff] }
 0x211   :  { %v2662_v47 = vpop.f32.mrf.mxu0  ;;  %v2242_v12 = vpop.f32.mrf.mxu1 }
 0x212   :  { %v2983_v61 = vmax.f32 %v2847_v37, %v2848_v45  ;;  %v2849_v30 = vadd.f32 %v2662_v47, %v2375_v33  ;;  %v2386_v37 = vld [vmem:[#allocation2 + $0x150] sm:$0xff]  ;;  %v3635_v47 = vld [vmem:[#allocation6 + $0x1d8] sm:$0xff] }
 0x213   :  { %v1833_v16 = vld [vmem:[#allocation2 + $0x58] sm:$0x1f]  ;;  %v2664_v28 = vpop.f32.mrf.mxu0 }
 0x214   :  { %v2994_v13 = vadd.f32 %v7807_v46, %v2983_v61  ;;  %v2307_v14 = vadd.f32 %v2240_v55, %v1833_v16  ;;  %v2850_v21 = vadd.f32 %v2664_v28, %v2376_v27  ;;  %v2385_v55 = vld [vmem:[#allocation2 + $0x120] sm:$0xff]  ;;  %v3634_v27 = vld [vmem:[#allocation6 + $0x1d0] sm:$0xff] }
 0x215   :  { %v1834_v42 = vld [vmem:[#allocation2 + $0xa0] sm:$0x1f]  ;;  %v2668_v0 = vpop.f32.mrf.mxu0 }
 0x216   :  { %v2998_v2 = vmax.f32 %v2994_v13, 0.0  ;;  %2371 = vst [vmem:[#allocation2 + $0x58] sm:$0x1f] %v2307_v14  ;;  %v2984_v44 = vmax.f32 %v2849_v30, %v2850_v21  ;;  %v2308_v25 = vadd.f32 %v2242_v12, %v1834_v42  ;;  %v2851_v53 = vadd.f32 %v2668_v0, %v2377_v41  ;;  %v3633_v12 = vld [vmem:[#allocation6 + $0x1c8] sm:$0xff]  ;;  %v2388_v21 = vld [vmem:[#allocation2 + $0x60] sm:$0xff] }
 0x217   :  { %v2670_v52 = vpop.f32.mrf.mxu0  ;;  %v2387_v14 = vld [vmem:[#allocation2 + $0x108] sm:$0xff]  ;;  %v3632_v42 = vld [vmem:[#allocation6 + $0x1c0] sm:$0xff] }
 0x218   :  { %3002 = vst [vmem:[#allocation3] sm:$0xff] %v2998_v2  ;;  %v2995_v54 = vadd.f32 %v7807_v46, %v2984_v44  ;;  %2372 = vst [vmem:[#allocation2 + $0xa0] sm:$0x1f] %v2308_v25  ;;  %v2852_v34 = vadd.f32 %v2670_v52, %v2378_v40  ;;  %v3631_v25 = vld [vmem:[#allocation6 + $0x1b8] sm:$0xff] }
 0x219   :  { %v2674_v43 = vpop.f32.mrf.mxu0 }
 0x21a   :  { %v2999_v18 = vmax.f32 %v2995_v54, 0.0  ;;  %v2985_v36 = vmax.f32 %v2851_v53, %v2852_v34  ;;  %v2853_v24 = vadd.f32 %v2674_v43, %v2379_v49  ;;  %v3630_v53 = vld [vmem:[#allocation6 + $0x1b0] sm:$0xff]  ;;  %v3629_v43 = vld [vmem:[#allocation6 + $0x1a8] sm:$0xff]  ;;  %v2389_v49 = vld [vmem:[#allocation2 + $0xe0] sm:$0xff] }
 0x21b   :  { %v2676_v5 = vpop.f32.mrf.mxu0 }
 0x21c   :  { %3003 = vst [vmem:[#allocation3 + $0x8] sm:$0xff] %v2999_v18  ;;  %v2996_v4 = vadd.f32 %v7807_v46, %v2985_v36  ;;  %v2854_v35 = vadd.f32 %v2676_v5, %v2380_v20  ;;  %v2390_v20 = vld [vmem:[#allocation2 + $0x188] sm:$0xff] }
 0x21d   :  { %v2680_v51 = vpop.f32.mrf.mxu0 }
 0x21e   :  { %v3000_v62 = vmax.f32 %v2996_v4, 0.0  ;;  %v2986_v63 = vmax.f32 %v2853_v24, %v2854_v35  ;;  %v2855_v29 = vadd.f32 %v2680_v51, %v2381_v11  ;;  %v3627_v4 = vld [vmem:[#allocation6 + $0x198] sm:$0xff]  ;;  %v3625_v11 = vld [vmem:[#allocation6 + $0x188] sm:$0xff] }
 0x21f   :  { %v2682_v3 = vpop.f32.mrf.mxu0 }
 0x220   :  { %3004 = vst [vmem:[#allocation3 + $0x10] sm:$0xff] %v3000_v62  ;;  %v2997_v1 = vadd.f32 %v7807_v46, %v2986_v63  ;;  %v2856_v38 = vadd.f32 %v2682_v3, %v2382_v48  ;;  %v3626_v62 = vld [vmem:[#allocation6 + $0x190] sm:$0xff] }
 0x221   :  { %v2686_v39 = vpop.f32.mrf.mxu0 }
 0x222   :  { %v3001_v6 = vmax.f32 %v2997_v1, 0.0  ;;  %v3025_v22 = vmax.f32 %v2855_v29, %v2856_v38  ;;  %v2857_v15 = vadd.f32 %v2686_v39, %v2383_v23  ;;  %v2391_v1 = vld [vmem:[#allocation2 + $0x138] sm:$0xff]  ;;  %v3624_v29 = vld [vmem:[#allocation6 + $0x180] sm:$0xff] }
 0x223   :  { %v2688_v60 = vpop.f32.mrf.mxu0  ;;  %v3006_v8 = vld [vmem:[#allocation3] ss:$2 sm:$0xff]  ;;  %v3010_v9 = vld [vmem:[#allocation3 + $0x1] ss:$2 sm:$0xff] }
 0x224   :  { %3005 = vst [vmem:[#allocation3 + $0x18] sm:$0xff] %v3001_v6  ;;  %v3036_v32 = vadd.f32 %v7807_v46, %v3025_v22  ;;  %v2858_v31 = vadd.f32 %v2688_v60, %v2384_v57  ;;  %v3013_v56 = vmax.f32 %v3006_v8, %v3010_v9  ;;  %v2392_v38 = vld [vmem:[#allocation2 + $0x140] sm:$0xff] }
 0x225   :  { %v2692_v10 = vpop.f32.mrf.mxu0 }
 0x226   :  { %v3040_v7 = vmax.f32 %v3036_v32, 0.0  ;;  %v3026_v17 = vmax.f32 %v2857_v15, %v2858_v31  ;;  %3015 = vst [vmem:[#allocation4] sm:$0xff] %v3013_v56  ;;  %3431 = vmatmul.mubr.f32.vlgmr.msra.gmra.mxu1 %v3013_v56  ;;  %v2859_v33 = vadd.f32 %v2692_v10, %v2385_v55  ;;  %v3623_v15 = vld [vmem:[#allocation6 + $0x178] sm:$0xff]  ;;  %v4556_v31 = vld [vmem:[#allocation6 + $0x4f0] sm:$0xff]  ;;  %v2393_v10 = vld [vmem:[#allocation2 + $0x80] sm:$0xff] }
 0x227   :  { %v2694_v45 = vpop.f32.mrf.mxu0  ;;  %3436 = vmatprep.mubr.f32.mxu1 %v8467_v59  ;;  %3641 = vmatpush1.msra.mxu1 %v3638_v26  ;;  %v3621_v55 = vld [vmem:[#allocation6 + $0x168] sm:$0xff] }
 0x228   :  { %3044 = vst [vmem:[#allocation3 + $0x20] sm:$0xff] %v3040_v7  ;;  %v3037_v61 = vadd.f32 %v7807_v46, %v3026_v17  ;;  %v2860_v16 = vadd.f32 %v2694_v45, %v2386_v37  ;;  %3642 = vmatprep.subr.mxu1 %v3637_v58  ;;  %v3622_v58 = vld [vmem:[#allocation6 + $0x170] sm:$0xff]  ;;  %v4555_v7 = vld [vmem:[#allocation6 + $0x4e8] sm:$0xff]  ;;  %v4554_v37 = vld [vmem:[#allocation6 + $0x4e0] sm:$0xff] }
 0x229   :  { %v2698_v28 = vpop.f32.mrf.mxu0  ;;  %3643 = vmatpush1.msra.mxu1 %v3636_v19  ;;  %v2394_v17 = vld [vmem:[#allocation2 + $0x1a8] sm:$0xff] }
 0x22a   :  { %v3041_v13 = vmax.f32 %v3037_v61, 0.0  ;;  %v3027_v30 = vmax.f32 %v2859_v33, %v2860_v16  ;;  %3644 = vmatprep.subr.mxu1 %v3635_v47  ;;  %v2861_v40 = vadd.f32 %v2698_v28, %v2387_v14  ;;  %v3620_v33 = vld [vmem:[#allocation6 + $0x160] sm:$0xff]  ;;  %v4553_v16 = vld [vmem:[#allocation6 + $0x4d8] sm:$0xff] }
 0x22b   :  { %v2700_v0 = vpop.f32.mrf.mxu0  ;;  %v3008_v2 = vld [vmem:[#allocation3 + $0x10] ss:$2 sm:$0xff]  ;;  %v3012_v44 = vld [vmem:[#allocation3 + $0x11] ss:$2 sm:$0xff]  ;;  %3645 = vmatpush1.msra.mxu1 %v3634_v27 }
 0x22c   :  { %3045 = vst [vmem:[#allocation3 + $0x28] sm:$0xff] %v3041_v13  ;;  %v3038_v41 = vadd.f32 %v7807_v46, %v3027_v30  ;;  %v2862_v52 = vadd.f32 %v2700_v0, %v2388_v21  ;;  %v3014_v54 = vmax.f32 %v3008_v2, %v3012_v44  ;;  %3646 = vmatprep.subr.mxu1 %v3633_v12  ;;  %v3619_v28 = vld [vmem:[#allocation6 + $0x158] sm:$0xff]  ;;  %v4552_v12 = vld [vmem:[#allocation6 + $0x4d0] sm:$0xff]  ;;  %v2396_v2 = vld [vmem:[#allocation2 + $0x28] sm:$0xff] }
 0x22d   :  { %v2704_v34 = vpop.f32.mrf.mxu0  ;;  %3647 = vmatpush1.msra.mxu1 %v3632_v42  ;;  %v2395_v14 = vld [vmem:[#allocation2 + $0x1b8] sm:$0xff]  ;;  %v3618_v21 = vld [vmem:[#allocation6 + $0x150] sm:$0xff]  ;;  %v4551_v42 = vld [vmem:[#allocation6 + $0x4c8] sm:$0xff] }
 0x22e   :  { %v3042_v18 = vmax.f32 %v3038_v41, 0.0  ;;  %v3028_v36 = vmax.f32 %v2861_v40, %v2862_v52  ;;  %3016 = vst [vmem:[#allocation4 + $0x8] sm:$0xff] %v3014_v54  ;;  %3437 = vmatmul.mubr.f32.gmra.mxu1 %v3014_v54  ;;  %3648 = vmatprep.subr.mxu1 %v3631_v25  ;;  %v2863_v35 = vadd.f32 %v2704_v34, %v2389_v49  ;;  %v2397_v49 = vld [vmem:[#allocation2 + $0x1e8] sm:$0xff] }
 0x22f   :  { %v2706_v5 = vpop.f32.mrf.mxu0  ;;  %3442 = vmatprep.mubr.f32.mxu1 %v8467_v59  ;;  %3649 = vmatpush1.msra.mxu1 %v3630_v53 }
 0x230   :  { %3046 = vst [vmem:[#allocation3 + $0x30] sm:$0xff] %v3042_v18  ;;  %v3039_v24 = vadd.f32 %v7807_v46, %v3028_v36  ;;  %v2864_v51 = vadd.f32 %v2706_v5, %v2390_v20  ;;  %3650 = vmatprep.subr.mxu1 %v3629_v43  ;;  %v4550_v43 = vld [vmem:[#allocation6 + $0x4c0] sm:$0xff]  ;;  %v3617_v18 = vld [vmem:[#allocation6 + $0x148] sm:$0xff]  ;;  %v4549_v20 = vld [vmem:[#allocation6 + $0x4b8] sm:$0xff] }
 0x231   :  { %v2710_v63 = vpop.f32.mrf.mxu0  ;;  %3651 = vmatpush1.msra.mxu1 %v3628_v50  ;;  %v3616_v5 = vld [vmem:[#allocation6 + $0x140] sm:$0xff] }
 0x232   :  { %v3043_v48 = vmax.f32 %v3039_v24, 0.0  ;;  %v3068_v3 = vmax.f32 %v2863_v35, %v2864_v51  ;;  %3652 = vmatprep.subr.mxu1 %v3627_v4  ;;  %v2865_v57 = vadd.f32 %v2710_v63, %v2391_v1  ;;  %v2398_v4 = vld [vmem:[#allocation2 + $0xf8] sm:$0xff]  ;;  %v4548_v35 = vld [vmem:[#allocation6 + $0x4b0] sm:$0xff] }
 0x233   :  { %v2712_v39 = vpop.f32.mrf.mxu0  ;;  %v3049_v6 = vld [vmem:[#allocation3 + $0x20] ss:$2 sm:$0xff]  ;;  %v3053_v22 = vld [vmem:[#allocation3 + $0x21] ss:$2 sm:$0xff]  ;;  %3653 = vmatpush1.msra.mxu1 %v3626_v62  ;;  %v3615_v51 = vld [vmem:[#allocation6 + $0x138] sm:$0xff] }
 0x234   :  { %3047 = vst [vmem:[#allocation3 + $0x38] sm:$0xff] %v3043_v48  ;;  %v3079_v23 = vadd.f32 %v7807_v46, %v3068_v3  ;;  %v2866_v60 = vadd.f32 %v2712_v39, %v2392_v38  ;;  %v3056_v8 = vmax.f32 %v3049_v6, %v3053_v22  ;;  %3654 = vmatprep.subr.mxu1 %v3625_v11  ;;  %v4547_v48 = vld [vmem:[#allocation6 + $0x4a8] sm:$0xff]  ;;  %v3614_v3 = vld [vmem:[#allocation6 + $0x130] sm:$0xff]  ;;  %v2399_v22 = vld [vmem:[#allocation2 + $0x160] sm:$0xff] }
 0x235   :  { %v2716_v9 = vpop.f32.mrf.mxu0  ;;  %v3897_v32 = vld [vmem:[#allocation4 + $0x2] sm:$0xff]  ;;  %3655 = vmatpush1.msra.mxu1 %v3624_v29 }
 0x236   :  { %v3083_v56 = vmax.f32 %v3079_v23, 0.0  ;;  %v3069_v26 = vmax.f32 %v2865_v57, %v2866_v60  ;;  %4011 = vmatmul.mubr.f32.vlgmr.msra.gmra.mxu0 %v3897_v32  ;;  %3058 = vst [vmem:[#allocation4 + $0x10] sm:$0xff] %v3056_v8  ;;  %3443 = vmatmul.mubr.f32.gmra.mxu1 %v3056_v8  ;;  %v2867_v47 = vadd.f32 %v2716_v9, %v2393_v10  ;;  %v4546_v29 = vld [vmem:[#allocation6 + $0x4a0] sm:$0xff]  ;;  %v3613_v38 = vld [vmem:[#allocation6 + $0x128] sm:$0xff]  ;;  %v4545_v23 = vld [vmem:[#allocation6 + $0x498] sm:$0xff] }
 0x237   :  { %v2718_v19 = vpop.f32.mrf.mxu0  ;;  %4016 = vmatprep.mubr.f32.mxu0 %v8467_v59  ;;  %3448 = vmatprep.mubr.f32.mxu1 %v8467_v59  ;;  %v3612_v57 = vld [vmem:[#allocation6 + $0x120] sm:$0xff]  ;;  %v2400_v8 = vld [vmem:[#allocation2 + $0x30] sm:$0xff] }
 0x238   :  { %3087 = vst [vmem:[#allocation3 + $0x40] sm:$0xff] %v3083_v56  ;;  %v3080_v45 = vadd.f32 %v7807_v46, %v3069_v26  ;;  %v2868_v61 = vadd.f32 %v2718_v19, %v2394_v17  ;;  %3656 = vmatprep.subr.mxu1 %v3623_v15  ;;  %4559 = vmatpush1.msra.mxu0 %v4556_v31  ;;  %v3611_v17 = vld [vmem:[#allocation6 + $0x118] sm:$0xff] }
 0x239   :  { %v2722_v27 = vpop.f32.mrf.mxu0  ;;  %3657 = vmatpush1.msra.mxu1 %v3622_v58  ;;  %4560 = vmatprep.subr.mxu0 %v4555_v7  ;;  %v4544_v7 = vld [vmem:[#allocation6 + $0x490] sm:$0xff] }
 0x23a   :  { %v3084_v13 = vmax.f32 %v3080_v45, 0.0  ;;  %v3070_v30 = vmax.f32 %v2867_v47, %v2868_v61  ;;  %3658 = vmatprep.subr.mxu1 %v3621_v55  ;;  %4561 = vmatpush1.msra.mxu0 %v4554_v37  ;;  %v2869_v0 = vadd.f32 %v2722_v27, %v2395_v14  ;;  %v2401_v37 = vld [vmem:[#allocation2 + $0x1e0] sm:$0xff]  ;;  %v4543_v45 = vld [vmem:[#allocation6 + $0x488] sm:$0xff]  ;;  %v3610_v47 = vld [vmem:[#allocation6 + $0x110] sm:$0xff] }
 0x23b   :  { %v2724_v44 = vpop.f32.mrf.mxu0  ;;  %v3051_v25 = vld [vmem:[#allocation3 + $0x30] ss:$2 sm:$0xff]  ;;  %v3055_v41 = vld [vmem:[#allocation3 + $0x31] ss:$2 sm:$0xff]  ;;  %3659 = vmatpush1.msra.mxu1 %v3620_v33  ;;  %4562 = vmatprep.subr.mxu0 %v4553_v16  ;;  %v2402_v61 = vld [vmem:[#allocation2] sm:$0xff] }
 0x23c   :  { %3088 = vst [vmem:[#allocation3 + $0x48] sm:$0xff] %v3084_v13  ;;  %v3081_v40 = vadd.f32 %v7807_v46, %v3070_v30  ;;  %v2870_v52 = vadd.f32 %v2724_v44, %v2396_v2  ;;  %v3057_v54 = vmax.f32 %v3051_v25, %v3055_v41  ;;  %3660 = vmatprep.subr.mxu1 %v3619_v28  ;;  %v4542_v16 = vld [vmem:[#allocation6 + $0x480] sm:$0xff]  ;;  %v3609_v27 = vld [vmem:[#allocation6 + $0x108] sm:$0xff]  ;;  %v4541_v30 = vld [vmem:[#allocation6 + $0x478] sm:$0xff] }
 0x23d   :  { %4563 = vmatpush1.msra.mxu0 %v4552_v12  ;;  %v2728_v53 = vpop.f32.mrf.mxu0  ;;  %v3898_v34 = vld [vmem:[#allocation4 + $0xa] sm:$0xff]  ;;  %3661 = vmatpush1.msra.mxu1 %v3618_v21  ;;  %v3608_v14 = vld [vmem:[#allocation6 + $0x100] sm:$0xff] }
 0x23e   :  { %4564 = vmatprep.subr.mxu0 %v4551_v42  ;;  %v3085_v36 = vmax.f32 %v3081_v40, 0.0  ;;  %v3071_v50 = vmax.f32 %v2869_v0, %v2870_v52  ;;  %4017 = vmatmul.mubr.f32.gmra.mxu0 %v3898_v34  ;;  %3059 = vst [vmem:[#allocation4 + $0x18] sm:$0xff] %v3057_v54  ;;  %v2871_v63 = vadd.f32 %v2728_v53, %v2397_v49  ;;  %v4540_v42 = vld [vmem:[#allocation6 + $0x470] sm:$0xff]  ;;  %v4251_v0 = vld [vmem:[#allocation6 + $0x3f8] sm:$0xff]  ;;  %v4539_v41 = vld [vmem:[#allocation6 + $0x468] sm:$0xff] }
 0x23f   :  { %3449 = vmatmul.mubr.f32.gmra.mxu1 %v3057_v54  ;;  %v2730_v24 = vpop.f32.mrf.mxu0  ;;  %4022 = vmatprep.mubr.f32.mxu0 %v8467_v59  ;;  %v2403_v25 = vld [vmem:[#allocation2 + $0xf0] sm:$0xff]  ;;  %v2404_v52 = vld [vmem:[#allocation2 + $0x8] sm:$0xff] }
 0x240   :  { %3454 = vmatprep.mubr.f32.mxu1 %v8467_v59  ;;  %3089 = vst [vmem:[#allocation3 + $0x50] sm:$0xff] %v3085_v36  ;;  %v3082_v62 = vadd.f32 %v7807_v46, %v3071_v50  ;;  %v2872_v11 = vadd.f32 %v2730_v24, %v2398_v4  ;;  %4565 = vmatpush1.msra.mxu0 %v4550_v43  ;;  %v2405_v50 = vld [vmem:[#allocation2 + $0x148] sm:$0xff] }
 0x241   :  { %3662 = vmatprep.subr.mxu1 %v3617_v18  ;;  %v2734_v1 = vpop.f32.mrf.mxu0  ;;  %4566 = vmatprep.subr.mxu0 %v4549_v20 }
 0x242   :  { %3663 = vmatpush1.msra.mxu1 %v3616_v5  ;;  %v3086_v39 = vmax.f32 %v3082_v62, 0.0  ;;  %v3111_v6 = vmax.f32 %v2871_v63, %v2872_v11  ;;  %4567 = vmatpush1.msra.mxu0 %v4548_v35  ;;  %v2873_v60 = vadd.f32 %v2734_v1, %v2399_v22  ;;  %v4538_v5 = vld [vmem:[#allocation6 + $0x460] sm:$0xff]  ;;  %v2406_v62 = vld [vmem:[#allocation2 + $0x1d0] sm:$0xff]  ;;  %v4535_v1 = vld [vmem:[#allocation6 + $0x448] sm:$0xff] }
 0x243   :  { %3664 = vmatprep.subr.mxu1 %v3615_v51  ;;  %v2736_v9 = vpop.f32.mrf.mxu0  ;;  %v3092_v32 = vld [vmem:[#allocation3 + $0x40] ss:$2 sm:$0xff]  ;;  %v3096_v15 = vld [vmem:[#allocation3 + $0x41] ss:$2 sm:$0xff]  ;;  %4568 = vmatprep.subr.mxu0 %v4547_v48  ;;  %v4537_v51 = vld [vmem:[#allocation6 + $0x458] sm:$0xff] }
 0x244   :  { %3665 = vmatpush1.msra.mxu1 %v3614_v3  ;;  %3090 = vst [vmem:[#allocation3 + $0x58] sm:$0xff] %v3086_v39  ;;  %v3122_v31 = vadd.f32 %v7807_v46, %v3111_v6  ;;  %v2874_v56 = vadd.f32 %v2736_v9, %v2400_v8  ;;  %v3099_v26 = vmax.f32 %v3092_v32, %v3096_v15  ;;  %v4536_v11 = vld [vmem:[#allocation6 + $0x450] sm:$0xff]  ;;  %v4534_v39 = vld [vmem:[#allocation6 + $0x440] sm:$0xff] }
 0x245   :  { %4569 = vmatpush1.msra.mxu0 %v4546_v29  ;;  %3666 = vmatprep.subr.mxu1 %v3613_v38  ;;  %v2740_v10 = vpop.f32.mrf.mxu0  ;;  %v3899_v58 = vld [vmem:[#allocation4 + $0x12] sm:$0xff]  ;;  %v2407_v29 = vld [vmem:[#allocation2 + $0x100] sm:$0xff] }
 0x246   :  { %4570 = vmatprep.subr.mxu0 %v4545_v23  ;;  %3667 = vmatpush1.msra.mxu1 %v3612_v57  ;;  %v3126_v19 = vmax.f32 %v3122_v31, 0.0  ;;  %v3112_v55 = vmax.f32 %v2873_v60, %v2874_v56  ;;  %3101 = vst [vmem:[#allocation4 + $0x20] sm:$0xff] %v3099_v26  ;;  %v2875_v12 = vadd.f32 %v2740_v10, %v2401_v37  ;;  %v4533_v57 = vld [vmem:[#allocation6 + $0x438] sm:$0xff]  ;;  %v2408_v60 = vld [vmem:[#allocation2 + $0xc8] sm:$0xff] }
 0x247   :  { %4023 = vmatmul.mubr.f32.gmra.mxu0 %v3899_v58  ;;  %3455 = vmatmul.mubr.f32.gmra.mxu1 %v3099_v26  ;;  %v2742_v33 = vpop.f32.mrf.mxu0  ;;  %v2409_v26 = vld [vmem:[#allocation2 + $0x40] sm:$0xff]  ;;  %v4531_v37 = vld [vmem:[#allocation6 + $0x428] sm:$0xff] }
 0x248   :  { %4028 = vmatprep.mubr.f32.mxu0 %v8467_v59  ;;  %3460 = vmatprep.mubr.f32.mxu1 %v8467_v59  ;;  %3130 = vst [vmem:[#allocation3 + $0x60] sm:$0xff] %v3126_v19  ;;  %v3123_v28 = vadd.f32 %v7807_v46, %v3112_v55  ;;  %v2876_v13 = vadd.f32 %v2742_v33, %v2402_v61  ;;  %v4530_v61 = vld [vmem:[#allocation6 + $0x420] sm:$0xff] }
 0x249   :  { %4571 = vmatpush1.msra.mxu0 %v4544_v7  ;;  %3668 = vmatprep.subr.mxu1 %v3611_v17  ;;  %v2746_v21 = vpop.f32.mrf.mxu0  ;;  %v4532_v7 = vld [vmem:[#allocation6 + $0x430] sm:$0xff] }
 0x24a   :  { %4572 = vmatprep.subr.mxu0 %v4543_v45  ;;  %3669 = vmatpush1.msra.mxu1 %v3610_v47  ;;  %v3127_v2 = vmax.f32 %v3123_v28, 0.0  ;;  %v3113_v44 = vmax.f32 %v2875_v12, %v2876_v13  ;;  %v2877_v40 = vadd.f32 %v2746_v21, %v2403_v25  ;;  %v2410_v45 = vld [vmem:[#allocation2 + $0x1f8] sm:$0xff]  ;;  %v2411_v28 = vld [vmem:[#allocation2 + $0x20] sm:$0xff]  ;;  %v4528_v13 = vld [vmem:[#allocation6 + $0x410] sm:$0xff] }
 0x24b   :  { %4573 = vmatpush1.msra.mxu0 %v4542_v16  ;;  %3670 = vmatprep.subr.mxu1 %v3609_v27  ;;  %v2748_v54 = vpop.f32.mrf.mxu0  ;;  %v3094_v53 = vld [vmem:[#allocation3 + $0x50] ss:$2 sm:$0xff]  ;;  %v3098_v34 = vld [vmem:[#allocation3 + $0x51] ss:$2 sm:$0xff] }
 0x24c   :  { %4574 = vmatprep.subr.mxu0 %v4541_v30  ;;  %3671 = vmatpush1.msra.mxu1 %v3608_v14  ;;  %3131 = vst [vmem:[#allocation3 + $0x68] sm:$0xff] %v3127_v2  ;;  %v3124_v43 = vadd.f32 %v7807_v46, %v3113_v44  ;;  %v2878_v18 = vadd.f32 %v2748_v54, %v2404_v52  ;;  %v4529_v27 = vld [vmem:[#allocation6 + $0x418] sm:$0xff]  ;;  %v2413_v54 = vld [vmem:[#allocation2 + $0x1a0] sm:$0xff] }
 0x24d   :  { %v3100_v36 = vmax.f32 %v3094_v53, %v3098_v34  ;;  %4575 = vmatpush1.msra.mxu0 %v4540_v42  ;;  %4252 = vmatprep.subr.mxu1 %v4251_v0  ;;  %v2752_v49 = vpop.f32.mrf.mxu0  ;;  %v3900_v20 = vld [vmem:[#allocation4 + $0x1a] sm:$0xff]  ;;  %v4527_v42 = vld [vmem:[#allocation6 + $0x408] sm:$0xff] }
 0x24e   :  { %4576 = vmatprep.subr.mxu0 %v4539_v41  ;;  %v3128_v4 = vmax.f32 %v3124_v43, 0.0  ;;  %v3114_v24 = vmax.f32 %v2877_v40, %v2878_v18  ;;  %v2879_v35 = vadd.f32 %v2752_v49, %v2405_v50  ;;  %4029 = vmatmul.mubr.f32.gmra.mxu0 %v3900_v20  ;;  %v2412_v0 = vld [vmem:[#allocation2 + $0x128] sm:$0xff]  ;;  %v4526_v43 = vld [vmem:[#allocation6 + $0x400] sm:$0xff]  ;;  %v2414_v49 = vld [vmem:[#allocation2 + $0x1f0] sm:$0xff] }
 0x24f   :  { %3102 = vst [vmem:[#allocation4 + $0x28] sm:$0xff] %v3100_v36  ;;  %3461 = vmatmul.mubr.f32.gmra.mxu1 %v3100_v36  ;;  %v2754_v63 = vpop.f32.mrf.mxu0  ;;  %4034 = vmatprep.mubr.f32.mxu0 %v8467_v59 }
 0x250   :  { %3466 = vmatprep.mubr.f32.mxu1 %v8467_v59  ;;  %3132 = vst [vmem:[#allocation3 + $0x70] sm:$0xff] %v3128_v4  ;;  %v3125_v48 = vadd.f32 %v7807_v46, %v3114_v24  ;;  %2943 = vst [vmem:[#allocation2 + $0x148] sm:$0xff] %v2879_v35  ;;  %v2880_v3 = vadd.f32 %v2754_v63, %v2406_v62  ;;  %4577 = vmatpush1.msra.mxu0 %v4538_v5  ;;  %v2415_v24 = vld [vmem:[#allocation2 + $0xe8] sm:$0xff] }
 0x251   :  { %v2758_v38 = vpop.f32.mrf.mxu0  ;;  %4578 = vmatprep.subr.mxu0 %v4537_v51 }
 0x252   :  { %v3129_v6 = vmax.f32 %v3125_v48, 0.0  ;;  %2944 = vst [vmem:[#allocation2 + $0x1d0] sm:$0xff] %v2880_v3  ;;  %v3154_v22 = vmax.f32 %v2879_v35, %v2880_v3  ;;  %v2881_v23 = vadd.f32 %v2758_v38, %v2407_v29  ;;  %4579 = vmatpush1.msra.mxu0 %v4536_v11  ;;  %v2416_v11 = vld [vmem:[#allocation2 + $0x78] sm:$0xff] }
 0x253   :  { %v2760_v8 = vpop.f32.mrf.mxu0  ;;  %v3135_v9 = vld [vmem:[#allocation3 + $0x60] ss:$2 sm:$0xff]  ;;  %v3139_v32 = vld [vmem:[#allocation3 + $0x61] ss:$2 sm:$0xff]  ;;  %4580 = vmatprep.subr.mxu0 %v4535_v1 }
 0x254   :  { %3133 = vst [vmem:[#allocation3 + $0x78] sm:$0xff] %v3129_v6  ;;  %v3165_v15 = vadd.f32 %v7807_v46, %v3154_v22  ;;  %2945 = vst [vmem:[#allocation2 + $0x100] sm:$0xff] %v2881_v23  ;;  %v2882_v31 = vadd.f32 %v2760_v8, %v2408_v60  ;;  %v3142_v56 = vmax.f32 %v3135_v9, %v3139_v32  ;;  %4581 = vmatpush1.msra.mxu0 %v4534_v39  ;;  %v2417_v6 = vld [vmem:[#allocation2 + $0x70] sm:$0xff] }
 0x255   :  { %v2764_v10 = vpop.f32.mrf.mxu0  ;;  %4582 = vmatprep.subr.mxu0 %v4533_v57  ;;  %v2418_v9 = vld [vmem:[#allocation2 + $0x90] sm:$0xff] }
 0x256   :  { %v3901_v58 = vld [vmem:[#allocation4 + $0x22] sm:$0xff]  ;;  %v3169_v17 = vmax.f32 %v3165_v15, 0.0  ;;  %2946 = vst [vmem:[#allocation2 + $0xc8] sm:$0xff] %v2882_v31  ;;  %v3155_v19 = vmax.f32 %v2881_v23, %v2882_v31  ;;  %v2883_v55 = vadd.f32 %v2764_v10, %v2409_v26  ;;  %3144 = vst [vmem:[#allocation4 + $0x30] sm:$0xff] %v3142_v56  ;;  %3467 = vmatmul.mubr.f32.gmra.mxu1 %v3142_v56  ;;  %4583 = vmatpush1.msra.mxu0 %v4532_v7  ;;  %v2419_v56 = vld [vmem:[#allocation2 + $0x1d8] sm:$0xff] }
 0x257   :  { %4035 = vmatmul.mubr.f32.gmra.mxu0 %v3901_v58  ;;  %v2766_v47 = vpop.f32.mrf.mxu0  ;;  %3472 = vmatprep.mubr.f32.mxu1 %v8467_v59 }
 0x258   :  { %4040 = vmatprep.mubr.f32.mxu0 %v8467_v59  ;;  %3173 = vst [vmem:[#allocation3 + $0x80] sm:$0xff] %v3169_v17  ;;  %v3166_v33 = vadd.f32 %v7807_v46, %v3155_v19  ;;  %2947 = vst [vmem:[#allocation2 + $0x40] sm:$0xff] %v2883_v55  ;;  %v2884_v16 = vadd.f32 %v2766_v47, %v2410_v45  ;;  %4584 = vmatprep.subr.mxu0 %v4531_v37  ;;  %v2420_v17 = vld [vmem:[#allocation2 + $0xd0] sm:$0xff] }
 0x259   :  { %v2770_v12 = vpop.f32.mrf.mxu0  ;;  %4585 = vmatpush1.msra.mxu0 %v4530_v61 }
 0x25a   :  { %v3170_v30 = vmax.f32 %v3166_v33, 0.0  ;;  %2948 = vst [vmem:[#allocation2 + $0x1f8] sm:$0xff] %v2884_v16  ;;  %v3156_v14 = vmax.f32 %v2883_v55, %v2884_v16  ;;  %v2885_v21 = vadd.f32 %v2770_v12, %v2411_v28  ;;  %4586 = vmatprep.subr.mxu0 %v4529_v27  ;;  %v2421_v33 = vld [vmem:[#allocation2 + $0xb8] sm:$0xff] }
 0x25b   :  { %v2772_v2 = vpop.f32.mrf.mxu0  ;;  %v3137_v44 = vld [vmem:[#allocation3 + $0x70] ss:$2 sm:$0xff]  ;;  %v3141_v25 = vld [vmem:[#allocation3 + $0x71] ss:$2 sm:$0xff]  ;;  %4587 = vmatpush1.msra.mxu0 %v4528_v13 }
 0x25c   :  { %3174 = vst [vmem:[#allocation3 + $0x88] sm:$0xff] %v3170_v30  ;;  %v3167_v41 = vadd.f32 %v7807_v46, %v3156_v14  ;;  %2949 = vst [vmem:[#allocation2 + $0x20] sm:$0xff] %v2885_v21  ;;  %v2886_v40 = vadd.f32 %v2772_v2, %v2412_v0  ;;  %v3143_v52 = vmax.f32 %v3137_v44, %v3141_v25  ;;  %4588 = vmatprep.subr.mxu0 %v4527_v42  ;;  %v2422_v30 = vld [vmem:[#allocation2 + $0x88] sm:$0xff]  ;;  %v7855_v0 = vld [vmem:[%s8433_s2] ss:$0 sm:$0xff] }
 0x25d   :  { %v2776_v53 = vpop.f32.mrf.mxu0  ;;  %v3902_v34 = vld [vmem:[#allocation4 + $0x2a] sm:$0xff]  ;;  %4589 = vmatpush1.msra.mxu0 %v4526_v43 }
 0x25e   :  { %v3171_v18 = vmax.f32 %v3167_v41, 0.0  ;;  %2950 = vst [vmem:[#allocation2 + $0x128] sm:$0xff] %v2886_v40  ;;  %v3157_v36 = vmax.f32 %v2885_v21, %v2886_v40  ;;  %v2887_v50 = vadd.f32 %v2776_v53, %v2413_v54  ;;  %4041 = vmatmul.mubr.f32.gmra.mxu0 %v3902_v34  ;;  %3145 = vst [vmem:[#allocation4 + $0x38] sm:$0xff] %v3143_v52  ;;  %3473 = vmatmul.mubr.f32.gmra.mxu1 %v3143_v52  ;;  %v2423_v2 = vld [vmem:[#allocation2 + $0xa8] sm:$0xff] }
 0x25f   :  { %v2778_v20 = vpop.f32.mrf.mxu0  ;;  %4046 = vmatprep.mubr.f32.mxu0 %v8467_v59  ;;  %3478 = vmatprep.mubr.f32.mxu1 %v8467_v59  ;;  %v2424_v52 = vld [vmem:[#allocation2 + $0x1c8] sm:$0xff] }
 0x260   :  { %3175 = vst [vmem:[#allocation3 + $0x90] sm:$0xff] %v3171_v18  ;;  %v3168_v5 = vadd.f32 %v7807_v46, %v3157_v36  ;;  %2951 = vst [vmem:[#allocation2 + $0x1a0] sm:$0xff] %v2887_v50  ;;  %v2888_v4 = vadd.f32 %v2778_v20, %v2414_v49  ;;  %6091 = vmatprep.subr.mxu0 %v8467_v59  ;;  %v2425_v36 = vld [vmem:[#allocation2 + $0x170] sm:$0xff] }
 0x261   :  { %v2782_v35 = vpop.f32.mrf.mxu0 }
 0x262   :  { %v3172_v51 = vmax.f32 %v3168_v5, 0.0  ;;  %2952 = vst [vmem:[#allocation2 + $0x1f0] sm:$0xff] %v2888_v4  ;;  %v3197_v62 = vmax.f32 %v2887_v50, %v2888_v4  ;;  %v2889_v63 = vadd.f32 %v2782_v35, %v2415_v24  ;;  %v2426_v24 = vld [vmem:[#allocation2 + $0x178] sm:$0xff] }
 0x263   :  { %v2784_v48 = vpop.f32.mrf.mxu0  ;;  %v3178_v3 = vld [vmem:[#allocation3 + $0x80] ss:$2 sm:$0xff]  ;;  %v3182_v1 = vld [vmem:[#allocation3 + $0x81] ss:$2 sm:$0xff] }
 0x264   :  { %3176 = vst [vmem:[#allocation3 + $0x98] sm:$0xff] %v3172_v51  ;;  %v3208_v29 = vadd.f32 %v7807_v46, %v3197_v62  ;;  %2953 = vst [vmem:[#allocation2 + $0xe8] sm:$0xff] %v2889_v63  ;;  %v2890_v38 = vadd.f32 %v2784_v48, %v2416_v11  ;;  %v3185_v39 = vmax.f32 %v3178_v3, %v3182_v1 }
 0x265   :  { %v2788_v22 = vpop.f32.mrf.mxu0  ;;  %v3903_v23 = vld [vmem:[#allocation4 + $0x32] sm:$0xff] }
 0x266   :  { %v3212_v57 = vmax.f32 %v3208_v29, 0.0  ;;  %2954 = vst [vmem:[#allocation2 + $0x78] sm:$0xff] %v2890_v38  ;;  %v3198_v60 = vmax.f32 %v2889_v63, %v2890_v38  ;;  %v2891_v8 = vadd.f32 %v2788_v22, %v2417_v6  ;;  %4047 = vmatmul.mubr.f32.gmra.mxu0 %v3903_v23  ;;  %3187 = vst [vmem:[#allocation4 + $0x40] sm:$0xff] %v3185_v39  ;;  %3479 = vmatmul.mubr.f32.gmra.mxu1 %v3185_v39  ;;  %v2427_v63 = vld [vmem:[#allocation2 + $0x68] sm:$0xff]  ;;  %v2428_v29 = vld [vmem:[#allocation2 + $0x190] sm:$0xff] }
 0x267   :  { %v2790_v32 = vpop.f32.mrf.mxu0  ;;  %4052 = vmatprep.mubr.f32.mxu0 %v8467_v59  ;;  %3484 = vmatprep.mubr.f32.mxu1 %v8467_v59 }
 0x268   :  { %3216 = vst [vmem:[#allocation3 + $0xa0] sm:$0xff] %v3212_v57  ;;  %v3209_v15 = vadd.f32 %v7807_v46, %v3198_v60  ;;  %2955 = vst [vmem:[#allocation2 + $0x70] sm:$0xff] %v2891_v8  ;;  %v2892_v31 = vadd.f32 %v2790_v32, %v2418_v9  ;;  %v2429_v60 = vld [vmem:[#allocation2 + $0x198] sm:$0xff] }
 0x269   :  { %v2794_v26 = vpop.f32.mrf.mxu0 }
 0x26a   :  { %v3213_v10 = vmax.f32 %v3209_v15, 0.0  ;;  %2956 = vst [vmem:[#allocation2 + $0x90] sm:$0xff] %v2892_v31  ;;  %v3199_v58 = vmax.f32 %v2891_v8, %v2892_v31  ;;  %v2893_v7 = vadd.f32 %v2794_v26, %v2419_v56  ;;  %v2430_v56 = vld [vmem:[#allocation2 + $0x38] sm:$0xff] }
 0x26b   :  { %v2796_v19 = vpop.f32.mrf.mxu0  ;;  %v3180_v55 = vld [vmem:[#allocation3 + $0x90] ss:$2 sm:$0xff]  ;;  %v3184_v37 = vld [vmem:[#allocation3 + $0x91] ss:$2 sm:$0xff] }
 0x26c   :  { %3217 = vst [vmem:[#allocation3 + $0xa8] sm:$0xff] %v3213_v10  ;;  %v3210_v45 = vadd.f32 %v7807_v46, %v3199_v58  ;;  %2957 = vst [vmem:[#allocation2 + $0x1d8] sm:$0xff] %v2893_v7  ;;  %v2894_v47 = vadd.f32 %v2796_v19, %v2420_v17  ;;  %v3186_v61 = vmax.f32 %v3180_v55, %v3184_v37 }
 0x26d   :  { %v2800_v16 = vpop.f32.mrf.mxu0  ;;  %v3904_v27 = vld [vmem:[#allocation4 + $0x3a] sm:$0xff] }
 0x26e   :  { %v3214_v28 = vmax.f32 %v3210_v45, 0.0  ;;  %2958 = vst [vmem:[#allocation2 + $0xd0] sm:$0xff] %v2894_v47  ;;  %v3200_v12 = vmax.f32 %v2893_v7, %v2894_v47  ;;  %v2895_v13 = vadd.f32 %v2800_v16, %v2421_v33  ;;  %4053 = vmatmul.mubr.f32.gmra.mxu0 %v3904_v27  ;;  %3188 = vst [vmem:[#allocation4 + $0x48] sm:$0xff] %v3186_v61  ;;  %3485 = vmatmul.mubr.f32.gmra.mxu1 %v3186_v61  ;;  %v2431_v7 = vld [vmem:[#allocation2 + $0xc0] sm:$0xff] }
 0x26f   :  { %v2802_v14 = vpop.f32.mrf.mxu0  ;;  %4058 = vmatprep.mubr.f32.mxu0 %v8467_v59  ;;  %3490 = vmatprep.mubr.f32.mxu1 %v8467_v59  ;;  %v2432_v45 = vld [vmem:[#allocation2 + $0x1c0] sm:$0xff] }
 0x270   :  { %3218 = vst [vmem:[#allocation3 + $0xb0] sm:$0xff] %v3214_v28  ;;  %v3211_v21 = vadd.f32 %v7807_v46, %v3200_v12  ;;  %2959 = vst [vmem:[#allocation2 + $0xb8] sm:$0xff] %v2895_v13  ;;  %v2896_v42 = vadd.f32 %v2802_v14, %v2422_v30  ;;  %v2433_v12 = vld [vmem:[#allocation2 + $0x158] sm:$0xff] }
 0x271   :  { %v2806_v44 = vpop.f32.mrf.mxu0 }
 0x272   :  { %v3215_v25 = vmax.f32 %v3211_v21, 0.0  ;;  %2960 = vst [vmem:[#allocation2 + $0x88] sm:$0xff] %v2896_v42  ;;  %v3240_v41 = vmax.f32 %v2895_v13, %v2896_v42  ;;  %v2897_v40 = vadd.f32 %v2806_v44, %v2423_v2  ;;  %v2434_v2 = vld [vmem:[#allocation2 + $0x10] sm:$0xff] }
 0x273   :  { %v2808_v54 = vpop.f32.mrf.mxu0  ;;  %v3221_v53 = vld [vmem:[#allocation3 + $0xa0] ss:$2 sm:$0xff]  ;;  %v3225_v34 = vld [vmem:[#allocation3 + $0xa1] ss:$2 sm:$0xff] }
 0x274   :  { %3219 = vst [vmem:[#allocation3 + $0xb8] sm:$0xff] %v3215_v25  ;;  %v3251_v46 = vadd.f32 %v7855_v0, %v3240_v41  ;;  %2961 = vst [vmem:[#allocation2 + $0xa8] sm:$0xff] %v2897_v40  ;;  %v2898_v43 = vadd.f32 %v2808_v54, %v2424_v52  ;;  %v3228_v18 = vmax.f32 %v3221_v53, %v3225_v34 }
 0x275   :  { %v2812_v50 = vpop.f32.mrf.mxu0  ;;  %v3905_v49 = vld [vmem:[#allocation4 + $0x42] sm:$0xff] }
 0x276   :  { %v3255_v20 = vmax.f32 %v3251_v46, 0.0  ;;  %2962 = vst [vmem:[#allocation2 + $0x1c8] sm:$0xff] %v2898_v43  ;;  %v3241_v5 = vmax.f32 %v2897_v40, %v2898_v43  ;;  %v2899_v4 = vadd.f32 %v2812_v50, %v2425_v36  ;;  %4059 = vmatmul.mubr.f32.gmra.mxu0 %v3905_v49  ;;  %3230 = vst [vmem:[#allocation4 + $0x50] sm:$0xff] %v3228_v18  ;;  %3491 = vmatmul.mubr.f32.gmra.mxu1 %v3228_v18  ;;  %v2435_v40 = vld [vmem:[#allocation2 + $0x58] sm:$0xf] }
 0x277   :  { %v2814_v35 = vpop.f32.mrf.mxu0  ;;  %4064 = vmatprep.mubr.f32.mxu0 %v8467_v59  ;;  %3496 = vmatprep.mubr.f32.mxu1 %v8467_v59  ;;  %v2436_v46 = vld [vmem:[#allocation2 + $0xa0] sm:$0xf] }
 0x278   :  { %3259 = vst [vmem:[#allocation3 + $0xc0] sm:$0xff] %v3255_v20  ;;  %v3252_v51 = vadd.f32 %v7855_v0, %v3241_v5  ;;  %2963 = vst [vmem:[#allocation2 + $0x170] sm:$0xff] %v2899_v4  ;;  %v2900_v62 = vadd.f32 %v2814_v35, %v2426_v24 }
 0x279   :  { %v2818_v11 = vpop.f32.mrf.mxu0 }
 0x27a   :  { %v3256_v48 = vmax.f32 %v3252_v51, 0.0  ;;  %2964 = vst [vmem:[#allocation2 + $0x178] sm:$0xff] %v2900_v62  ;;  %v3242_v3 = vmax.f32 %v2899_v4, %v2900_v62  ;;  %v2901_v1 = vadd.f32 %v2818_v11, %v2427_v63 }
 0x27b   :  { %v2820_v38 = vpop.f32.mrf.mxu0  ;;  %v3223_v39 = vld [vmem:[#allocation3 + $0xb0] ss:$2 sm:$0xff]  ;;  %v3227_v6 = vld [vmem:[#allocation3 + $0xb1] ss:$2 sm:$0xff] }
 0x27c   :  { %3260 = vst [vmem:[#allocation3 + $0xc8] sm:$0xff] %v3256_v48  ;;  %v3253_v22 = vadd.f32 %v7855_v0, %v3242_v3  ;;  %2965 = vst [vmem:[#allocation2 + $0x68] sm:$0xff] %v2901_v1  ;;  %v2902_v23 = vadd.f32 %v2820_v38, %v2428_v29  ;;  %v3229_v57 = vmax.f32 %v3223_v39, %v3227_v6 }
 0x27d   :  { %v2824_v8 = vpop.f32.mrf.mxu0  ;;  %v3906_v9 = vld [vmem:[#allocation4 + $0x4a] sm:$0xff] }
 0x27e   :  { %v3257_v32 = vmax.f32 %v3253_v22, 0.0  ;;  %2966 = vst [vmem:[#allocation2 + $0x190] sm:$0xff] %v2902_v23  ;;  %v3243_v15 = vmax.f32 %v2901_v1, %v2902_v23  ;;  %v2903_v31 = vadd.f32 %v2824_v8, %v2429_v60  ;;  %4065 = vmatmul.mubr.f32.gmra.mxu0 %v3906_v9  ;;  %3231 = vst [vmem:[#allocation4 + $0x58] sm:$0xff] %v3229_v57  ;;  %3497 = vmatmul.mubr.f32.gmra.mxu1 %v3229_v57  ;;  %v4250_v22 = vld [vmem:[#allocation6 + $0x3f0] sm:$0xff]  ;;  %v3591_v23 = vld [vmem:[#allocation4 + $0x1] sm:$0xff] }
 0x27f   :  { %v2826_v26 = vpop.f32.mrf.mxu0  ;;  %4070 = vmatprep.mubr.f32.mxu0 %v8467_v59  ;;  %3502 = vmatprep.mubr.f32.mxu1 %v8467_v59  ;;  %v4249_v57 = vld [vmem:[#allocation6 + $0x3e8] sm:$0xff]  ;;  %v4248_v60 = vld [vmem:[#allocation6 + $0x3e0] sm:$0xff]  ;;  %v4247_v9 = vld [vmem:[#allocation6 + $0x3d8] sm:$0xff] }
 0x280   :  { %3261 = vst [vmem:[#allocation3 + $0xd0] sm:$0xff] %v3257_v32  ;;  %v3254_v10 = vadd.f32 %v7855_v0, %v3243_v15  ;;  %2967 = vst [vmem:[#allocation2 + $0x198] sm:$0xff] %v2903_v31  ;;  %v2904_v58 = vadd.f32 %v2826_v26, %v2430_v56  ;;  %v3592_v8 = vld [vmem:[#allocation4 + $0x9] sm:$0xff]  ;;  %v4244_v26 = vld [vmem:[#allocation6 + $0x3c0] sm:$0xff] }
 0x281   :  { %v2830_v17 = vpop.f32.mrf.mxu0  ;;  %v4246_v32 = vld [vmem:[#allocation6 + $0x3d0] sm:$0xff]  ;;  %v4245_v56 = vld [vmem:[#allocation6 + $0x3c8] sm:$0xff] }
 0x282   :  { %v3258_v19 = vmax.f32 %v3254_v10, 0.0  ;;  %2968 = vst [vmem:[#allocation2 + $0x38] sm:$0xff] %v2904_v58  ;;  %v3283_v55 = vmax.f32 %v2903_v31, %v2904_v58  ;;  %v2905_v37 = vadd.f32 %v2830_v17, %v2431_v7  ;;  %v3593_v31 = vld [vmem:[#allocation4 + $0x11] sm:$0xff]  ;;  %v4509_v10 = vld [vmem:[#allocation4 + $0x4] sm:$0xff]  ;;  %v3594_v58 = vld [vmem:[#allocation4 + $0x19] sm:$0xff] }
 0x283   :  { %v2832_v47 = vpop.f32.mrf.mxu0  ;;  %v3264_v61 = vld [vmem:[#allocation3 + $0xc0] ss:$2 sm:$0xff]  ;;  %v3268_v33 = vld [vmem:[#allocation3 + $0xc1] ss:$2 sm:$0xff]  ;;  %v4243_v7 = vld [vmem:[#allocation6 + $0x3b8] sm:$0xff] }
 0x284   :  { %3262 = vst [vmem:[#allocation3 + $0xd8] sm:$0xff] %v3258_v19  ;;  %v3294_v16 = vadd.f32 %v7855_v0, %v3283_v55  ;;  %2969 = vst [vmem:[#allocation2 + $0xc0] sm:$0xff] %v2905_v37  ;;  %v2906_v27 = vadd.f32 %v2832_v47, %v2432_v45  ;;  %v3271_v28 = vmax.f32 %v3264_v61, %v3268_v33  ;;  %v4242_v17 = vld [vmem:[#allocation6 + $0x3b0] sm:$0xff]  ;;  %v3595_v55 = vld [vmem:[#allocation4 + $0x21] sm:$0xff] }
 0x285   :  { %v2836_v13 = vpop.f32.mrf.mxu0  ;;  %v3907_v30 = vld [vmem:[#allocation4 + $0x52] sm:$0xff]  ;;  %v4240_v45 = vld [vmem:[#allocation6 + $0x3a0] sm:$0xff]  ;;  %v3596_v61 = vld [vmem:[#allocation4 + $0x29] sm:$0xff] }
 0x286   :  { %v3298_v14 = vmax.f32 %v3294_v16, 0.0  ;;  %2970 = vst [vmem:[#allocation2 + $0x1c0] sm:$0xff] %v2906_v27  ;;  %v3284_v21 = vmax.f32 %v2905_v37, %v2906_v27  ;;  %v2907_v42 = vadd.f32 %v2836_v13, %v2433_v12  ;;  %4071 = vmatmul.mubr.f32.gmra.mxu0 %v3907_v30  ;;  %3273 = vst [vmem:[#allocation4 + $0x60] sm:$0xff] %v3271_v28  ;;  %3503 = vmatmul.mubr.f32.gmra.mxu1 %v3271_v28  ;;  %v4510_v19 = vld [vmem:[#allocation4 + $0xc] sm:$0xff]  ;;  %v4511_v47 = vld [vmem:[#allocation4 + $0x14] sm:$0xff] }
 0x287   :  { %v2838_v44 = vpop.f32.mrf.mxu0  ;;  %4076 = vmatprep.mubr.f32.mxu0 %v8467_v59  ;;  %3508 = vmatprep.mubr.f32.mxu1 %v8467_v59  ;;  %v4241_v37 = vld [vmem:[#allocation6 + $0x3a8] sm:$0xff]  ;;  %v4239_v33 = vld [vmem:[#allocation6 + $0x398] sm:$0xff]  ;;  %v4238_v16 = vld [vmem:[#allocation6 + $0x390] sm:$0xff] }
 0x288   :  { %3302 = vst [vmem:[#allocation3 + $0xe0] sm:$0xff] %v3298_v14  ;;  %v3295_v25 = vadd.f32 %v7855_v0, %v3284_v21  ;;  %2971 = vst [vmem:[#allocation2 + $0x158] sm:$0xff] %v2907_v42  ;;  %v2908_v41 = vadd.f32 %v2838_v44, %v2434_v2  ;;  %v4512_v27 = vld [vmem:[#allocation4 + $0x1c] sm:$0xff]  ;;  %v3597_v28 = vld [vmem:[#allocation4 + $0x31] sm:$0xff] }
 0x289   :  { %v2842_v52 = vpop.f32.mrf.mxu0  ;;  %v4237_v12 = vld [vmem:[#allocation6 + $0x388] sm:$0xff]  ;;  %v4236_v13 = vld [vmem:[#allocation6 + $0x380] sm:$0xff]  ;;  %v4235_v21 = vld [vmem:[#allocation6 + $0x378] sm:$0xff] }
 0x28a   :  { %v3299_v54 = vmax.f32 %v3295_v25, 0.0  ;;  %2972 = vst [vmem:[#allocation2 + $0x10] sm:$0xff] %v2908_v41  ;;  %v3285_v53 = vmax.f32 %v2907_v42, %v2908_v41  ;;  %v2909_v34 = vadd.f32 %v2842_v52, %v2435_v40  ;;  %v4513_v30 = vld [vmem:[#allocation4 + $0x24] sm:$0xff]  ;;  %v3598_v14 = vld [vmem:[#allocation4 + $0x39] sm:$0xff]  ;;  %v4234_v42 = vld [vmem:[#allocation6 + $0x370] sm:$0xff] }
 0x28b   :  { %v2844_v43 = vpop.f32.mrf.mxu0  ;;  %v3266_v18 = vld [vmem:[#allocation3 + $0xd0] ss:$2 sm:$0xff]  ;;  %v3270_v36 = vld [vmem:[#allocation3 + $0xd1] ss:$2 sm:$0xff]  ;;  %v3599_v44 = vld [vmem:[#allocation4 + $0x41] sm:$0xff] }
 0x28c   :  { %3303 = vst [vmem:[#allocation3 + $0xe8] sm:$0xff] %v3299_v54  ;;  %v3296_v50 = vadd.f32 %v7855_v0, %v3285_v53  ;;  %2973 = vst [vmem:[#allocation2 + $0x58] sm:$0xf] %v2909_v34  ;;  %v2910_v49 = vadd.f32 %v2844_v43, %v2436_v46  ;;  %v3272_v20 = vmax.f32 %v3266_v18, %v3270_v36  ;;  %v4514_v2 = vld [vmem:[#allocation4 + $0x2c] sm:$0xff]  ;;  %v4232_v41 = vld [vmem:[#allocation6 + $0x360] sm:$0xff] }
 0x28d   :  { %v3908_v5 = vld [vmem:[#allocation4 + $0x5a] sm:$0xff]  ;;  %v4233_v25 = vld [vmem:[#allocation6 + $0x368] sm:$0xff]  ;;  %v4230_v53 = vld [vmem:[#allocation6 + $0x350] sm:$0xff] }
 0x28e   :  { %v3300_v4 = vmax.f32 %v3296_v50, 0.0  ;;  %2974 = vst [vmem:[#allocation2 + $0xa0] sm:$0xf] %v2910_v49  ;;  %4077 = vmatmul.mubr.f32.gmra.mxu0 %v3908_v5  ;;  %3274 = vst [vmem:[#allocation4 + $0x68] sm:$0xff] %v3272_v20  ;;  %3509 = vmatmul.mubr.f32.gmra.mxu1 %v3272_v20  ;;  %v4515_v40 = vld [vmem:[#allocation4 + $0x34] sm:$0xff]  ;;  %v3600_v52 = vld [vmem:[#allocation4 + $0x49] sm:$0xff] }
 0x28f   :  { %4082 = vmatprep.mubr.f32.mxu0 %v8467_v59  ;;  %3514 = vmatprep.mubr.f32.mxu1 %v8467_v59  ;;  %v4231_v54 = vld [vmem:[#allocation6 + $0x358] sm:$0xff]  ;;  %v4229_v43 = vld [vmem:[#allocation6 + $0x348] sm:$0xff]  ;;  %v4228_v18 = vld [vmem:[#allocation6 + $0x340] sm:$0xff] }
 0x290   :  { %3304 = vst [vmem:[#allocation3 + $0xf0] sm:$0xff] %v3300_v4  ;;  %v4516_v34 = vld [vmem:[#allocation4 + $0x3c] sm:$0xff]  ;;  %v3601_v46 = vld [vmem:[#allocation4 + $0x51] sm:$0xff]  ;;  %v4517_v36 = vld [vmem:[#allocation4 + $0x44] sm:$0xff] }
 0x291   :  { %v3602_v50 = vld [vmem:[#allocation4 + $0x59] sm:$0xff]  ;;  %v4226_v20 = vld [vmem:[#allocation6 + $0x330] sm:$0xff] }
 0x292   :  { %v4227_v49 = vld [vmem:[#allocation6 + $0x338] sm:$0xff]  ;;  %v4518_v5 = vld [vmem:[#allocation4 + $0x4c] sm:$0xff] }
 0x293   :  { %v3307_v24 = vld [vmem:[#allocation3 + $0xe0] ss:$2 sm:$0xff]  ;;  %v3311_v35 = vld [vmem:[#allocation3 + $0xe1] ss:$2 sm:$0xff]  ;;  %v3278_v62 = vld [vmem:[#allocation2 + $0x58] sm:$0xff] }
 0x294   :  { %v3314_v51 = vmax.f32 %v3307_v24, %v3311_v35  ;;  %v4225_v24 = vld [vmem:[#allocation6 + $0x328] sm:$0xff]  ;;  %v4224_v35 = vld [vmem:[#allocation6 + $0x320] sm:$0xff] }
 0x295   :  { %v3282_v63 = vld [vmem:[#allocation2 + $0xa0] sm:$0xff] }
 0x296   :  { %v3909_v11 = vld [vmem:[#allocation4 + $0x62] sm:$0xff]  ;;  %v3286_v48 = vmax.f32 %v3278_v62, %v3282_v63  ;;  %3316 = vst [vmem:[#allocation4 + $0x70] sm:$0xff] %v3314_v51  ;;  %3515 = vmatmul.mubr.f32.gmra.mxu1 %v3314_v51  ;;  %v4519_v51 = vld [vmem:[#allocation4 + $0x54] sm:$0xff] }
 0x297   :  { %4083 = vmatmul.mubr.f32.gmra.mxu0 %v3909_v11  ;;  %3520 = vmatprep.mubr.f32.mxu1 %v8467_v59  ;;  %v3603_v4 = vld [vmem:[#allocation4 + $0x61] sm:$0xff]  ;;  %v4223_v63 = vld [vmem:[#allocation6 + $0x318] sm:$0xff]  ;;  %v4222_v11 = vld [vmem:[#allocation6 + $0x310] sm:$0xff] }
 0x298   :  { %4088 = vmatprep.mubr.f32.mxu0 %v8467_v59  ;;  %v3297_v3 = vadd.f32 %v7855_v0, %v3286_v48  ;;  %v4520_v48 = vld [vmem:[#allocation4 + $0x5c] sm:$0xff] }
 0x29a   :  { %v3301_v1 = vmax.f32 %v3297_v3, 0.0 }
 0x29c   :  { %3305 = vst [vmem:[#allocation3 + $0xf8] sm:$0xff] %v3301_v1  ;;  %v4221_v1 = vld [vmem:[#allocation6 + $0x308] sm:$0xff] }
 0x29d   :  { %v3910_v29 = vld [vmem:[#allocation4 + $0x6a] sm:$0xff] }
 0x29e   :  { %4089 = vmatmul.mubr.f32.gmra.mxu0 %v3910_v29  ;;  %v3604_v62 = vld [vmem:[#allocation4 + $0x69] sm:$0xff]  ;;  %v4220_v29 = vld [vmem:[#allocation6 + $0x300] sm:$0xff] }
 0x29f   :  { %4094 = vmatprep.mubr.f32.mxu0 %v8467_v59 }
 0x2a3   :  { %v3309_v38 = vld [vmem:[#allocation3 + $0xf0] ss:$2 sm:$0xff]  ;;  %v3313_v39 = vld [vmem:[#allocation3 + $0xf1] ss:$2 sm:$0xff] }
 0x2a4   :  { %v3315_v6 = vmax.f32 %v3309_v38, %v3313_v39  ;;  %v4521_v38 = vld [vmem:[#allocation4 + $0x64] sm:$0xff] }
 0x2a6   :  { %3317 = vst [vmem:[#allocation4 + $0x78] sm:$0xff] %v3315_v6  ;;  %3521 = vmatmul.mubr.f32.gmra.mxu1 %v3315_v6  ;;  %v4522_v6 = vld [vmem:[#allocation4 + $0x6c] sm:$0xff] }
 0x2a7   :  { %3704 = vmatprep.mubr.f32.mxu1 %v8467_v59 }
 0x2aa   :  { %3705 = vmatmul.mubr.f32.vlgmr.msra.gmra.mxu1 %v3591_v23 }
 0x2ab   :  { %4253 = vmatpush1.msra.mxu1 %v4250_v22  ;;  %3710 = vmatprep.mubr.f32.mxu1 %v8467_v59  ;;  %v4203_v22 = vld [vmem:[#allocation4 + $0x3] sm:$0xff] }
 0x2ac   :  { %4254 = vmatprep.subr.mxu1 %v4249_v57  ;;  %v4204_v57 = vld [vmem:[#allocation4 + $0xb] sm:$0xff] }
 0x2ad   :  { %v3911_v0 = vld [vmem:[#allocation4 + $0x72] sm:$0xff]  ;;  %4255 = vmatpush1.msra.mxu1 %v4248_v60  ;;  %v3912_v15 = vld [vmem:[#allocation4 + $0x7a] sm:$0x3f] }
 0x2ae   :  { %4095 = vmatmul.mubr.f32.gmra.mxu0 %v3911_v0  ;;  %3711 = vmatmul.mubr.f32.gmra.mxu1 %v3592_v8  ;;  %v3605_v3 = vld [vmem:[#allocation4 + $0x71] sm:$0xff]  ;;  %v3606_v39 = vld [vmem:[#allocation4 + $0x79] sm:$0x7f] }
 0x2af   :  { %4100 = vmatprep.mubr.f32.mxu0 %v8467_v59  ;;  %3716 = vmatprep.mubr.f32.mxu1 %v8467_v59  ;;  %v4523_v23 = vld [vmem:[#allocation4 + $0x74] sm:$0xff]  ;;  %v4524_v60 = vld [vmem:[#allocation4 + $0x7c] sm:$0xf] }
 0x2b0   :  { %4256 = vmatprep.subr.mxu1 %v4247_v9  ;;  %v4205_v0 = vld [vmem:[#allocation4 + $0x13] sm:$0xff]  ;;  %v4206_v8 = vld [vmem:[#allocation4 + $0x1b] sm:$0xff]  ;;  %v4207_v9 = vld [vmem:[#allocation4 + $0x23] sm:$0xff] }
 0x2b1   :  { %4257 = vmatpush1.msra.mxu1 %v4246_v32  ;;  %v4208_v32 = vld [vmem:[#allocation4 + $0x2b] sm:$0xff] }
 0x2b2   :  { %4101 = vmatmul.mubr.f32.gmra.mxu0 %v3912_v15  ;;  %3717 = vmatmul.mubr.f32.gmra.mxu1 %v3593_v31  ;;  %v4209_v15 = vld [vmem:[#allocation4 + $0x33] sm:$0xff]  ;;  %v4210_v31 = vld [vmem:[#allocation4 + $0x3b] sm:$0xff] }
 0x2b3   :  { %4622 = vmatprep.mubr.f32.mxu0 %v8467_v59  ;;  %3722 = vmatprep.mubr.f32.mxu1 %v8467_v59 }
 0x2b4   :  { %4258 = vmatprep.subr.mxu1 %v4245_v56  ;;  %v4211_v56 = vld [vmem:[#allocation4 + $0x43] sm:$0xff] }
 0x2b5   :  { %4259 = vmatpush1.msra.mxu1 %v4244_v26 }
 0x2b6   :  { %4623 = vmatmul.mubr.f32.vlgmr.msra.gmra.mxu0 %v4509_v10  ;;  %3723 = vmatmul.mubr.f32.gmra.mxu1 %v3594_v58  ;;  %v4212_v10 = vld [vmem:[#allocation4 + $0x4b] sm:$0xff] }
 0x2b7   :  { %4628 = vmatprep.mubr.f32.mxu0 %v8467_v59  ;;  %3728 = vmatprep.mubr.f32.mxu1 %v8467_v59 }
 0x2b8   :  { %4260 = vmatprep.subr.mxu1 %v4243_v7  ;;  %v4213_v7 = vld [vmem:[#allocation4 + $0x53] sm:$0xff] }
 0x2b9   :  { %4261 = vmatpush1.msra.mxu1 %v4242_v17 }
 0x2ba   :  { %4629 = vmatmul.mubr.f32.gmra.mxu0 %v4510_v19  ;;  %3729 = vmatmul.mubr.f32.gmra.mxu1 %v3595_v55  ;;  %v4214_v19 = vld [vmem:[#allocation4 + $0x5b] sm:$0xff] }
 0x2bb   :  { %4634 = vmatprep.mubr.f32.mxu0 %v8467_v59  ;;  %3734 = vmatprep.mubr.f32.mxu1 %v8467_v59 }
 0x2bc   :  { %4262 = vmatprep.subr.mxu1 %v4241_v37 }
 0x2bd   :  { %4263 = vmatpush1.msra.mxu1 %v4240_v45  ;;  %v4215_v45 = vld [vmem:[#allocation4 + $0x63] sm:$0xff] }
 0x2be   :  { %4635 = vmatmul.mubr.f32.gmra.mxu0 %v4511_v47  ;;  %3735 = vmatmul.mubr.f32.gmra.mxu1 %v3596_v61 }
 0x2bf   :  { %4640 = vmatprep.mubr.f32.mxu0 %v8467_v59  ;;  %3740 = vmatprep.mubr.f32.mxu1 %v8467_v59 }
 0x2c0   :  { %4264 = vmatprep.subr.mxu1 %v4239_v33  ;;  %v4216_v33 = vld [vmem:[#allocation4 + $0x6b] sm:$0xff] }
 0x2c1   :  { %4265 = vmatpush1.msra.mxu1 %v4238_v16 }
 0x2c2   :  { %4641 = vmatmul.mubr.f32.gmra.mxu0 %v4512_v27  ;;  %3741 = vmatmul.mubr.f32.gmra.mxu1 %v3597_v28 }
 0x2c3   :  { %4646 = vmatprep.mubr.f32.mxu0 %v8467_v59  ;;  %3746 = vmatprep.mubr.f32.mxu1 %v8467_v59 }
 0x2c4   :  { %4266 = vmatprep.subr.mxu1 %v4237_v12  ;;  %v4217_v12 = vld [vmem:[#allocation4 + $0x73] sm:$0xff] }
 0x2c5   :  { %4267 = vmatpush1.msra.mxu1 %v4236_v13 }
 0x2c6   :  { %4647 = vmatmul.mubr.f32.gmra.mxu0 %v4513_v30  ;;  %3747 = vmatmul.mubr.f32.gmra.mxu1 %v3598_v14 }
 0x2c7   :  { %4652 = vmatprep.mubr.f32.mxu0 %v8467_v59  ;;  %3752 = vmatprep.mubr.f32.mxu1 %v8467_v59 }
 0x2c8   :  { %4268 = vmatprep.subr.mxu1 %v4235_v21  ;;  %v4218_v21 = vld [vmem:[#allocation4 + $0x7b] sm:$0x1f] }
 0x2c9   :  { %4269 = vmatpush1.msra.mxu1 %v4234_v42 }
 0x2ca   :  { %4653 = vmatmul.mubr.f32.gmra.mxu0 %v4514_v2  ;;  %3753 = vmatmul.mubr.f32.gmra.mxu1 %v3599_v44 }
 0x2cb   :  { %4658 = vmatprep.mubr.f32.mxu0 %v8467_v59  ;;  %3758 = vmatprep.mubr.f32.mxu1 %v8467_v59 }
 0x2cc   :  { %4270 = vmatprep.subr.mxu1 %v4233_v25 }
 0x2cd   :  { %4271 = vmatpush1.msra.mxu1 %v4232_v41 }
 0x2ce   :  { %4659 = vmatmul.mubr.f32.gmra.mxu0 %v4515_v40  ;;  %3759 = vmatmul.mubr.f32.gmra.mxu1 %v3600_v52 }
 0x2cf   :  { %4664 = vmatprep.mubr.f32.mxu0 %v8467_v59  ;;  %3764 = vmatprep.mubr.f32.mxu1 %v8467_v59 }
 0x2d0   :  { %4272 = vmatprep.subr.mxu1 %v4231_v54 }
 0x2d1   :  { %4273 = vmatpush1.msra.mxu1 %v4230_v53 }
 0x2d2   :  { %4665 = vmatmul.mubr.f32.gmra.mxu0 %v4516_v34  ;;  %3765 = vmatmul.mubr.f32.gmra.mxu1 %v3601_v46 }
 0x2d3   :  { %4670 = vmatprep.mubr.f32.mxu0 %v8467_v59  ;;  %3770 = vmatprep.mubr.f32.mxu1 %v8467_v59 }
 0x2d4   :  { %4274 = vmatprep.subr.mxu1 %v4229_v43 }
 0x2d5   :  { %4275 = vmatpush1.msra.mxu1 %v4228_v18 }
 0x2d6   :  { %4671 = vmatmul.mubr.f32.gmra.mxu0 %v4517_v36  ;;  %3771 = vmatmul.mubr.f32.gmra.mxu1 %v3602_v50 }
 0x2d7   :  { %4676 = vmatprep.mubr.f32.mxu0 %v8467_v59  ;;  %3776 = vmatprep.mubr.f32.mxu1 %v8467_v59 }
 0x2d8   :  { %4276 = vmatprep.subr.mxu1 %v4227_v49 }
 0x2d9   :  { %4277 = vmatpush1.msra.mxu1 %v4226_v20 }
 0x2da   :  { %4677 = vmatmul.mubr.f32.gmra.mxu0 %v4518_v5  ;;  %3777 = vmatmul.mubr.f32.gmra.mxu1 %v3603_v4 }
 0x2db   :  { %4682 = vmatprep.mubr.f32.mxu0 %v8467_v59  ;;  %3782 = vmatprep.mubr.f32.mxu1 %v8467_v59 }
 0x2dc   :  { %4278 = vmatprep.subr.mxu1 %v4225_v24 }
 0x2dd   :  { %4279 = vmatpush1.msra.mxu1 %v4224_v35 }
 0x2de   :  { %4683 = vmatmul.mubr.f32.gmra.mxu0 %v4519_v51  ;;  %3783 = vmatmul.mubr.f32.gmra.mxu1 %v3604_v62 }
 0x2df   :  { %4688 = vmatprep.mubr.f32.mxu0 %v8467_v59  ;;  %3788 = vmatprep.mubr.f32.mxu1 %v8467_v59 }
 0x2e0   :  { %4280 = vmatprep.subr.mxu1 %v4223_v63 }
 0x2e1   :  { %4281 = vmatpush1.msra.mxu1 %v4222_v11 }
 0x2e2   :  { %4689 = vmatmul.mubr.f32.gmra.mxu0 %v4520_v48  ;;  %3789 = vmatmul.mubr.f32.gmra.mxu1 %v3605_v3 }
 0x2e3   :  { %4694 = vmatprep.mubr.f32.mxu0 %v8467_v59  ;;  %3794 = vmatprep.mubr.f32.mxu1 %v8467_v59 }
 0x2e4   :  { %4282 = vmatprep.subr.mxu1 %v4221_v1 }
 0x2e5   :  { %4283 = vmatpush1.msra.mxu1 %v4220_v29 }
 0x2e6   :  { %4695 = vmatmul.mubr.f32.gmra.mxu0 %v4521_v38  ;;  %3795 = vmatmul.mubr.f32.gmra.mxu1 %v3606_v39  ;;  %v7920_v26 = vpop.f32.mrf.mxu1 }
 0x2e7   :  { %4700 = vmatprep.mubr.f32.mxu0 %v8467_v59  ;;  %4316 = vmatprep.mubr.f32.mxu1 %v8467_v59 }
 0x2e8   :  { %6021 = vmatprep.subr.mxu1 %v8467_v59  ;;  %v7923_v58 = vpop.f32.mrf.mxu1 }
 0x2ea   :  { %4701 = vmatmul.mubr.f32.gmra.mxu0 %v4522_v6  ;;  %4317 = vmatmul.mubr.f32.vlgmr.msra.gmra.mxu1 %v4203_v22 }
 0x2eb   :  { %4706 = vmatprep.mubr.f32.mxu0 %v8467_v59  ;;  %4322 = vmatprep.mubr.f32.mxu1 %v8467_v59 }
 0x2ee   :  { %4707 = vmatmul.mubr.f32.gmra.mxu0 %v4523_v23  ;;  %4323 = vmatmul.mubr.f32.gmra.mxu1 %v4204_v57  ;;  %v7925_v17 = vpop.f32.mrf.mxu1 }
 0x2ef   :  { %4712 = vmatprep.mubr.f32.mxu0 %v8467_v59  ;;  %4328 = vmatprep.mubr.f32.mxu1 %v8467_v59 }
 0x2f0   :  { %v7928_v55 = vpop.f32.mrf.mxu1 }
 0x2f2   :  { %4713 = vmatmul.mubr.f32.gmra.mxu0 %v4524_v60  ;;  %4329 = vmatmul.mubr.f32.gmra.mxu1 %v4205_v0 }
 0x2f3   :  { %4334 = vmatprep.mubr.f32.mxu1 %v8467_v59  ;;  %6123 = vmatprep.mubr.msk.f32.mxu0 %vm6371_vm1, %v8467_v59 }
 0x2f6   :  { %4335 = vmatmul.mubr.f32.gmra.mxu1 %v4206_v8  ;;  %v7931_v37 = vpop.f32.mrf.mxu1  ;;  %v7933_v47 = vpop.f32.mrf.mxu0 }
 0x2f7   :  { %4340 = vmatprep.mubr.f32.mxu1 %v8467_v59 }
 0x2f8   :  { %v7936_v61 = vpop.f32.mrf.mxu1  ;;  %v7938_v16 = vpop.f32.mrf.mxu0 }
 0x2fa   :  { %4341 = vmatmul.mubr.f32.gmra.mxu1 %v4207_v9 }
 0x2fb   :  { %4346 = vmatprep.mubr.f32.mxu1 %v8467_v59 }
 0x2fe   :  { %4347 = vmatmul.mubr.f32.gmra.mxu1 %v4208_v32  ;;  %v7943_v28 = vpop.f32.mrf.mxu0 }
 0x2ff   :  { %4352 = vmatprep.mubr.f32.mxu1 %v8467_v59  ;;  %v7940_v27 = vpop.f32.mrf.mxu1 }
 0x300   :  { %v7948_v30 = vpop.f32.mrf.mxu0 }
 0x301   :  { %v7945_v13 = vpop.f32.mrf.mxu1 }
 0x302   :  { %4353 = vmatmul.mubr.f32.gmra.mxu1 %v4209_v15 }
 0x303   :  { %4358 = vmatprep.mubr.f32.mxu1 %v8467_v59 }
 0x306   :  { %4359 = vmatmul.mubr.f32.gmra.mxu1 %v4210_v31  ;;  %v5006_v31 = vld [vmem:[#allocation8 + $0xf8] sm:$0xff] }
 0x307   :  { %4364 = vmatprep.mubr.f32.mxu1 %v8467_v59  ;;  %v7950_v14 = vpop.f32.mrf.mxu1  ;;  %v7952_v42 = vpop.f32.mrf.mxu0  ;;  %6022 = vmatpush3.msra.mxu1 %v5006_v31 }
 0x308   :  { %6023 = vmatprep.subr.mxu1 %v8467_v59 }
 0x309   :  { %v7954_v2 = vpop.f32.mrf.mxu1  ;;  %v7956_v44 = vpop.f32.mrf.mxu0 }
 0x30a   :  { %4365 = vmatmul.mubr.f32.gmra.mxu1 %v4211_v56 }
 0x30b   :  { %4370 = vmatprep.mubr.f32.mxu1 %v8467_v59 }
 0x30e   :  { %4371 = vmatmul.mubr.f32.gmra.mxu1 %v4212_v10  ;;  %v7960_v41 = vpop.f32.mrf.mxu0 }
 0x30f   :  { %4376 = vmatprep.mubr.f32.mxu1 %v8467_v59  ;;  %v7958_v25 = vpop.f32.mrf.mxu1 }
 0x310   :  { %v7964_v52 = vpop.f32.mrf.mxu0 }
 0x311   :  { %v7962_v40 = vpop.f32.mrf.mxu1 }
 0x312   :  { %4377 = vmatmul.mubr.f32.gmra.mxu1 %v4213_v7 }
 0x313   :  { %4382 = vmatprep.mubr.f32.mxu1 %v8467_v59 }
 0x316   :  { %4383 = vmatmul.mubr.f32.gmra.mxu1 %v4214_v19  ;;  %v7966_v54 = vpop.f32.mrf.mxu1  ;;  %v5005_v19 = vld [vmem:[#allocation8 + $0xf0] sm:$0xff] }
 0x317   :  { %4388 = vmatprep.mubr.f32.mxu1 %v8467_v59  ;;  %v7968_v53 = vpop.f32.mrf.mxu0  ;;  %6024 = vmatpush3.msra.mxu1 %v5005_v19 }
 0x318   :  { %v7970_v34 = vpop.f32.mrf.mxu1  ;;  %6025 = vmatprep.subr.mxu1 %v8467_v59 }
 0x319   :  { %v7972_v46 = vpop.f32.mrf.mxu0 }
 0x31a   :  { %4389 = vmatmul.mubr.f32.gmra.mxu1 %v4215_v45 }
 0x31b   :  { %4394 = vmatprep.mubr.f32.mxu1 %v8467_v59 }
 0x31e   :  { %4395 = vmatmul.mubr.f32.gmra.mxu1 %v4216_v33  ;;  %v7974_v43 = vpop.f32.mrf.mxu1  ;;  %v7976_v18 = vpop.f32.mrf.mxu0 }
 0x31f   :  { %4400 = vmatprep.mubr.f32.mxu1 %v8467_v59  ;;  %8489 = vst [vmem:[#allocation16_spill] sm:$0xff] %v7974_v43 }
 0x320   :  { %v7978_v36 = vpop.f32.mrf.mxu1  ;;  %v7980_v50 = vpop.f32.mrf.mxu0 }
 0x321   :  { %8490 = vst [vmem:[#allocation19_spill] sm:$0xff] %v7978_v36 }
 0x322   :  { %4401 = vmatmul.mubr.f32.gmra.mxu1 %v4217_v12 }
 0x323   :  { %4406 = vmatprep.mubr.f32.mxu1 %v8467_v59 }
 0x326   :  { %4407 = vmatmul.mubr.f32.gmra.mxu1 %v4218_v21  ;;  %v7982_v49 = vpop.f32.mrf.mxu1  ;;  %v7984_v20 = vpop.f32.mrf.mxu0  ;;  %v5004_v21 = vld [vmem:[#allocation8 + $0xe8] sm:$0xff] }
 0x327   :  { %8491 = vst [vmem:[#allocation18_spill] sm:$0xff] %v7982_v49  ;;  %8492 = vst [vmem:[#allocation17_spill] sm:$0xff] %v7984_v20  ;;  %6026 = vmatpush3.msra.mxu1 %v5004_v21  ;;  %6053 = vmatprep.mubr.msk.f32.mxu1 %vm6371_vm1, %v8467_v59 }
 0x328   :  { %v7986_v5 = vpop.f32.mrf.mxu1  ;;  %v7988_v4 = vpop.f32.mrf.mxu0  ;;  %6027 = vmatprep.subr.mxu1 %v8467_v59 }
 0x329   :  { %8493 = vst [vmem:[#allocation22_spill] sm:$0xff] %v7986_v5  ;;  %8494 = vst [vmem:[#allocation21_spill] sm:$0xff] %v7988_v4  ;;  %v4998_v5 = vld [vmem:[#allocation8 + $0xb8] sm:$0xff] }
 0x32a   :  { %v5159_v4 = vld [vmem:[#allocation8 + $0x138] sm:$0xff] }
 0x32e   :  { %v7990_v24 = vpop.f32.mrf.mxu1  ;;  %v7992_v35 = vpop.f32.mrf.mxu0 }
 0x32f   :  { %8495 = vst [vmem:[#allocation20_spill] sm:$0xff] %v7990_v24  ;;  %8496 = vst [vmem:[#allocation25_spill] sm:$0xff] %v7992_v35  ;;  %v5161_v24 = vld [vmem:[#allocation8 + $0x148] sm:$0xff]  ;;  %v5160_v35 = vld [vmem:[#allocation8 + $0x140] sm:$0xff] }
 0x330   :  { %v7994_v51 = vpop.f32.mrf.mxu1  ;;  %v7996_v62 = vpop.f32.mrf.mxu0 }
 0x331   :  { %8497 = vst [vmem:[#allocation24_spill] sm:$0xff] %v7994_v51  ;;  %8498 = vst [vmem:[#allocation23_spill] sm:$0xff] %v7996_v62  ;;  %v5162_v51 = vld [vmem:[#allocation8 + $0x150] sm:$0xff] }
 0x336   :  { %v7998_v63 = vpop.f32.mrf.mxu1  ;;  %v8000_v11 = vpop.f32.mrf.mxu0 }
 0x337   :  { %8499 = vst [vmem:[#allocation28_spill] sm:$0xff] %v7998_v63  ;;  %8500 = vst [vmem:[#allocation27_spill] sm:$0xff] %v8000_v11  ;;  %v5001_v63 = vld [vmem:[#allocation8 + $0xd0] sm:$0xff] }
 0x338   :  { %v8002_v48 = vpop.f32.mrf.mxu1  ;;  %v8004_v3 = vpop.f32.mrf.mxu0 }
 0x339   :  { %8501 = vst [vmem:[#allocation26_spill] sm:$0xff] %v8002_v48  ;;  %8502 = vst [vmem:[#allocation31_spill] sm:$0xff] %v8004_v3 }
 0x33e   :  { %v8006_v1 = vpop.f32.mrf.mxu1  ;;  %v8008_v29 = vpop.f32.mrf.mxu0 }
 0x33f   :  { %8503 = vst [vmem:[#allocation30_spill] sm:$0xff] %v8006_v1  ;;  %8504 = vst [vmem:[#allocation29_spill] sm:$0xff] %v8008_v29  ;;  %v5002_v29 = vld [vmem:[#allocation8 + $0xd8] sm:$0xff] }
 0x340   :  { %v8010_v38 = vpop.f32.mrf.mxu1  ;;  %v8012_v39 = vpop.f32.mrf.mxu0 }
 0x341   :  { %8505 = vst [vmem:[#allocation34_spill] sm:$0xff] %v8010_v38  ;;  %8506 = vst [vmem:[#allocation33_spill] sm:$0xff] %v8012_v39  ;;  %v5164_v39 = vld [vmem:[#allocation8 + $0x160] sm:$0xff] }
 0x346   :  { %v8014_v6 = vpop.f32.mrf.mxu1  ;;  %v8016_v22 = vpop.f32.mrf.mxu0 }
 0x347   :  { %8507 = vst [vmem:[#allocation32_spill] sm:$0xff] %v8014_v6  ;;  %8508 = vst [vmem:[#allocation36_spill] sm:$0xff] %v8016_v22  ;;  %v5166_v6 = vld [vmem:[#allocation8 + $0x170] sm:$0xff]  ;;  %v5165_v22 = vld [vmem:[#allocation8 + $0x168] sm:$0xff] }
 0x348   :  { %v8018_v23 = vpop.f32.mrf.mxu1  ;;  %v8020_v57 = vpop.f32.mrf.mxu0 }
 0x349   :  { %8509 = vst [vmem:[#allocation35_spill] sm:$0xff] %v8018_v23  ;;  %8510 = vst [vmem:[#allocation37_spill] sm:$0xff] %v8020_v57  ;;  %v5167_v23 = vld [vmem:[#allocation8 + $0x178] sm:$0xff] }
 0x34a   :  { %6092 = vmatpush3.msra.mxu0 %v5167_v23 }
 0x34b   :  { %6093 = vmatprep.subr.mxu0 %v8467_v59 }
 0x34c   :  { %6094 = vmatpush3.msra.mxu0 %v5166_v6  ;;  %v5000_v6 = vld [vmem:[#allocation8 + $0xc8] sm:$0xff] }
 0x34d   :  { %6095 = vmatprep.subr.mxu0 %v8467_v59 }
 0x34e   :  { %v8022_v60 = vpop.f32.mrf.mxu1  ;;  %v8024_v0 = vpop.f32.mrf.mxu0  ;;  %6096 = vmatpush3.msra.mxu0 %v5165_v22  ;;  %v5163_v22 = vld [vmem:[#allocation8 + $0x158] sm:$0xff] }
 0x34f   :  { %8511 = vst [vmem:[#allocation38_spill] sm:$0xff] %v8022_v60  ;;  %8512 = vst [vmem:[#allocation39_spill] sm:$0xff] %v8024_v0  ;;  %6097 = vmatprep.subr.mxu0 %v8467_v59 }
 0x350   :  { %v8026_v8 = vpop.f32.mrf.mxu1  ;;  %v8028_v9 = vpop.f32.mrf.mxu0  ;;  %6098 = vmatpush3.msra.mxu0 %v5164_v39 }
 0x351   :  { %8513 = vst [vmem:[#allocation40_spill] sm:$0xff] %v8026_v8  ;;  %8514 = vst [vmem:[#allocation41_spill] sm:$0xff] %v8028_v9  ;;  %6099 = vmatprep.subr.mxu0 %v8467_v59 }
 0x352   :  { %6100 = vmatpush3.msra.mxu0 %v5163_v22  ;;  %v4997_v22 = vld [vmem:[#allocation8 + $0xb0] sm:$0xff] }
 0x353   :  { %6101 = vmatprep.subr.mxu0 %v8467_v59 }
 0x354   :  { %6102 = vmatpush3.msra.mxu0 %v5162_v51  ;;  %v4996_v51 = vld [vmem:[#allocation8 + $0xa8] sm:$0xff] }
 0x355   :  { %6103 = vmatprep.subr.mxu0 %v8467_v59 }
 0x356   :  { %v8030_v32 = vpop.f32.mrf.mxu1  ;;  %6104 = vmatpush3.msra.mxu0 %v5161_v24  ;;  %v4995_v24 = vld [vmem:[#allocation8 + $0xa0] sm:$0xff] }
 0x357   :  { %8515 = vst [vmem:[#allocation42_spill] sm:$0xff] %v8030_v32  ;;  %v8032_v15 = vpop.f32.mrf.mxu0  ;;  %6105 = vmatprep.subr.mxu0 %v8467_v59 }
 0x358   :  { %8516 = vst [vmem:[#allocation43_spill] sm:$0xff] %v8032_v15  ;;  %v8034_v56 = vpop.f32.mrf.mxu1  ;;  %6106 = vmatpush3.msra.mxu0 %v5160_v35  ;;  %v4994_v35 = vld [vmem:[#allocation8 + $0x98] sm:$0xff] }
 0x359   :  { %8517 = vst [vmem:[#allocation44_spill] sm:$0xff] %v8034_v56  ;;  %v8037_v10 = vpop.f32.mrf.mxu0  ;;  %6107 = vmatprep.subr.mxu0 %v8467_v59 }
 0x35a   :  { %8518 = vst [vmem:[#allocation45_spill] sm:$0xff] %v8037_v10  ;;  %6108 = vmatpush3.msra.mxu0 %v5159_v4  ;;  %v4993_v4 = vld [vmem:[#allocation8 + $0x90] sm:$0xff] }
 0x35b   :  { %6109 = vmatprep.subr.mxu0 %v8467_v59 }
 0x35e   :  { %v8039_v45 = vpop.f32.mrf.mxu0 }
 0x35f   :  { %8519 = vst [vmem:[#allocation46_spill] sm:$0xff] %v8039_v45  ;;  %v5003_v45 = vld [vmem:[#allocation8 + $0xe0] sm:$0xff] }
 0x360   :  { %v8044_v32 = vpop.f32.mrf.mxu0  ;;  %6028 = vmatpush3.msra.mxu1 %v5003_v45 }
 0x361   :  { %8520 = vst [vmem:[#allocation47_spill] sm:$0xff] %v8044_v32  ;;  %6029 = vmatprep.subr.mxu1 %v8467_v59 }
 0x362   :  { %6030 = vmatpush3.msra.mxu1 %v5002_v29  ;;  %v4999_v29 = vld [vmem:[#allocation8 + $0xc0] sm:$0xff] }
 0x363   :  { %6031 = vmatprep.subr.mxu1 %v8467_v59 }
 0x364   :  { %6032 = vmatpush3.msra.mxu1 %v5001_v63 }
 0x365   :  { %6033 = vmatprep.subr.mxu1 %v8467_v59 }
 0x366   :  { %v3522_v7 = vpop.f32.mrf.mxu1  ;;  %6034 = vmatpush3.msra.mxu1 %v5000_v6 }
 0x367   :  { %3557 = vst [vmem:[#allocation2 + $0xf0] sm:$0xff] %v3522_v7  ;;  %6035 = vmatprep.subr.mxu1 %v8467_v59 }
 0x368   :  { %v3524_v33 = vpop.f32.mrf.mxu1  ;;  %6036 = vmatpush3.msra.mxu1 %v4999_v29 }
 0x369   :  { %3558 = vst [vmem:[#allocation2 + $0x8] sm:$0xff] %v3524_v33  ;;  %6037 = vmatprep.subr.mxu1 %v8467_v59 }
 0x36a   :  { %v8042_v12 = vpop.f32.mrf.mxu1  ;;  %6038 = vmatpush3.msra.mxu1 %v4998_v5 }
 0x36b   :  { %6039 = vmatprep.subr.mxu1 %v8467_v59 }
 0x36c   :  { %v8046_v31 = vpop.f32.mrf.mxu1  ;;  %6040 = vmatpush3.msra.mxu1 %v4997_v22 }
 0x36d   :  { %6041 = vmatprep.subr.mxu1 %v8467_v59 }
 0x36e   :  { %v8049_v56 = vpop.f32.mrf.mxu0  ;;  %v8051_v7 = vpop.f32.mrf.mxu1  ;;  %6042 = vmatpush3.msra.mxu1 %v4996_v51 }
 0x36f   :  { %8521 = vst [vmem:[#allocation48_spill] sm:$0xff] %v8049_v56  ;;  %6043 = vmatprep.subr.mxu1 %v8467_v59 }
 0x370   :  { %v8053_v10 = vpop.f32.mrf.mxu0  ;;  %v8055_v19 = vpop.f32.mrf.mxu1  ;;  %6044 = vmatpush3.msra.mxu1 %v4995_v24 }
 0x371   :  { %8522 = vst [vmem:[#allocation49_spill] sm:$0xff] %v8053_v10  ;;  %6045 = vmatprep.subr.mxu1 %v8467_v59 }
 0x372   :  { %v8058_v33 = vpop.f32.mrf.mxu0  ;;  %v8060_v32 = vpop.f32.mrf.mxu1  ;;  %6046 = vmatpush3.msra.mxu1 %v4994_v35 }
 0x373   :  { %6047 = vmatprep.subr.mxu1 %v8467_v59 }
 0x374   :  { %v8062_v8 = vpop.f32.mrf.mxu0  ;;  %v8064_v21 = vpop.f32.mrf.mxu1  ;;  %6048 = vmatpush3.msra.mxu1 %v4993_v4 }
 0x375   :  { %6049 = vmatprep.subr.mxu1 %v8467_v59 }
 0x376   :  { %v8066_v15 = vpop.f32.mrf.mxu0  ;;  %v8068_v56 = vpop.f32.mrf.mxu1 }
 0x378   :  { %v8070_v60 = vpop.f32.mrf.mxu0  ;;  %v8072_v10 = vpop.f32.mrf.mxu1 }
 0x37a   :  { %v8074_v9 = vpop.f32.mrf.mxu0  ;;  %v8076_v45 = vpop.f32.mrf.mxu1 }
 0x37c   :  { %v8078_v0 = vpop.f32.mrf.mxu1  ;;  %v8081_v57 = vpop.f32.mrf.mxu0 }
 0x37e   :  { %v8083_v38 = vpop.f32.mrf.mxu1  ;;  %v8089_v48 = vpop.f32.mrf.mxu0 }
 0x380   :  { %v8086_v1 = vpop.f32.mrf.mxu1  ;;  %v8101_v39 = vpop.f32.mrf.mxu0 }
 0x382   :  { %v8091_v23 = vpop.f32.mrf.mxu1  ;;  %v8111_v49 = vpop.f32.mrf.mxu0 }
 0x384   :  { %v8094_v3 = vpop.f32.mrf.mxu1  ;;  %v8121_v36 = vpop.f32.mrf.mxu0 }
 0x386   :  { %v8103_v11 = vpop.f32.mrf.mxu1  ;;  %v8131_v20 = vpop.f32.mrf.mxu0 }
 0x387   :  { %8523 = vst [vmem:[#allocation50_spill] sm:$0xff] %v8103_v11 }
 0x388   :  { %v8107_v62 = vpop.f32.mrf.mxu1  ;;  %v8141_v11 = vpop.f32.mrf.mxu0 }
 0x389   :  { %8524 = vst [vmem:[#allocation51_spill] sm:$0xff] %v8107_v62  ;;  %v5158_v62 = vld [vmem:[#allocation8 + $0x130] sm:$0xff] }
 0x38a   :  { %v8113_v63 = vpop.f32.mrf.mxu1  ;;  %6110 = vmatpush3.msra.mxu0 %v5158_v62  ;;  %v4992_v62 = vld [vmem:[#allocation8 + $0x88] sm:$0xff] }
 0x38b   :  { %8525 = vst [vmem:[#allocation52_spill] sm:$0xff] %v8113_v63  ;;  %6111 = vmatprep.subr.mxu0 %v8467_v59  ;;  %v5156_v63 = vld [vmem:[#allocation8 + $0x120] sm:$0xff]  ;;  %6050 = vmatpush3.msra.mxu1 %v4992_v62 }
 0x38c   :  { %v8117_v6 = vpop.f32.mrf.mxu1  ;;  %6051 = vmatprep.subr.mxu1 %v8467_v59 }
 0x38d   :  { %8526 = vst [vmem:[#allocation53_spill] sm:$0xff] %v8117_v6  ;;  %v5157_v6 = vld [vmem:[#allocation8 + $0x128] sm:$0xff] }
 0x38e   :  { %v8123_v29 = vpop.f32.mrf.mxu1  ;;  %6112 = vmatpush3.msra.mxu0 %v5157_v6  ;;  %v5153_v6 = vld [vmem:[#allocation8 + $0x108] sm:$0xff] }
 0x38f   :  { %8527 = vst [vmem:[#allocation54_spill] sm:$0xff] %v8123_v29  ;;  %6113 = vmatprep.subr.mxu0 %v8467_v59  ;;  %v5154_v29 = vld [vmem:[#allocation8 + $0x110] sm:$0xff] }
 0x390   :  { %v8127_v5 = vpop.f32.mrf.mxu1  ;;  %6114 = vmatpush3.msra.mxu0 %v5156_v63  ;;  %v5152_v63 = vld [vmem:[#allocation8 + $0x100] sm:$0xff] }
 0x391   :  { %8528 = vst [vmem:[#allocation55_spill] sm:$0xff] %v8127_v5  ;;  %v5155_v5 = vld [vmem:[#allocation8 + $0x118] sm:$0xff]  ;;  %6115 = vmatprep.subr.mxu0 %v8467_v59 }
 0x392   :  { %v8133_v22 = vpop.f32.mrf.mxu1  ;;  %6116 = vmatpush3.msra.mxu0 %v5155_v5 }
 0x393   :  { %8529 = vst [vmem:[#allocation56_spill] sm:$0xff] %v8133_v22  ;;  %6117 = vmatprep.subr.mxu0 %v8467_v59  ;;  %v8151_v22 = vpop.f32.mrf.mxu0 }
 0x394   :  { %v8137_v51 = vpop.f32.mrf.mxu1  ;;  %6118 = vmatpush3.msra.mxu0 %v5154_v29  ;;  %8533 = vst [vmem:[#allocation60_spill] sm:$0xff] %v8151_v22 }
 0x395   :  { %8530 = vst [vmem:[#allocation57_spill] sm:$0xff] %v8137_v51  ;;  %v4991_v51 = vld [vmem:[#allocation8 + $0x80] sm:$0xff]  ;;  %6119 = vmatprep.subr.mxu0 %v8467_v59  ;;  %v8160_v29 = vpop.f32.mrf.mxu0 }
 0x396   :  { %v8143_v24 = vpop.f32.mrf.mxu1  ;;  %6120 = vmatpush3.msra.mxu0 %v5153_v6  ;;  %6052 = vmatpush3.msra.mxu1 %v4991_v51  ;;  %8536 = vst [vmem:[#allocation63_spill] sm:$0xff] %v8160_v29  ;;  %v3801_v6 = vadd.f32 %v8042_v12, %v7920_v26  ;;  %v3804_v12 = vadd.f32 %v8055_v19, %v7928_v55 }
 0x397   :  { %8531 = vst [vmem:[#allocation58_spill] sm:$0xff] %v8143_v24  ;;  %6121 = vmatprep.subr.mxu0 %v8467_v59  ;;  %6056 = vmatprep.subr.mxu1 %v8467_v59 }
 0x398   :  { %v8147_v35 = vpop.f32.mrf.mxu1  ;;  %6122 = vmatpush3.msra.mxu0 %v5152_v63  ;;  %v3589_v63 = vld [vmem:[#allocation2 + $0xf0] sm:$0x7f] }
 0x399   :  { %8532 = vst [vmem:[#allocation59_spill] sm:$0xff] %v8147_v35  ;;  %6161 = vmatprep.subr.mxu0 %v8467_v59  ;;  %v8166_v35 = vpop.f32.mrf.mxu0  ;;  %v3802_v59 = vadd.f32 %v8046_v31, %v7923_v58  ;;  %v3805_v31 = vadd.f32 %v8060_v32, %v7931_v37  ;;  %v3807_v37 = vadd.f32 %v8068_v56, %v7940_v27 }
 0x39a   :  { %v8153_v24 = vpop.f32.mrf.mxu1  ;;  %8539 = vst [vmem:[#allocation66_spill] sm:$0xff] %v8166_v35 }
 0x39b   :  { %8534 = vst [vmem:[#allocation61_spill] sm:$0xff] %v8153_v24  ;;  %v8174_v22 = vpop.f32.mrf.mxu0  ;;  %v4108_v58 = vadd.f32 %v7938_v16, %v3802_v59  ;;  %v4110_v59 = vadd.f32 %v7948_v30, %v3804_v12  ;;  %v3808_v30 = vadd.f32 %v8072_v10, %v7945_v13  ;;  %v4113_v13 = vadd.f32 %v7960_v41, %v3807_v37 }
 0x39c   :  { %v8157_v5 = vpop.f32.mrf.mxu1  ;;  %8542 = vst [vmem:[#allocation69_spill] sm:$0xff] %v8174_v22 }
 0x39d   :  { %8535 = vst [vmem:[#allocation62_spill] sm:$0xff] %v8157_v5  ;;  %v8181_v35 = vpop.f32.mrf.mxu0 }
 0x39e   :  { %v8162_v4 = vpop.f32.mrf.mxu1 }
 0x39f   :  { %8537 = vst [vmem:[#allocation64_spill] sm:$0xff] %v8162_v4  ;;  %v3590_v4 = vld [vmem:[#allocation2 + $0x8] sm:$0x7f] }
 0x3a0   :  { %v8164_v62 = vpop.f32.mrf.mxu1 }
 0x3a1   :  { %8538 = vst [vmem:[#allocation65_spill] sm:$0xff] %v8164_v62  ;;  %v3803_v62 = vadd.f32 %v8051_v7, %v7925_v17 }
 0x3a2   :  { %v8168_v24 = vpop.f32.mrf.mxu1 }
 0x3a3   :  { %8540 = vst [vmem:[#allocation67_spill] sm:$0xff] %v8168_v24 }
 0x3a4   :  { %v8170_v51 = vpop.f32.mrf.mxu1 }
 0x3a5   :  { %8541 = vst [vmem:[#allocation68_spill] sm:$0xff] %v8170_v51  ;;  %v4107_v51 = vadd.f32 %v7933_v47, %v3801_v6  ;;  %v3806_v47 = vadd.f32 %v8064_v21, %v7936_v61  ;;  %v4111_v61 = vadd.f32 %v7952_v42, %v3805_v31 }
 0x3a6   :  { %v3796_v5 = vpop.f32.mrf.mxu1 }
 0x3a7   :  { %v3831_v29 = vadd.f32 %v3796_v5, %v3589_v63 }
 0x3a8   :  { %v3798_v43 = vpop.f32.mrf.mxu1 }
 0x3a9   :  { %3863 = vst [vmem:[#allocation2 + $0xf0] sm:$0x7f] %v3831_v29  ;;  %v3832_v24 = vadd.f32 %v3798_v43, %v3590_v4  ;;  %v4109_v43 = vadd.f32 %v7943_v28, %v3803_v62  ;;  %v8192_v29 = vpop.f32.mrf.mxu0  ;;  %v8201_v28 = vld [vmem:[%s8435_s4] ss:$0 sm:$0xff]  ;;  %v4112_v62 = vadd.f32 %v7956_v44, %v3806_v47 }
 0x3aa   :  { %v4318_v26 = vpop.f32.mrf.mxu1 }
 0x3ab   :  { %3864 = vst [vmem:[#allocation2 + $0x8] sm:$0x7f] %v3832_v24  ;;  %v4413_v22 = vadd.f32 %v4318_v26, %v4107_v51  ;;  %v8208_v27 = vpop.f32.mrf.mxu0 }
 0x3ac   :  { %v4320_v5 = vpop.f32.mrf.mxu1 }
 0x3ad   :  { %v4719_v17 = vadd.f32 %v8066_v15, %v4413_v22  ;;  %v4414_v7 = vadd.f32 %v4320_v5, %v4108_v58  ;;  %v8220_v58 = vpop.f32.mrf.mxu0  ;;  %v3811_v5 = vadd.f32 %v8083_v38, %v7958_v25 }
 0x3ae   :  { %v4324_v4 = vpop.f32.mrf.mxu1 }
 0x3af   :  { %4751 = vst [vmem:[#allocation2 + $0xb0] sm:$0xff] %v4719_v17  ;;  %v4720_v55 = vadd.f32 %v8070_v60, %v4414_v7  ;;  %v4415_v19 = vadd.f32 %v4324_v4, %v4109_v43  ;;  %v8229_v47 = vpop.f32.mrf.mxu0 }
 0x3b0   :  { %v3895_v16 = vld [vmem:[#allocation2 + $0xf0] sm:$0x3f]  ;;  %v4326_v32 = vpop.f32.mrf.mxu1 }
 0x3b1   :  { %v4137_v15 = vadd.f32 %v8058_v33, %v3895_v16  ;;  %4752 = vst [vmem:[#allocation2 + $0x1b0] sm:$0xff] %v4720_v55  ;;  %v4787_v21 = vmax.f32 %v4719_v17, %v4720_v55  ;;  %v4721_v60 = vadd.f32 %v8074_v9, %v4415_v19  ;;  %v4416_v22 = vadd.f32 %v4326_v32, %v4110_v59 }
 0x3b2   :  { %v3896_v56 = vld [vmem:[#allocation2 + $0x8] sm:$0x3f]  ;;  %v4330_v24 = vpop.f32.mrf.mxu1  ;;  %v3809_v9 = vadd.f32 %v8076_v45, %v7950_v14  ;;  %v4114_v45 = vadd.f32 %v7964_v52, %v3808_v30  ;;  %v3812_v52 = vadd.f32 %v8086_v1, %v7962_v40  ;;  %v3813_v55 = vadd.f32 %v8091_v23, %v7966_v54  ;;  %v8242_v1 = vpop.f32.mrf.mxu0 }
 0x3b3   :  { %4169 = vst [vmem:[#allocation2 + $0xf0] sm:$0x3f] %v4137_v15  ;;  %v4138_v51 = vadd.f32 %v8062_v8, %v3896_v56  ;;  %v4796_v42 = vadd.f32 %v8201_v28, %v4787_v21  ;;  %4753 = vst [vmem:[#allocation2 + $0xd8] sm:$0xff] %v4721_v60  ;;  %v4722_v33 = vadd.f32 %v8081_v57, %v4416_v22  ;;  %v8544_v15 = vld [vmem:[#allocation50_spill] sm:$0xff] }
 0x3b4   :  { %v4417_v6 = vadd.f32 %v4330_v24, %v4111_v61  ;;  %v4332_v63 = vpop.f32.mrf.mxu1  ;;  %v3810_v8 = vadd.f32 %v8078_v0, %v7954_v2  ;;  %v4115_v17 = vadd.f32 %v7968_v53, %v3809_v9  ;;  %v4117_v19 = vadd.f32 %v7976_v18, %v3811_v5  ;;  %v8543_v61 = vld [vmem:[#allocation16_spill] sm:$0xff] }
 0x3b5   :  { %4170 = vst [vmem:[#allocation2 + $0x8] sm:$0x3f] %v4138_v51  ;;  %v4798_v10 = vmax.f32 %v4796_v42, 0.0  ;;  %4754 = vst [vmem:[#allocation2 + $0x18] sm:$0xff] %v4722_v33  ;;  %v4788_v26 = vmax.f32 %v4721_v60, %v4722_v33  ;;  %v4418_v12 = vadd.f32 %v4332_v63, %v4112_v62  ;;  %v3814_v40 = vadd.f32 %v8094_v3, %v7970_v34  ;;  %v8545_v60 = vld [vmem:[#allocation17_spill] sm:$0xff]  ;;  %v8546_v3 = vld [vmem:[#allocation60_spill] sm:$0xff]  ;;  %v8253_v33 = vpop.f32.mrf.mxu0 }
 0x3b6   :  { %v4723_v44 = vadd.f32 %v8089_v48, %v4417_v6  ;;  %v4336_v57 = vpop.f32.mrf.mxu1  ;;  %v4118_v18 = vadd.f32 %v7980_v50, %v3812_v52  ;;  %v3815_v21 = vadd.f32 %v8544_v15, %v8543_v61  ;;  %v4119_v22 = vadd.f32 %v8545_v60, %v3813_v55  ;;  %v8547_v62 = vld [vmem:[#allocation19_spill] sm:$0xff]  ;;  %v8549_v6 = vld [vmem:[#allocation21_spill] sm:$0xff]  ;;  %v8562_v61 = vld [vmem:[#allocation24_spill] sm:$0xff] }
 0x3b7   :  { %4800 = vst [vmem:[#allocation3] sm:$0xff] %v4798_v10  ;;  %v4797_v31 = vadd.f32 %v8201_v28, %v4788_v26  ;;  %v4724_v14 = vadd.f32 %v8101_v39, %v4418_v12  ;;  %v4419_v41 = vadd.f32 %v4336_v57, %v4113_v13  ;;  %v4116_v39 = vadd.f32 %v7972_v46, %v3810_v8  ;;  %v8548_v51 = vld [vmem:[#allocation51_spill] sm:$0xff]  ;;  %v8551_v8 = vld [vmem:[#allocation18_spill] sm:$0xff]  ;;  %v8552_v57 = vld [vmem:[#allocation52_spill] sm:$0xff] }
 0x3b8   :  { %4755 = vst [vmem:[#allocation2 + $0x50] sm:$0xff] %v4723_v44  ;;  %v4338_v48 = vpop.f32.mrf.mxu1  ;;  %v3816_v42 = vadd.f32 %v8548_v51, %v8547_v62  ;;  %v4120_v50 = vadd.f32 %v8549_v6, %v3814_v40  ;;  %v8550_v10 = vld [vmem:[#allocation63_spill] sm:$0xff] }
 0x3b9   :  { %v4799_v7 = vmax.f32 %v4797_v31, 0.0  ;;  %4756 = vst [vmem:[#allocation2 + $0x168] sm:$0xff] %v4724_v14  ;;  %v4810_v2 = vmax.f32 %v4723_v44, %v4724_v14  ;;  %v4725_v0 = vadd.f32 %v8111_v49, %v4419_v41  ;;  %v4420_v43 = vadd.f32 %v4338_v48, %v4114_v45  ;;  %v8553_v41 = vld [vmem:[#allocation25_spill] sm:$0xff]  ;;  %v8561_v40 = vld [vmem:[#allocation27_spill] sm:$0xff] }
 0x3ba   :  { %v4342_v4 = vpop.f32.mrf.mxu1  ;;  %v3817_v31 = vadd.f32 %v8552_v57, %v8551_v8  ;;  %v4121_v45 = vadd.f32 %v8553_v41, %v3815_v21  ;;  %v8563_v15 = vld [vmem:[#allocation55_spill] sm:$0xff] }
 0x3bb   :  { %4801 = vst [vmem:[#allocation3 + $0x8] sm:$0xff] %v4799_v7  ;;  %v4819_v25 = vadd.f32 %v8201_v28, %v4810_v2  ;;  %4757 = vst [vmem:[#allocation2 + $0x130] sm:$0xff] %v4725_v0  ;;  %v4726_v53 = vadd.f32 %v8121_v36, %v4420_v43  ;;  %v4421_v38 = vadd.f32 %v4342_v4, %v4115_v17  ;;  %v8554_v17 = vld [vmem:[#allocation66_spill] sm:$0xff]  ;;  %v8556_v43 = vld [vmem:[#allocation53_spill] sm:$0xff] }
 0x3bc   :  { %v4344_v49 = vpop.f32.mrf.mxu1  ;;  %v3820_v21 = vadd.f32 %v8563_v15, %v8562_v61  ;;  %v8579_v61 = vld [vmem:[#allocation39_spill] sm:$0xff] }
 0x3bd   :  { %v4821_v59 = vmax.f32 %v4819_v25, 0.0  ;;  %4758 = vst [vmem:[#allocation2 + $0x48] sm:$0xff] %v4726_v53  ;;  %v4811_v37 = vmax.f32 %v4725_v0, %v4726_v53  ;;  %v4727_v46 = vadd.f32 %v8131_v20, %v4421_v38  ;;  %v4422_v16 = vadd.f32 %v4344_v49, %v4116_v39  ;;  %v8555_v0 = vld [vmem:[#allocation22_spill] sm:$0xff]  ;;  %v8264_v39 = vpop.f32.mrf.mxu0  ;;  %v8557_v53 = vld [vmem:[#allocation69_spill] sm:$0xff]  ;;  %v8558_v49 = vld [vmem:[#allocation23_spill] sm:$0xff] }
 0x3be   :  { %v4348_v32 = vpop.f32.mrf.mxu1  ;;  %v3818_v4 = vadd.f32 %v8556_v43, %v8555_v0 }
 0x3bf   :  { %4823 = vst [vmem:[#allocation3 + $0x10] sm:$0xff] %v4821_v59  ;;  %v4820_v36 = vadd.f32 %v8201_v28, %v4811_v37  ;;  %4759 = vst [vmem:[#allocation2 + $0x180] sm:$0xff] %v4727_v46  ;;  %v4728_v54 = vadd.f32 %v8141_v11, %v4422_v16  ;;  %v4423_v23 = vadd.f32 %v4348_v32, %v4117_v19  ;;  %v8559_v59 = vld [vmem:[#allocation20_spill] sm:$0xff]  ;;  %v8560_v37 = vld [vmem:[#allocation54_spill] sm:$0xff] }
 0x3c0   :  { %v4350_v20 = vpop.f32.mrf.mxu1  ;;  %v4122_v19 = vadd.f32 %v8558_v49, %v3816_v42  ;;  %v4123_v32 = vadd.f32 %v8561_v40, %v3817_v31  ;;  %v8566_v42 = vld [vmem:[#allocation56_spill] sm:$0xff] }
 0x3c1   :  { %v4822_v30 = vmax.f32 %v4820_v36, 0.0  ;;  %4760 = vst [vmem:[#allocation2 + $0x110] sm:$0xff] %v4728_v54  ;;  %v4833_v34 = vmax.f32 %v4727_v46, %v4728_v54  ;;  %v4729_v56 = vadd.f32 %v8546_v3, %v4423_v23  ;;  %v4424_v24 = vadd.f32 %v4350_v20, %v4118_v18  ;;  %v8275_v20 = vpop.f32.mrf.mxu0 }
 0x3c2   :  { %v4354_v11 = vpop.f32.mrf.mxu1  ;;  %v4802_v9 = vld [vmem:[#allocation3] ss:$2 sm:$0xff]  ;;  %v4803_v63 = vld [vmem:[#allocation3 + $0x1] ss:$2 sm:$0xff]  ;;  %v3819_v46 = vadd.f32 %v8560_v37, %v8559_v59 }
 0x3c3   :  { %4824 = vst [vmem:[#allocation3 + $0x18] sm:$0xff] %v4822_v30  ;;  %v4842_v13 = vadd.f32 %v8201_v28, %v4833_v34  ;;  %4761 = vst [vmem:[#allocation2 + $0x118] sm:$0xff] %v4729_v56  ;;  %v4730_v26 = vadd.f32 %v8550_v10, %v4424_v24  ;;  %v4425_v44 = vadd.f32 %v4354_v11, %v4119_v22  ;;  %v8564_v22 = vld [vmem:[#allocation31_spill] sm:$0xff]  ;;  %v8286_v57 = vpop.f32.mrf.mxu0 }
 0x3c4   :  { %v4804_v12 = vmax.f32 %v4802_v9, %v4803_v63  ;;  %v4356_v14 = vpop.f32.mrf.mxu1  ;;  %v4124_v30 = vadd.f32 %v8564_v22, %v3818_v4 }
 0x3c5   :  { %v4844_v5 = vmax.f32 %v4842_v13, 0.0  ;;  %4762 = vst [vmem:[#allocation2 + $0x98] sm:$0xff] %v4730_v26  ;;  %v4834_v48 = vmax.f32 %v4729_v56, %v4730_v26  ;;  %v4731_v7 = vadd.f32 %v8554_v17, %v4425_v44  ;;  %v4426_v2 = vadd.f32 %v4356_v14, %v4120_v50  ;;  %v8567_v50 = vld [vmem:[#allocation29_spill] sm:$0xff]  ;;  %v8568_v44 = vld [vmem:[#allocation26_spill] sm:$0xff]  ;;  %v4696_v49 = vpop.f32.mrf.mxu0 }
 0x3c6   :  { %4805 = vst [vmem:[#allocation5] sm:$0xff] %v4804_v12  ;;  %v4360_v52 = vpop.f32.mrf.mxu1  ;;  %v4125_v9 = vadd.f32 %v8567_v50, %v3819_v46  ;;  %v8569_v12 = vld [vmem:[#allocation57_spill] sm:$0xff]  ;;  %v8572_v17 = vld [vmem:[#allocation58_spill] sm:$0xff]  ;;  %v8584_v50 = vld [vmem:[#allocation64_spill] sm:$0xff] }
 0x3c7   :  { %4846 = vst [vmem:[#allocation3 + $0x20] sm:$0xff] %v4844_v5  ;;  %v4843_v25 = vadd.f32 %v8201_v28, %v4834_v48  ;;  %4763 = vst [vmem:[#allocation2 + $0x120] sm:$0xff] %v4731_v7  ;;  %v4732_v38 = vadd.f32 %v8557_v53, %v4426_v2  ;;  %v4427_v55 = vadd.f32 %v4360_v52, %v4121_v45  ;;  %v8570_v45 = vld [vmem:[#allocation33_spill] sm:$0xff]  ;;  %v8571_v48 = vld [vmem:[#allocation30_spill] sm:$0xff] }
 0x3c8   :  { %v4362_v16 = vpop.f32.mrf.mxu1  ;;  %v3822_v8 = vadd.f32 %v8569_v12, %v8568_v44  ;;  %v4126_v5 = vadd.f32 %v8570_v45, %v3820_v21  ;;  %v8573_v2 = vld [vmem:[#allocation36_spill] sm:$0xff]  ;;  %v8574_v53 = vld [vmem:[#allocation34_spill] sm:$0xff] }
 0x3c9   :  { %v4845_v36 = vmax.f32 %v4843_v25, 0.0  ;;  %4764 = vst [vmem:[#allocation2 + $0x150] sm:$0xff] %v4732_v38  ;;  %v4856_v54 = vmax.f32 %v4731_v7, %v4732_v38  ;;  %v4733_v23 = vadd.f32 %v8181_v35, %v4427_v55  ;;  %v4428_v18 = vadd.f32 %v4362_v16, %v4122_v19  ;;  %v8565_v35 = vld [vmem:[#allocation28_spill] sm:$0xff]  ;;  %v8575_v38 = vld [vmem:[#allocation59_spill] sm:$0xff]  ;;  %v8576_v19 = vld [vmem:[#allocation37_spill] sm:$0xff] }
 0x3ca   :  { %v4366_v60 = vpop.f32.mrf.mxu1  ;;  %v4825_v34 = vld [vmem:[#allocation3 + $0x10] ss:$2 sm:$0xff]  ;;  %v4826_v3 = vld [vmem:[#allocation3 + $0x11] ss:$2 sm:$0xff]  ;;  %v3821_v11 = vadd.f32 %v8566_v42, %v8565_v35  ;;  %v3824_v55 = vadd.f32 %v8575_v38, %v8574_v53  ;;  %v4128_v59 = vadd.f32 %v8576_v19, %v3822_v8  ;;  %v8582_v42 = vld [vmem:[#allocation41_spill] sm:$0xff] }
 0x3cb   :  { %4847 = vst [vmem:[#allocation3 + $0x28] sm:$0xff] %v4845_v36  ;;  %v4865_v56 = vadd.f32 %v8201_v28, %v4856_v54  ;;  %4765 = vst [vmem:[#allocation2 + $0x108] sm:$0xff] %v4733_v23  ;;  %v4734_v24 = vadd.f32 %v8192_v29, %v4428_v18  ;;  %v4429_v62 = vadd.f32 %v4366_v60, %v4123_v32  ;;  %v8577_v54 = vld [vmem:[#allocation32_spill] sm:$0xff] }
 0x3cc   :  { %v4827_v51 = vmax.f32 %v4825_v34, %v4826_v3  ;;  %v4368_v6 = vpop.f32.mrf.mxu1  ;;  %v4127_v0 = vadd.f32 %v8573_v2, %v3821_v11  ;;  %v8580_v34 = vld [vmem:[#allocation35_spill] sm:$0xff]  ;;  %v8581_v3 = vld [vmem:[#allocation62_spill] sm:$0xff]  ;;  %v4130_v11 = vadd.f32 %v8582_v42, %v3824_v55  ;;  %v8586_v8 = vld [vmem:[#allocation40_spill] sm:$0xff] }
 0x3cd   :  { %v4867_v63 = vmax.f32 %v4865_v56, 0.0  ;;  %4766 = vst [vmem:[#allocation2 + $0x60] sm:$0xff] %v4734_v24  ;;  %v4857_v13 = vmax.f32 %v4733_v23, %v4734_v24  ;;  %v4735_v10 = vadd.f32 %v8208_v27, %v4429_v62  ;;  %v4430_v26 = vadd.f32 %v4368_v6, %v4124_v30  ;;  %v4698_v24 = vpop.f32.mrf.mxu0  ;;  %v8583_v6 = vld [vmem:[#allocation38_spill] sm:$0xff]  ;;  %v8592_v19 = vld [vmem:[#allocation44_spill] sm:$0xff] }
 0x3ce   :  { %4828 = vst [vmem:[#allocation5 + $0x8] sm:$0xff] %v4827_v51  ;;  %v4372_v29 = vpop.f32.mrf.mxu1  ;;  %v3823_v27 = vadd.f32 %v8572_v17, %v8571_v48  ;;  %v3826_v56 = vadd.f32 %v8581_v3, %v8580_v34 }
 0x3cf   :  { %4869 = vst [vmem:[#allocation3 + $0x30] sm:$0xff] %v4867_v63  ;;  %v4866_v31 = vadd.f32 %v8201_v28, %v4857_v13  ;;  %4767 = vst [vmem:[#allocation2 + $0xe0] sm:$0xff] %v4735_v10  ;;  %v4736_v14 = vadd.f32 %v8220_v58, %v4430_v26  ;;  %v4431_v41 = vadd.f32 %v4372_v29, %v4125_v9  ;;  %v8585_v63 = vld [vmem:[#allocation43_spill] sm:$0xff]  ;;  %v8587_v29 = vld [vmem:[#allocation65_spill] sm:$0xff] }
 0x3d0   :  { %v4374_v7 = vpop.f32.mrf.mxu1  ;;  %v4129_v15 = vadd.f32 %v8579_v61, %v3823_v27  ;;  %v3827_v9 = vadd.f32 %v8584_v50, %v8583_v6 }
 0x3d1   :  { %v4868_v43 = vmax.f32 %v4866_v31, 0.0  ;;  %4768 = vst [vmem:[#allocation2 + $0x188] sm:$0xff] %v4736_v14  ;;  %v4879_v4 = vmax.f32 %v4735_v10, %v4736_v14  ;;  %v4737_v52 = vadd.f32 %v8229_v47, %v4431_v41  ;;  %v4432_v25 = vadd.f32 %v4374_v7, %v4126_v5  ;;  %v8578_v47 = vld [vmem:[#allocation61_spill] sm:$0xff]  ;;  %v4702_v14 = vpop.f32.mrf.mxu0 }
 0x3d2   :  { %v4378_v58 = vpop.f32.mrf.mxu1  ;;  %v4848_v37 = vld [vmem:[#allocation3 + $0x20] ss:$2 sm:$0xff]  ;;  %v4849_v46 = vld [vmem:[#allocation3 + $0x21] ss:$2 sm:$0xff]  ;;  %v3825_v23 = vadd.f32 %v8578_v47, %v8577_v54  ;;  %v3828_v31 = vadd.f32 %v8587_v29, %v8586_v8 }
 0x3d3   :  { %4870 = vst [vmem:[#allocation3 + $0x38] sm:$0xff] %v4868_v43  ;;  %v4888_v16 = vadd.f32 %v8201_v28, %v4879_v4  ;;  %4769 = vst [vmem:[#allocation2 + $0x138] sm:$0xff] %v4737_v52  ;;  %v4738_v40 = vadd.f32 %v8242_v1, %v4432_v25  ;;  %v4433_v32 = vadd.f32 %v4378_v58, %v4127_v0  ;;  %v8588_v41 = vld [vmem:[#allocation45_spill] sm:$0xff]  ;;  %v8589_v0 = vld [vmem:[#allocation42_spill] sm:$0xff] }
 0x3d4   :  { %v4850_v36 = vmax.f32 %v4848_v37, %v4849_v46  ;;  %v4380_v18 = vpop.f32.mrf.mxu1  ;;  %v4131_v13 = vadd.f32 %v8585_v63, %v3825_v23  ;;  %v4132_v45 = vadd.f32 %v8588_v41, %v3826_v56  ;;  %v4704_v46 = vpop.f32.mrf.mxu0  ;;  %v8595_v23 = vld [vmem:[#allocation48_spill] sm:$0xff] }
 0x3d5   :  { %v4890_v21 = vmax.f32 %v4888_v16, 0.0  ;;  %4770 = vst [vmem:[#allocation2 + $0x140] sm:$0xff] %v4738_v40  ;;  %v4880_v60 = vmax.f32 %v4737_v52, %v4738_v40  ;;  %v4739_v22 = vadd.f32 %v8253_v33, %v4433_v32  ;;  %v4434_v30 = vadd.f32 %v4380_v18, %v4128_v59  ;;  %v8591_v52 = vld [vmem:[#allocation46_spill] sm:$0xff]  ;;  %v8593_v59 = vld [vmem:[#allocation68_spill] sm:$0xff] }
 0x3d6   :  { %4851 = vst [vmem:[#allocation5 + $0x10] sm:$0xff] %v4850_v36  ;;  %v4384_v1 = vpop.f32.mrf.mxu1  ;;  %v4133_v25 = vadd.f32 %v8591_v52, %v3827_v9  ;;  %v3830_v37 = vadd.f32 %v8593_v59, %v8592_v19  ;;  %v8594_v36 = vld [vmem:[#allocation47_spill] sm:$0xff] }
 0x3d7   :  { %4892 = vst [vmem:[#allocation3 + $0x40] sm:$0xff] %v4890_v21  ;;  %v4889_v62 = vadd.f32 %v8201_v28, %v4880_v60  ;;  %4771 = vst [vmem:[#allocation2 + $0x80] sm:$0xff] %v4739_v22  ;;  %v4740_v51 = vadd.f32 %v8264_v39, %v4434_v30  ;;  %v4435_v35 = vadd.f32 %v4384_v1, %v4129_v15  ;;  %v4708_v60 = vpop.f32.mrf.mxu0  ;;  %v8596_v30 = vld [vmem:[#allocation49_spill] sm:$0xff] }
 0x3d8   :  { %v4386_v33 = vpop.f32.mrf.mxu1  ;;  %v4134_v54 = vadd.f32 %v8594_v36, %v3828_v31  ;;  %v4136_v34 = vadd.f32 %v8596_v30, %v3830_v37  ;;  %v5346_v30 = vld [vmem:[#allocation8 + $0x250] sm:$0xff] }
 0x3d9   :  { %v4891_v10 = vmax.f32 %v4889_v62, 0.0  ;;  %4772 = vst [vmem:[#allocation2 + $0x1a8] sm:$0xff] %v4740_v51  ;;  %v4902_v26 = vmax.f32 %v4739_v22, %v4740_v51  ;;  %v4741_v44 = vadd.f32 %v8275_v20, %v4435_v35  ;;  %v4436_v12 = vadd.f32 %v4386_v33, %v4130_v11  ;;  %v8590_v20 = vld [vmem:[#allocation67_spill] sm:$0xff]  ;;  %v4710_v9 = vpop.f32.mrf.mxu0  ;;  %v4201_v33 = vld [vmem:[#allocation2 + $0xf0] sm:$0x1f] }
 0x3da   :  { %v4390_v39 = vpop.f32.mrf.mxu1  ;;  %v4871_v5 = vld [vmem:[#allocation3 + $0x30] ss:$2 sm:$0xff]  ;;  %v4872_v48 = vld [vmem:[#allocation3 + $0x31] ss:$2 sm:$0xff]  ;;  %v3829_v43 = vadd.f32 %v8590_v20, %v8589_v0 }
 0x3db   :  { %4893 = vst [vmem:[#allocation3 + $0x48] sm:$0xff] %v4891_v10  ;;  %v4911_v17 = vadd.f32 %v8201_v28, %v4902_v26  ;;  %4773 = vst [vmem:[#allocation2 + $0x1b8] sm:$0xff] %v4741_v44  ;;  %v4742_v27 = vadd.f32 %v8286_v57, %v4436_v12  ;;  %v4437_v7 = vadd.f32 %v4390_v39, %v4131_v13 }
 0x3dc   :  { %v4873_v2 = vmax.f32 %v4871_v5, %v4872_v48  ;;  %v4392_v4 = vpop.f32.mrf.mxu1  ;;  %v4135_v18 = vadd.f32 %v8595_v23, %v3829_v43  ;;  %v4714_v48 = vpop.f32.mrf.mxu0  ;;  %v5350_v23 = vld [vmem:[#allocation8 + $0x270] sm:$0xff] }
 0x3dd   :  { %v4913_v53 = vmax.f32 %v4911_v17, 0.0  ;;  %4774 = vst [vmem:[#allocation2 + $0x28] sm:$0xff] %v4742_v27  ;;  %v4903_v38 = vmax.f32 %v4741_v44, %v4742_v27  ;;  %v4743_v55 = vadd.f32 %v4696_v49, %v4437_v7  ;;  %v4438_v58 = vadd.f32 %v4392_v4, %v4132_v45  ;;  %v4202_v44 = vld [vmem:[#allocation2 + $0x8] sm:$0x1f] }
 0x3de   :  { %4874 = vst [vmem:[#allocation5 + $0x18] sm:$0xff] %v4873_v2  ;;  %v4396_v16 = vpop.f32.mrf.mxu1  ;;  %v4716_v7 = vpop.f32.mrf.mxu0 }
 0x3df   :  { %4915 = vst [vmem:[#allocation3 + $0x50] sm:$0xff] %v4913_v53  ;;  %v4912_v57 = vadd.f32 %v8201_v28, %v4903_v38  ;;  %4775 = vst [vmem:[#allocation2 + $0x1e8] sm:$0xff] %v4743_v55  ;;  %v4744_v40 = vadd.f32 %v4698_v24, %v4438_v58  ;;  %v4439_v32 = vadd.f32 %v4396_v16, %v4133_v25 }
 0x3e0   :  { %v4398_v47 = vpop.f32.mrf.mxu1 }
 0x3e1   :  { %v4914_v61 = vmax.f32 %v4912_v57, 0.0  ;;  %4776 = vst [vmem:[#allocation2 + $0xf8] sm:$0xff] %v4744_v40  ;;  %v4925_v49 = vmax.f32 %v4743_v55, %v4744_v40  ;;  %v4745_v15 = vadd.f32 %v4702_v14, %v4439_v32  ;;  %v4440_v21 = vadd.f32 %v4398_v47, %v4134_v54  ;;  %v4985_v32 = vld [vmem:[#allocation8 + $0x78] sm:$0xff]  ;;  %v4984_v47 = vld [vmem:[#allocation8 + $0x70] sm:$0xff] }
 0x3e2   :  { %v4402_v22 = vpop.f32.mrf.mxu1  ;;  %v4894_v3 = vld [vmem:[#allocation3 + $0x40] ss:$2 sm:$0xff]  ;;  %v4895_v56 = vld [vmem:[#allocation3 + $0x41] ss:$2 sm:$0xff]  ;;  %v5351_v54 = vld [vmem:[#allocation8 + $0x278] sm:$0xff] }
 0x3e3   :  { %4916 = vst [vmem:[#allocation3 + $0x58] sm:$0xff] %v4914_v61  ;;  %v4934_v24 = vadd.f32 %v8201_v28, %v4925_v49  ;;  %4777 = vst [vmem:[#allocation2 + $0x160] sm:$0xff] %v4745_v15  ;;  %v4746_v1 = vadd.f32 %v4704_v46, %v4440_v21  ;;  %v4441_v62 = vadd.f32 %v4402_v22, %v4135_v18  ;;  %v4983_v18 = vld [vmem:[#allocation8 + $0x68] sm:$0xff]  ;;  %v4982_v49 = vld [vmem:[#allocation8 + $0x60] sm:$0xff] }
 0x3e4   :  { %v4896_v51 = vmax.f32 %v4894_v3, %v4895_v56  ;;  %v4404_v35 = vpop.f32.mrf.mxu1  ;;  %v5349_v61 = vld [vmem:[#allocation8 + $0x268] sm:$0xff]  ;;  %v4981_v21 = vld [vmem:[#allocation8 + $0x58] sm:$0xff]  ;;  %v4980_v22 = vld [vmem:[#allocation8 + $0x50] sm:$0xff] }
 0x3e5   :  { %v4936_v42 = vmax.f32 %v4934_v24, 0.0  ;;  %4778 = vst [vmem:[#allocation2 + $0x30] sm:$0xff] %v4746_v1  ;;  %v4926_v11 = vmax.f32 %v4745_v15, %v4746_v1  ;;  %v4747_v6 = vadd.f32 %v4708_v60, %v4441_v62  ;;  %v4442_v50 = vadd.f32 %v4404_v35, %v4136_v34  ;;  %v4987_v37 = vld [vmem:[#allocation5 + $0x1] ss:$8 sm:$0xf] }
 0x3e6   :  { %4897 = vst [vmem:[#allocation5 + $0x20] sm:$0xff] %v4896_v51  ;;  %v4408_v63 = vpop.f32.mrf.mxu1  ;;  %v5148_v46 = vld [vmem:[#allocation5 + $0x2] ss:$8 sm:$0xf] }
 0x3e7   :  { %4938 = vst [vmem:[#allocation3 + $0x60] sm:$0xff] %v4936_v42  ;;  %v4935_v13 = vadd.f32 %v8201_v28, %v4926_v11  ;;  %4779 = vst [vmem:[#allocation2 + $0x1e0] sm:$0xff] %v4747_v6  ;;  %v4748_v10 = vadd.f32 %v4710_v9, %v4442_v50  ;;  %v4443_v26 = vadd.f32 %v4408_v63, %v4201_v33  ;;  %v5348_v15 = vld [vmem:[#allocation8 + $0x260] sm:$0xff]  ;;  %v5347_v60 = vld [vmem:[#allocation8 + $0x258] sm:$0xff] }
 0x3e8   :  { %v4410_v12 = vpop.f32.mrf.mxu1  ;;  %v4979_v34 = vld [vmem:[#allocation8 + $0x48] sm:$0xff]  ;;  %v4978_v56 = vld [vmem:[#allocation8 + $0x40] sm:$0xff]  ;;  %v4977_v1 = vld [vmem:[#allocation8 + $0x38] sm:$0xff] }
 0x3e9   :  { %v4937_v8 = vmax.f32 %v4935_v13, 0.0  ;;  %4780 = vst [vmem:[#allocation2] sm:$0xff] %v4748_v10  ;;  %v4948_v29 = vmax.f32 %v4747_v6, %v4748_v10  ;;  %4475 = vst [vmem:[#allocation2 + $0xf0] sm:$0x1f] %v4443_v26  ;;  %v4444_v31 = vadd.f32 %v4410_v12, %v4202_v44  ;;  %v5345_v3 = vld [vmem:[#allocation8 + $0x248] sm:$0xff]  ;;  %v5344_v24 = vld [vmem:[#allocation8 + $0x240] sm:$0xff] }
 0x3ea   :  { %v4917_v14 = vld [vmem:[#allocation3 + $0x50] ss:$2 sm:$0xff]  ;;  %v4918_v39 = vld [vmem:[#allocation3 + $0x51] ss:$2 sm:$0xff]  ;;  %v4975_v42 = vld [vmem:[#allocation8 + $0x28] sm:$0xff] }
 0x3eb   :  { %4939 = vst [vmem:[#allocation3 + $0x68] sm:$0xff] %v4937_v8  ;;  %v4957_v41 = vadd.f32 %v8201_v28, %v4948_v29  ;;  %4476 = vst [vmem:[#allocation2 + $0x8] sm:$0x1f] %v4444_v31  ;;  %v4919_v45 = vmax.f32 %v4917_v14, %v4918_v39  ;;  %v5343_v62 = vld [vmem:[#allocation8 + $0x238] sm:$0xff]  ;;  %v4976_v51 = vld [vmem:[#allocation8 + $0x30] sm:$0xff] }
 0x3ec   :  { %v5342_v35 = vld [vmem:[#allocation8 + $0x230] sm:$0xff]  ;;  %v5341_v11 = vld [vmem:[#allocation8 + $0x228] sm:$0xff]  ;;  %v4974_v6 = vld [vmem:[#allocation8 + $0x20] sm:$0xff] }
 0x3ed   :  { %v4959_v5 = vmax.f32 %v4957_v41, 0.0  ;;  %4920 = vst [vmem:[#allocation5 + $0x28] sm:$0xff] %v4919_v45  ;;  %v5340_v50 = vld [vmem:[#allocation8 + $0x220] sm:$0xff]  ;;  %v4973_v9 = vld [vmem:[#allocation8 + $0x18] sm:$0xff]  ;;  %v4972_v63 = vld [vmem:[#allocation8 + $0x10] sm:$0xff] }
 0x3ee   :  { %v5339_v33 = vld [vmem:[#allocation8 + $0x218] sm:$0xff]  ;;  %v5338_v13 = vld [vmem:[#allocation8 + $0x210] sm:$0xff]  ;;  %v4971_v10 = vld [vmem:[#allocation8 + $0x8] sm:$0xff] }
 0x3ef   :  { %4961 = vst [vmem:[#allocation3 + $0x70] sm:$0xff] %v4959_v5  ;;  %v5337_v26 = vld [vmem:[#allocation8 + $0x208] sm:$0xff]  ;;  %v4970_v44 = vld [vmem:[#allocation8] sm:$0xff]  ;;  %v5259_v41 = vld [vmem:[#allocation8 + $0x1f8] sm:$0xff] }
 0x3f0   :  { %v4507_v17 = vld [vmem:[#allocation2 + $0xf0] sm:$0xf]  ;;  %v5336_v8 = vld [vmem:[#allocation8 + $0x200] sm:$0xff] }
 0x3f1   :  { %v4749_v27 = vadd.f32 %v4714_v48, %v4507_v17  ;;  %v4967_v31 = vld [vmem:[#allocation5] ss:$8 sm:$0xf]  ;;  %v5332_v39 = vld [vmem:[#allocation5 + $0x4] ss:$8 sm:$0xf] }
 0x3f2   :  { %v4508_v2 = vld [vmem:[#allocation2 + $0x8] sm:$0xf]  ;;  %v5258_v5 = vld [vmem:[#allocation8 + $0x1f0] sm:$0xff]  ;;  %v5256_v17 = vld [vmem:[#allocation8 + $0x1e0] sm:$0xff] }
 0x3f3   :  { %v4940_v0 = vld [vmem:[#allocation3 + $0x60] ss:$2 sm:$0xff]  ;;  %v4941_v20 = vld [vmem:[#allocation3 + $0x61] ss:$2 sm:$0xff]  ;;  %4781 = vst [vmem:[#allocation2 + $0xf0] sm:$0xf] %v4749_v27  ;;  %v4750_v43 = vadd.f32 %v4716_v7, %v4508_v2 }
 0x3f4   :  { %v4942_v4 = vmax.f32 %v4940_v0, %v4941_v20  ;;  %v5257_v48 = vld [vmem:[#allocation8 + $0x1e8] sm:$0xff]  ;;  %v5255_v27 = vld [vmem:[#allocation8 + $0x1d8] sm:$0xff]  ;;  %v5254_v7 = vld [vmem:[#allocation8 + $0x1d0] sm:$0xff] }
 0x3f5   :  { %4782 = vst [vmem:[#allocation2 + $0x8] sm:$0xf] %v4750_v43  ;;  %v5253_v2 = vld [vmem:[#allocation8 + $0x1c8] sm:$0xff]  ;;  %v5252_v0 = vld [vmem:[#allocation8 + $0x1c0] sm:$0xff]  ;;  %v5251_v20 = vld [vmem:[#allocation8 + $0x1b8] sm:$0xff] }
 0x3f6   :  { %4943 = vst [vmem:[#allocation5 + $0x30] sm:$0xff] %v4942_v4  ;;  %v5250_v43 = vld [vmem:[#allocation8 + $0x1b0] sm:$0xff]  ;;  %v5249_v4 = vld [vmem:[#allocation8 + $0x1a8] sm:$0xff] }
 0x3fa   :  { %v4945_v52 = vld [vmem:[#allocation2 + $0xf0] sm:$0xff] }
 0x3fc   :  { %v4947_v25 = vld [vmem:[#allocation2 + $0x8] sm:$0xff] }
 0x3fd   :  { %v4949_v53 = vmax.f32 %v4945_v52, %v4947_v25  ;;  %v5248_v52 = vld [vmem:[#allocation8 + $0x1a0] sm:$0xff]  ;;  %v5247_v25 = vld [vmem:[#allocation8 + $0x198] sm:$0xff] }
 0x3ff   :  { %v4958_v38 = vadd.f32 %v8201_v28, %v4949_v53  ;;  %v8597_v28 = vmov 0.0   ;;  %v5246_v53 = vld [vmem:[#allocation8 + $0x190] sm:$0xff] }
 0x401   :  { %v4960_v55 = vmax.f32 %v4958_v38, 0.0  ;;  %v5245_v38 = vld [vmem:[#allocation8 + $0x188] sm:$0xff] }
 0x403   :  { %4962 = vst [vmem:[#allocation3 + $0x78] sm:$0xff] %v4960_v55 }
 0x40a   :  { %v4963_v58 = vld [vmem:[#allocation3 + $0x70] ss:$2 sm:$0xff]  ;;  %v4964_v19 = vld [vmem:[#allocation3 + $0x71] ss:$2 sm:$0xff] }
 0x40b   :  { %v4965_v59 = vmax.f32 %v4963_v58, %v4964_v19  ;;  %v5244_v58 = vld [vmem:[#allocation8 + $0x180] sm:$0xff] }
 0x40c   :  { %v5240_v19 = vld [vmem:[#allocation5 + $0x3] ss:$8 sm:$0xf] }
 0x40d   :  { %4966 = vst [vmem:[#allocation5 + $0x38] sm:$0xff] %v4965_v59 }
 0x414   :  { %v4988_v16 = vld [vmem:[#allocation5 + $0x1] ss:$8 sm:$0xf0]  ;;  %v5149_v57 = vld [vmem:[#allocation5 + $0x2] ss:$8 sm:$0xf0] }
 0x415   :  { %v4989_v40 = vor.u32 %v4988_v16, %v4987_v37  ;;  %v5150_v36 = vor.u32 %v5149_v57, %v5148_v46  ;;  %v4968_v12 = vld [vmem:[#allocation5] ss:$8 sm:$0xf0]  ;;  %v5333_v29 = vld [vmem:[#allocation5 + $0x4] ss:$8 sm:$0xf0] }
 0x416   :  { %v4969_v14 = vor.u32 %v4968_v12, %v4967_v31  ;;  %v5334_v45 = vor.u32 %v5333_v29, %v5332_v39  ;;  %v5241_v55 = vld [vmem:[#allocation5 + $0x3] ss:$8 sm:$0xf0] }
 0x417   :  { %6054 = vmatmul.mubr.f32.vlgmr.msra.gmra.mxu1 %v4989_v40  ;;  %6124 = vmatmul.mubr.f32.vlgmr.msra.gmra.mxu0 %v5150_v36  ;;  %v5242_v59 = vor.u32 %v5241_v55, %v5240_v19  ;;  %v5447_v37 = vld [vmem:[#allocation10 + $0x78] sm:$0xff]  ;;  %v5446_v46 = vld [vmem:[#allocation10 + $0x70] sm:$0xff]  ;;  %v5445_v16 = vld [vmem:[#allocation10 + $0x68] sm:$0xff] }
 0x418   :  { %6057 = vmatpush3.msra.mxu1 %v4985_v32  ;;  %6162 = vmatpush3.msra.mxu0 %v5351_v54  ;;  %v5444_v57 = vld [vmem:[#allocation10 + $0x60] sm:$0xff]  ;;  %v5443_v40 = vld [vmem:[#allocation10 + $0x58] sm:$0xff]  ;;  %v5442_v32 = vld [vmem:[#allocation10 + $0x50] sm:$0xff] }
 0x419   :  { %6058 = vmatprep.subr.mxu1 %v8597_v28  ;;  %6163 = vmatprep.subr.mxu0 %v8597_v28  ;;  %v5441_v36 = vld [vmem:[#allocation10 + $0x48] sm:$0xff]  ;;  %v5440_v54 = vld [vmem:[#allocation10 + $0x40] sm:$0xff] }
 0x41a   :  { %6059 = vmatpush3.msra.mxu1 %v4984_v47  ;;  %6164 = vmatpush3.msra.mxu0 %v5350_v23  ;;  %v5439_v47 = vld [vmem:[#allocation10 + $0x38] sm:$0xff]  ;;  %v5438_v23 = vld [vmem:[#allocation10 + $0x30] sm:$0xff] }
 0x41b   :  { %6060 = vmatprep.subr.mxu1 %v8597_v28  ;;  %6165 = vmatprep.subr.mxu0 %v8597_v28 }
 0x41c   :  { %6061 = vmatpush3.msra.mxu1 %v4983_v18  ;;  %6166 = vmatpush3.msra.mxu0 %v5349_v61  ;;  %v5437_v18 = vld [vmem:[#allocation10 + $0x28] sm:$0xff]  ;;  %v5436_v61 = vld [vmem:[#allocation10 + $0x20] sm:$0xff] }
 0x41d   :  { %6062 = vmatprep.subr.mxu1 %v8597_v28  ;;  %6167 = vmatprep.subr.mxu0 %v8597_v28 }
 0x41e   :  { %6063 = vmatpush3.msra.mxu1 %v4982_v49  ;;  %6168 = vmatpush3.msra.mxu0 %v5348_v15  ;;  %v5435_v49 = vld [vmem:[#allocation10 + $0x18] sm:$0xff]  ;;  %v5434_v15 = vld [vmem:[#allocation10 + $0x10] sm:$0xff] }
 0x41f   :  { %6064 = vmatprep.subr.mxu1 %v8597_v28  ;;  %6169 = vmatprep.subr.mxu0 %v8597_v28 }
 0x420   :  { %6065 = vmatpush3.msra.mxu1 %v4981_v21  ;;  %6170 = vmatpush3.msra.mxu0 %v5347_v60  ;;  %v5433_v21 = vld [vmem:[#allocation10 + $0x8] sm:$0xff]  ;;  %v5432_v60 = vld [vmem:[#allocation10] sm:$0xff] }
 0x421   :  { %6066 = vmatprep.subr.mxu1 %v8597_v28  ;;  %6171 = vmatprep.subr.mxu0 %v8597_v28 }
 0x422   :  { %6067 = vmatpush3.msra.mxu1 %v4980_v22  ;;  %6172 = vmatpush3.msra.mxu0 %v5346_v30  ;;  %v5541_v22 = vld [vmem:[#allocation11 + $0x78] sm:$0xff]  ;;  %v5540_v30 = vld [vmem:[#allocation11 + $0x70] sm:$0xff] }
 0x423   :  { %6068 = vmatprep.subr.mxu1 %v8597_v28  ;;  %6173 = vmatprep.subr.mxu0 %v8597_v28 }
 0x424   :  { %6069 = vmatpush3.msra.mxu1 %v4979_v34  ;;  %6174 = vmatpush3.msra.mxu0 %v5345_v3  ;;  %v5539_v34 = vld [vmem:[#allocation11 + $0x68] sm:$0xff]  ;;  %v5538_v3 = vld [vmem:[#allocation11 + $0x60] sm:$0xff] }
 0x425   :  { %6070 = vmatprep.subr.mxu1 %v8597_v28  ;;  %6175 = vmatprep.subr.mxu0 %v8597_v28 }
 0x426   :  { %6071 = vmatpush3.msra.mxu1 %v4978_v56  ;;  %6176 = vmatpush3.msra.mxu0 %v5344_v24  ;;  %v5537_v56 = vld [vmem:[#allocation11 + $0x58] sm:$0xff]  ;;  %v5536_v24 = vld [vmem:[#allocation11 + $0x50] sm:$0xff] }
 0x427   :  { %6072 = vmatprep.subr.mxu1 %v8597_v28  ;;  %6177 = vmatprep.subr.mxu0 %v8597_v28 }
 0x428   :  { %6073 = vmatpush3.msra.mxu1 %v4977_v1  ;;  %6178 = vmatpush3.msra.mxu0 %v5343_v62  ;;  %v5535_v1 = vld [vmem:[#allocation11 + $0x48] sm:$0xff]  ;;  %v5534_v62 = vld [vmem:[#allocation11 + $0x40] sm:$0xff] }
 0x429   :  { %6074 = vmatprep.subr.mxu1 %v8597_v28  ;;  %6179 = vmatprep.subr.mxu0 %v8597_v28 }
 0x42a   :  { %6075 = vmatpush3.msra.mxu1 %v4976_v51  ;;  %6180 = vmatpush3.msra.mxu0 %v5342_v35  ;;  %v5533_v51 = vld [vmem:[#allocation11 + $0x38] sm:$0xff]  ;;  %v5532_v35 = vld [vmem:[#allocation11 + $0x30] sm:$0xff] }
 0x42b   :  { %6076 = vmatprep.subr.mxu1 %v8597_v28  ;;  %6181 = vmatprep.subr.mxu0 %v8597_v28 }
 0x42c   :  { %6077 = vmatpush3.msra.mxu1 %v4975_v42  ;;  %6182 = vmatpush3.msra.mxu0 %v5341_v11  ;;  %v5531_v42 = vld [vmem:[#allocation11 + $0x28] sm:$0xff]  ;;  %v5530_v11 = vld [vmem:[#allocation11 + $0x20] sm:$0xff] }
 0x42d   :  { %6078 = vmatprep.subr.mxu1 %v8597_v28  ;;  %6183 = vmatprep.subr.mxu0 %v8597_v28 }
 0x42e   :  { %6079 = vmatpush3.msra.mxu1 %v4974_v6  ;;  %6184 = vmatpush3.msra.mxu0 %v5340_v50  ;;  %v5529_v6 = vld [vmem:[#allocation11 + $0x18] sm:$0xff] }
 0x42f   :  { %6080 = vmatprep.subr.mxu1 %v8597_v28  ;;  %6185 = vmatprep.subr.mxu0 %v8597_v28 }
 0x430   :  { %6081 = vmatpush3.msra.mxu1 %v4973_v9  ;;  %6186 = vmatpush3.msra.mxu0 %v5339_v33 }
 0x431   :  { %6082 = vmatprep.subr.mxu1 %v8597_v28  ;;  %6187 = vmatprep.subr.mxu0 %v8597_v28 }
 0x432   :  { %6083 = vmatpush3.msra.mxu1 %v4972_v63  ;;  %6188 = vmatpush3.msra.mxu0 %v5338_v13 }
 0x433   :  { %6084 = vmatprep.subr.mxu1 %v8597_v28  ;;  %6189 = vmatprep.subr.mxu0 %v8597_v28 }
 0x434   :  { %6085 = vmatpush3.msra.mxu1 %v4971_v10  ;;  %6190 = vmatpush3.msra.mxu0 %v5337_v26 }
 0x435   :  { %6086 = vmatprep.subr.mxu1 %v8597_v28  ;;  %6191 = vmatprep.subr.mxu0 %v8597_v28 }
 0x436   :  { %6087 = vmatpush3.msra.mxu1 %v4970_v44  ;;  %6088 = vmatprep.mubr.msk.f32.mxu1 %vm6371_vm1, %v8597_v28 }
 0x437   :  { %6192 = vmatpush3.msra.mxu0 %v5336_v8  ;;  %6193 = vmatprep.mubr.msk.f32.mxu0 %vm6371_vm1, %v8597_v28 }
 0x438   :  { %6089 = vmatmul.mubr.f32.vlgmr.msra.gmra.mxu1 %v4969_v14  ;;  %6126 = vmatprep.subr.mxu1 %v8597_v28  ;;  %v5899_v14 = vld [vmem:[%s8437_s6] ss:$0 sm:$0xff] }
 0x439   :  { %6194 = vmatmul.mubr.f32.vlgmr.msra.gmra.mxu0 %v5334_v45  ;;  %6127 = vmatpush3.msra.mxu1 %v5259_v41 }
 0x43a   :  { %6128 = vmatprep.subr.mxu1 %v8597_v28  ;;  %6158 = vmatprep.mubr.msk.f32.mxu1 %vm6371_vm1, %v8597_v28 }
 0x43b   :  { %6129 = vmatpush3.msra.mxu1 %v5258_v5  ;;  %6231 = vmatprep.subr.mxu0 %v8597_v28 }
 0x43c   :  { %6130 = vmatprep.subr.mxu1 %v8597_v28  ;;  %6263 = vmatprep.mubr.msk.f32.mxu0 %vm6371_vm1, %v8597_v28 }
 0x43d   :  { %6131 = vmatpush3.msra.mxu1 %v5257_v48  ;;  %6232 = vmatpush3.msra.mxu0 %v5541_v22  ;;  %v5528_v48 = vld [vmem:[#allocation11 + $0x10] sm:$0xff] }
 0x43e   :  { %6132 = vmatprep.subr.mxu1 %v8597_v28  ;;  %6233 = vmatprep.subr.mxu0 %v8597_v28 }
 0x43f   :  { %6133 = vmatpush3.msra.mxu1 %v5256_v17  ;;  %6234 = vmatpush3.msra.mxu0 %v5540_v30  ;;  %v5527_v17 = vld [vmem:[#allocation11 + $0x8] sm:$0xff] }
 0x440   :  { %6134 = vmatprep.subr.mxu1 %v8597_v28  ;;  %6235 = vmatprep.subr.mxu0 %v8597_v28 }
 0x441   :  { %6135 = vmatpush3.msra.mxu1 %v5255_v27  ;;  %6236 = vmatpush3.msra.mxu0 %v5539_v34  ;;  %v5526_v27 = vld [vmem:[#allocation11] sm:$0xff] }
 0x442   :  { %6136 = vmatprep.subr.mxu1 %v8597_v28  ;;  %6237 = vmatprep.subr.mxu0 %v8597_v28 }
 0x443   :  { %6137 = vmatpush3.msra.mxu1 %v5254_v7  ;;  %6238 = vmatpush3.msra.mxu0 %v5538_v3  ;;  %v5900_v7 = vld [vmem:[%s8439_s8] ss:$0 sm:$0xff] }
 0x444   :  { %6138 = vmatprep.subr.mxu1 %v8597_v28  ;;  %6239 = vmatprep.subr.mxu0 %v8597_v28 }
 0x445   :  { %6139 = vmatpush3.msra.mxu1 %v5253_v2  ;;  %6240 = vmatpush3.msra.mxu0 %v5537_v56 }
 0x446   :  { %6140 = vmatprep.subr.mxu1 %v8597_v28  ;;  %6241 = vmatprep.subr.mxu0 %v8597_v28 }
 0x447   :  { %6141 = vmatpush3.msra.mxu1 %v5252_v0  ;;  %6242 = vmatpush3.msra.mxu0 %v5536_v24 }
 0x448   :  { %6142 = vmatprep.subr.mxu1 %v8597_v28  ;;  %6243 = vmatprep.subr.mxu0 %v8597_v28 }
 0x449   :  { %6143 = vmatpush3.msra.mxu1 %v5251_v20  ;;  %6244 = vmatpush3.msra.mxu0 %v5535_v1 }
 0x44a   :  { %6144 = vmatprep.subr.mxu1 %v8597_v28  ;;  %6245 = vmatprep.subr.mxu0 %v8597_v28 }
 0x44b   :  { %6145 = vmatpush3.msra.mxu1 %v5250_v43  ;;  %6246 = vmatpush3.msra.mxu0 %v5534_v62 }
 0x44c   :  { %6146 = vmatprep.subr.mxu1 %v8597_v28  ;;  %6247 = vmatprep.subr.mxu0 %v8597_v28 }
 0x44d   :  { %6147 = vmatpush3.msra.mxu1 %v5249_v4  ;;  %6248 = vmatpush3.msra.mxu0 %v5533_v51  ;;  %v5901_v4 = vld [vmem:[%s8441_s10] ss:$0 sm:$0xff] }
 0x44e   :  { %6148 = vmatprep.subr.mxu1 %v8597_v28  ;;  %6249 = vmatprep.subr.mxu0 %v8597_v28 }
 0x44f   :  { %6149 = vmatpush3.msra.mxu1 %v5248_v52  ;;  %6250 = vmatpush3.msra.mxu0 %v5532_v35 }
 0x450   :  { %6150 = vmatprep.subr.mxu1 %v8597_v28  ;;  %6251 = vmatprep.subr.mxu0 %v8597_v28 }
 0x451   :  { %6151 = vmatpush3.msra.mxu1 %v5247_v25  ;;  %6252 = vmatpush3.msra.mxu0 %v5531_v42 }
 0x452   :  { %6152 = vmatprep.subr.mxu1 %v8597_v28  ;;  %6253 = vmatprep.subr.mxu0 %v8597_v28 }
 0x453   :  { %6153 = vmatpush3.msra.mxu1 %v5246_v53  ;;  %6254 = vmatpush3.msra.mxu0 %v5530_v11 }
 0x454   :  { %6154 = vmatprep.subr.mxu1 %v8597_v28  ;;  %6255 = vmatprep.subr.mxu0 %v8597_v28 }
 0x455   :  { %6155 = vmatpush3.msra.mxu1 %v5245_v38  ;;  %6256 = vmatpush3.msra.mxu0 %v5529_v6 }
 0x456   :  { %6156 = vmatprep.subr.mxu1 %v8597_v28  ;;  %6257 = vmatprep.subr.mxu0 %v8597_v28 }
 0x457   :  { %6157 = vmatpush3.msra.mxu1 %v5244_v58  ;;  %6258 = vmatpush3.msra.mxu0 %v5528_v48 }
 0x458   :  { %6159 = vmatmul.mubr.f32.vlgmr.msra.gmra.mxu1 %v5242_v59  ;;  %6196 = vmatprep.subr.mxu1 %v8597_v28 }
 0x459   :  { %6228 = vmatprep.mubr.msk.f32.mxu1 %vm6371_vm1, %v8597_v28  ;;  %6197 = vmatpush3.msra.mxu1 %v5447_v37 }
 0x45a   :  { %6198 = vmatprep.subr.mxu1 %v8597_v28  ;;  %6259 = vmatprep.subr.mxu0 %v8597_v28 }
 0x45b   :  { %6199 = vmatpush3.msra.mxu1 %v5446_v46  ;;  %6260 = vmatpush3.msra.mxu0 %v5527_v17 }
 0x45c   :  { %6200 = vmatprep.subr.mxu1 %v8597_v28  ;;  %6261 = vmatprep.subr.mxu0 %v8597_v28 }
 0x45d   :  { %6201 = vmatpush3.msra.mxu1 %v5445_v16  ;;  %6262 = vmatpush3.msra.mxu0 %v5526_v27 }
 0x45e   :  { %6202 = vmatprep.subr.mxu1 %v8597_v28 }
 0x45f   :  { %6203 = vmatpush3.msra.mxu1 %v5444_v57 }
 0x460   :  { %6204 = vmatprep.subr.mxu1 %v8597_v28 }
 0x461   :  { %6205 = vmatpush3.msra.mxu1 %v5443_v40 }
 0x462   :  { %6206 = vmatprep.subr.mxu1 %v8597_v28 }
 0x463   :  { %6207 = vmatpush3.msra.mxu1 %v5442_v32 }
 0x464   :  { %6208 = vmatprep.subr.mxu1 %v8597_v28 }
 0x465   :  { %6209 = vmatpush3.msra.mxu1 %v5441_v36 }
 0x466   :  { %6210 = vmatprep.subr.mxu1 %v8597_v28 }
 0x467   :  { %6211 = vmatpush3.msra.mxu1 %v5440_v54 }
 0x468   :  { %6212 = vmatprep.subr.mxu1 %v8597_v28 }
 0x469   :  { %6213 = vmatpush3.msra.mxu1 %v5439_v47 }
 0x46a   :  { %6214 = vmatprep.subr.mxu1 %v8597_v28 }
 0x46b   :  { %6215 = vmatpush3.msra.mxu1 %v5438_v23 }
 0x46c   :  { %6216 = vmatprep.subr.mxu1 %v8597_v28 }
 0x46d   :  { %6217 = vmatpush3.msra.mxu1 %v5437_v18 }
 0x46e   :  { %6218 = vmatprep.subr.mxu1 %v8597_v28 }
 0x46f   :  { %6219 = vmatpush3.msra.mxu1 %v5436_v61 }
 0x470   :  { %6220 = vmatprep.subr.mxu1 %v8597_v28 }
 0x471   :  { %6221 = vmatpush3.msra.mxu1 %v5435_v49 }
 0x472   :  { %6222 = vmatprep.subr.mxu1 %v8597_v28 }
 0x473   :  { %6223 = vmatpush3.msra.mxu1 %v5434_v15 }
 0x474   :  { %6224 = vmatprep.subr.mxu1 %v8597_v28 }
 0x475   :  { %6225 = vmatpush3.msra.mxu1 %v5433_v21 }
 0x476   :  { %6226 = vmatprep.subr.mxu1 %v8597_v28 }
 0x477   :  { %6227 = vmatpush3.msra.mxu1 %v5432_v60 }
 0x4d7   :  { %v5073_v50 = vpop.f32.mrf.mxu1  ;;  %v5234_v9 = vpop.f32.mrf.mxu0 }
 0x4d9   :  { %v6055_v33 = vpop.f32.mrf.mxu1  ;;  %v6125_v63 = vpop.f32.mrf.mxu0 }
 0x4f8   :  { %v5143_v13 = vpop.f32.mrf.mxu1 }
 0x4f9   :  { %v5418_v10 = vpop.f32.mrf.mxu0  ;;  %v5144_v12 = vadd.f32 %v5143_v13, %v5073_v50 }
 0x4fa   :  { %v6090_v26 = vpop.f32.mrf.mxu1 }
 0x4fb   :  { %v6195_v44 = vpop.f32.mrf.mxu0  ;;  %v5238_v8 = vadd.f32 %v5234_v9, %v5144_v12 }
 0x518   :  { %v5326_v29 = vpop.f32.mrf.mxu1 }
 0x519   :  { %v5330_v31 = vadd.f32 %v5326_v29, %v5238_v8 }
 0x51a   :  { %v6160_v39 = vpop.f32.mrf.mxu1 }
 0x51b   :  { %v5422_v41 = vadd.f32 %v5418_v10, %v5330_v31 }
 0x51d   :  { %v5430_v45 = vadd.f32 %v5899_v14, %v5422_v41 }
 0x51f   :  { %v5431_v5 = vmax.f32 %v5430_v45, 0.0 }
 0x521   :  { %6229 = vmatmul.mubr.f32.vlgmr.msra.gmra.mxu1 %v5431_v5 }
 0x5e1   :  { %v5521_v2 = vpop.f32.mrf.mxu1 }
 0x5e2   :  { %v5522_v0 = vadd.f32 %v5900_v7, %v5521_v2 }
 0x5e3   :  { %v6230_v20 = vpop.f32.mrf.mxu1 }
 0x5e4   :  { %v5525_v43 = vmax.f32 %v5522_v0, 0.0 }
 0x5e6   :  { %6264 = vmatmul.mubr.f32.vlgmr.msra.gmra.mxu0 %v5525_v43 }
 0x6a6   :  { %v5615_v52 = vpop.f32.mrf.mxu0 }
 0x6a7   :  { %v5616_v25 = vadd.f32 %v5901_v4, %v5615_v52 }
 0x6a8   :  { %v6265_v53 = vpop.f32.mrf.mxu0 }
 0x6a9   :  { %5619 = vst [vmem:[%s8442_s11] sm:$0xff] %v5616_v25 }
 0x6aa   :  { %5624 = vsyncpa [#allocation7], 1 }
 0x6ab   :  { %5625 = vsyncpa [#allocation9], 1 }
 0x6ac   :  { %5626 = vsyncpa [#allocation12], 1 }

</bundles_post_ra>
